<compile_context>
chip_gen: v5e
topology: v5e:2x2
jax: 0.10.0
libtpu: 0.0.40
codegen_flags: <defaults>
</compile_context>

<pallas_src>
import math
from functools import partial

import jax
import jax.numpy as jnp
from jax.experimental import pallas as pl
from jax.experimental.pallas import tpu as pltpu


# Row indices of the packed small-constant array (biases / LayerNorm affines).
(_C_BQKV, _C_BO, _C_G1, _C_BE1, _C_B1, _C_B2,
 _C_G2, _C_BE2, _C_GF, _C_BEF, _C_BP) = range(11)
_N_CONST_ROWS = 11


# ----------------------------- fused kernel -----------------------------

def _layernorm(v, g, b, eps):
    # PyTorch LayerNorm semantics: biased variance, eps inside rsqrt.
    mu = jnp.mean(v, axis=-1, keepdims=True)
    c = v - mu
    var = jnp.mean(c * c, axis=-1, keepdims=True)
    return c * jax.lax.rsqrt(var + eps) * g + b


def _fused_forward_kernel(
    x_ref, pe_ref, wtok_ref, wqkv_ref, wo_ref, w1_ref, w2_ref, wp_ref, c_ref,
    o_ref,
    *, bblk, seq_len, n_heads, d_keys, d_model, d_ff, head_pad, c_out, eps):
    f32 = jnp.float32
    bf16 = jnp.bfloat16
    L = seq_len

    x = x_ref[...]                                   # (bblk*L, Cin) f32

    # --- DataEmbedding: circular Conv1d(k=3) folded into ONE matmul.
    # full = x @ [W(-1) | W(0) | W(+1)]; outer-tap results are realigned by
    # exact per-sample sublane rotations (XLU slot, otherwise idle).
    full = jnp.dot(x.astype(bf16), wtok_ref[...], preferred_element_type=f32)
    pe = pe_ref[...]                                 # (L, D) f32
    h_parts = []
    for s in range(bblk):
        fs = full[s * L:(s + 1) * L]                 # (L, 3D), 8-aligned slice
        tok = (pltpu.roll(fs[:, 0:d_model], 1, axis=0)                       # tap on x[t-1]
               + fs[:, d_model:2 * d_model]                                  # tap on x[t]
               + pltpu.roll(fs[:, 2 * d_model:3 * d_model], L - 1, axis=0))  # tap on x[t+1]
        h_parts.append(tok + pe)                     # + positional emb (dropout = id)
    h = h_parts[0] if bblk == 1 else jnp.concatenate(h_parts, axis=0)  # (bblk*L, D)

    # --- fused Q/K/V projection: one lane-dense matmul, 64-lane head slots ---
    bqkv = c_ref[_C_BQKV:_C_BQKV + 1, 0:3 * head_pad]
    qkv = (jnp.dot(h.astype(bf16), wqkv_ref[...], preferred_element_type=f32)
           + bqkv)                                   # (bblk*L, 3*head_pad)
    q = qkv[:, 0:head_pad]
    k = qkv[:, head_pad:2 * head_pad]
    v = qkv[:, 2 * head_pad:3 * head_pad]

    # --- multi-head attention: per-head lane masks precomputed once,
    #     per-sample score/softmax/PV via a small static loop over the block ---
    scale = 1.0 / math.sqrt(d_keys)
    lane = jax.lax.broadcasted_iota(jnp.int32, (L, head_pad), 1)
    masks = [((lane >= hd * d_keys) & (lane < (hd + 1) * d_keys)).astype(f32)
             for hd in range(n_heads)]

    o_parts = []
    for s in range(bblk):
        qs = q[s * L:(s + 1) * L]
        ks = k[s * L:(s + 1) * L].astype(bf16)
        vs = v[s * L:(s + 1) * L]
        head_outs = []
        for m in masks:
            # (q*m) @ k^T only picks up this head's columns -> per-head scores
            sc = jax.lax.dot_general((qs * m).astype(bf16), ks,
                                     (((1,), (1,)), ((), ())),
                                     preferred_element_type=f32) * scale
            sc = sc - jnp.max(sc, axis=-1, keepdims=True)
            p = jnp.exp(sc)
            p = p / jnp.sum(p, axis=-1, keepdims=True)       # exact softmax
            head_outs.append(jnp.dot(p.astype(bf16), (vs * m).astype(bf16),
                                     preferred_element_type=f32))
        # tree-sum of independent per-head partials (no serial o += chain)
        while len(head_outs) > 1:
            head_outs = ([head_outs[i] + head_outs[i + 1]
                          for i in range(0, len(head_outs) - 1, 2)]
                         + ([head_outs[-1]] if len(head_outs) % 2 else []))
        o_parts.append(head_outs[0])
    o = o_parts[0] if bblk == 1 else jnp.concatenate(o_parts, axis=0)  # (bblk*L, HP)

    # --- attention out-projection + residual + norm1 ---
    bo = c_ref[_C_BO:_C_BO + 1, 0:d_model]
    new_x = jnp.dot(o.astype(bf16), wo_ref[...], preferred_element_type=f32) + bo
    xn = _layernorm(h + new_x,
                    c_ref[_C_G1:_C_G1 + 1, 0:d_model],
                    c_ref[_C_BE1:_C_BE1 + 1, 0:d_model], eps)

    # --- FFN (1x1 convs == matmuls) + residual + norm2 ---
    hh = (jnp.dot(xn.astype(bf16), w1_ref[...], preferred_element_type=f32)
          + c_ref[_C_B1:_C_B1 + 1, 0:d_ff])
    # Exact GELU (erf form), matching F.gelu; on v5e a tanh-approx GELU would
    # be cheaper if the tolerance budget allowed it.
    hh = 0.5 * hh * (1.0 + jax.lax.erf(hh * (1.0 / math.sqrt(2.0))))
    y = (jnp.dot(hh.astype(bf16), w2_ref[...], preferred_element_type=f32)
         + c_ref[_C_B2:_C_B2 + 1, 0:d_model])
    y = _layernorm(xn + y,
                   c_ref[_C_G2:_C_G2 + 1, 0:d_model],
                   c_ref[_C_BE2:_C_BE2 + 1, 0:d_model], eps)

    # --- encoder final LayerNorm + output projection, written once ---
    y = _layernorm(y,
                   c_ref[_C_GF:_C_GF + 1, 0:d_model],
                   c_ref[_C_BEF:_C_BEF + 1, 0:d_model], eps)
    o_ref[...] = (jnp.dot(y.astype(bf16), wp_ref[...], preferred_element_type=f32)
                  + c_ref[_C_BP:_C_BP + 1, 0:c_out])


# ----------------------------- parameter setup -----------------------------

def positional_embedding(L, d_model):
    position = jnp.arange(L, dtype=jnp.float32)[:, None]
    div_term = jnp.exp(jnp.arange(0, d_model, 2, dtype=jnp.float32)
                       * -(math.log(10000.0) / d_model))
    pe = jnp.zeros((L, d_model), jnp.float32)
    pe = pe.at[:, 0::2].set(jnp.sin(position * div_term))
    pe = pe.at[:, 1::2].set(jnp.cos(position * div_term))
    return pe


def init_params(key, *, enc_in, win_size, d_model, n_heads, d_ff, c_out):
    d_keys = d_model // n_heads
    HE = n_heads * d_keys                      # 60 for the default config
    head_pad = ((HE + 63) // 64) * 64          # 64-lane head slots
    L = win_size
    ks = jax.random.split(key, 16)

    def w(k, shape, scale=0.02):
        return scale * jax.random.normal(k, shape, jnp.float32)

    p = {}
    p["pe"] = positional_embedding(L, d_model)

    # TokenEmbedding: circular Conv1d(enc_in, d_model, k=3, bias=False),
    # columns ordered [W(t-1) | W(t) | W(t+1)] so the conv is one matmul.
    p["wtok"] = w(ks[0], (enc_in, 3 * d_model)).astype(jnp.bfloat16)

    # Fused Q/K/V projection; each slot zero-padded from HE to head_pad lanes.
    wqkv = jnp.zeros((d_model, 3 * head_pad), jnp.float32)
    bqkv = jnp.zeros((3 * head_pad,), jnp.float32)
    for slot in range(3):
        wqkv = wqkv.at[:, slot * head_pad: slot * head_pad + HE].set(
            w(ks[1 + slot], (d_model, HE)))
        bqkv = bqkv.at[slot * head_pad: slot * head_pad + HE].set(
            w(ks[4 + slot], (HE,)))
    p["wqkv"] = wqkv.astype(jnp.bfloat16)

    # attention out-projection (rows HE:head_pad zero-padded)
    wo = jnp.zeros((head_pad, d_model), jnp.float32).at[0:HE, :].set(
        w(ks[7], (HE, d_model)))
    p["wo"] = wo.astype(jnp.bfloat16)

    # FFN (1x1 convs) + output projection
    p["w1"] = w(ks[8], (d_model, d_ff)).astype(jnp.bfloat16)
    p["w2"] = w(ks[9], (d_ff, d_model)).astype(jnp.bfloat16)
    p["wp"] = w(ks[10], (d_model, c_out)).astype(jnp.bfloat16)

    # All small bias / LayerNorm-affine vectors packed into one f32 array
    # (one prologue DMA + one VMEM tile instead of eleven).
    cw = max(3 * head_pad, d_model, d_ff, c_out)
    consts = jnp.zeros((_N_CONST_ROWS, cw), jnp.float32)
    consts = consts.at[_C_BQKV, 0:3 * head_pad].set(bqkv)
    consts = consts.at[_C_BO, 0:d_model].set(w(ks[11], (d_model,)))
    consts = consts.at[_C_G1, 0:d_model].set(jnp.ones((d_model,), jnp.float32))
    consts = consts.at[_C_B1, 0:d_ff].set(w(ks[12], (d_ff,)))
    consts = consts.at[_C_B2, 0:d_model].set(w(ks[13], (d_model,)))
    consts = consts.at[_C_G2, 0:d_model].set(jnp.ones((d_model,), jnp.float32))
    consts = consts.at[_C_GF, 0:d_model].set(jnp.ones((d_model,), jnp.float32))
    consts = consts.at[_C_BP, 0:c_out].set(w(ks[14], (c_out,)))
    # _C_BE1 / _C_BE2 / _C_BEF rows stay zero (LayerNorm betas).
    p["consts"] = consts
    return p


# ----------------------------- forward pass -----------------------------

_PARAM_ORDER = ("pe", "wtok", "wqkv", "wo", "w1", "w2", "wp", "consts")


def _const_spec(arr):
    n = arr.ndim
    return pl.BlockSpec(arr.shape, lambda b, n=n: (0,) * n)


def attention_layer_forward(x, p, *, n_heads, d_keys, block_b=1):
    """x: (B, L, enc_in) f32 -> (B, L, c_out) f32.  One fused Pallas kernel;
    each grid step processes `block_b` samples (keep grid extent >= 2 on v7x)."""
    B, L, Cin = x.shape
    assert B % block_b == 0, "batch must be divisible by block_b"
    head_pad = p["wo"].shape[0]
    d_model = p["wo"].shape[1]
    d_ff = p["w1"].shape[1]
    c_out = p["wp"].shape[1]

    x2 = x.reshape(B * L, Cin)                       # free: contiguous reshape

    kernel = partial(_fused_forward_kernel,
                     bblk=block_b, seq_len=L, n_heads=n_heads, d_keys=d_keys,
                     d_model=d_model, d_ff=d_ff, head_pad=head_pad,
                     c_out=c_out, eps=1e-5)

    in_specs = [pl.BlockSpec((block_b * L, Cin), lambda b: (b, 0))]
    in_specs += [_const_spec(p[name]) for name in _PARAM_ORDER]

    out = pl.pallas_call(
        kernel,
        out_shape=jax.ShapeDtypeStruct((B * L, c_out), jnp.float32),
        grid=(B // block_b,),
        in_specs=in_specs,
        out_specs=pl.BlockSpec((block_b * L, c_out), lambda b: (b, 0)),
        compiler_params=pltpu.CompilerParams(
            dimension_semantics=("parallel",)),      # megacore / v7x 2-TC split
    )(x2, *[p[name] for name in _PARAM_ORDER])

    return out.reshape(B, L, c_out)


# ----------------------------- demo -----------------------------

if __name__ == "__main__":
    # Shapes consistent with Attention_layer defaults:
    # win_size=16, enc_in=4, c_out=4, d_model=64, n_heads=6, d_ff=64, e_layers=1
    B, L, enc_in, c_out = 4, 16, 4, 4
    d_model, n_heads, d_ff = 64, 6, 64
    d_keys = d_model // n_heads        # 10 (matches PyTorch AttentionLayer semantics)

    key = jax.random.PRNGKey(0)
    kx, kp = jax.random.split(key)
    x = jax.random.normal(kx, (B, L, enc_in), jnp.float32)
    params = init_params(kp, enc_in=enc_in, win_size=L, d_model=d_model,
                         n_heads=n_heads, d_ff=d_ff, c_out=c_out)

    # block_b=2 -> grid=(2,): batch blocking amortizes per-step overhead while
    # keeping two parallel grid steps so both v7x TensorCores stay busy.
    fwd = jax.jit(partial(attention_layer_forward,
                          n_heads=n_heads, d_keys=d_keys, block_b=2))
    out = fwd(x, params)
    jax.block_until_ready(out)
    assert out.shape == (B, L, c_out) and out.dtype == jnp.float32
    print("KERNEL_OK")
</pallas_src>

<mosaic_0001>
module attributes {stable_mosaic.version = 11 : i64} {
  func.func @_fused_forward_kernel(%arg0: i32, %arg1: memref<32x4xf32, #tpu.memory_space<vmem>>, %arg2: memref<16x64xf32, #tpu.memory_space<vmem>>, %arg3: memref<4x192xbf16, #tpu.memory_space<vmem>>, %arg4: memref<64x192xbf16, #tpu.memory_space<vmem>>, %arg5: memref<64x64xbf16, #tpu.memory_space<vmem>>, %arg6: memref<64x64xbf16, #tpu.memory_space<vmem>>, %arg7: memref<64x64xbf16, #tpu.memory_space<vmem>>, %arg8: memref<64x4xbf16, #tpu.memory_space<vmem>>, %arg9: memref<11x192xf32, #tpu.memory_space<vmem>>, %arg10: memref<32x4xf32, #tpu.memory_space<vmem>>) attributes {dimension_semantics = [#tpu.dimension_semantics<parallel>], iteration_bounds = array<i64: 2>, scalar_prefetch = 0 : i64, scratch_operands = 0 : i64, tpu.core_type = #tpu.core_type<tc>, window_params = [{transform_indices = @transform_0, window_bounds = array<i64: 32, 4>}, {pipeline_mode = #tpu.pipeline_mode<synchronous>, transform_indices = @transform_1, window_bounds = array<i64: 16, 64>}, {pipeline_mode = #tpu.pipeline_mode<synchronous>, transform_indices = @transform_2, window_bounds = array<i64: 4, 192>}, {pipeline_mode = #tpu.pipeline_mode<synchronous>, transform_indices = @transform_3, window_bounds = array<i64: 64, 192>}, {pipeline_mode = #tpu.pipeline_mode<synchronous>, transform_indices = @transform_4, window_bounds = array<i64: 64, 64>}, {pipeline_mode = #tpu.pipeline_mode<synchronous>, transform_indices = @transform_5, window_bounds = array<i64: 64, 64>}, {pipeline_mode = #tpu.pipeline_mode<synchronous>, transform_indices = @transform_6, window_bounds = array<i64: 64, 64>}, {pipeline_mode = #tpu.pipeline_mode<synchronous>, transform_indices = @transform_7, window_bounds = array<i64: 64, 4>}, {pipeline_mode = #tpu.pipeline_mode<synchronous>, transform_indices = @transform_8, window_bounds = array<i64: 11, 192>}, {transform_indices = @transform_9, window_bounds = array<i64: 32, 4>}]} {
    %c0 = arith.constant 0 : index
    %c0_0 = arith.constant 0 : index
    %0 = vector.load %arg1[%c0, %c0_0] : memref<32x4xf32, #tpu.memory_space<vmem>>, vector<32x4xf32>
    %1 = arith.truncf %0 : vector<32x4xf32> to vector<32x4xbf16>
    %c0_1 = arith.constant 0 : index
    %c0_2 = arith.constant 0 : index
    %2 = vector.load %arg3[%c0_1, %c0_2] : memref<4x192xbf16, #tpu.memory_space<vmem>>, vector<4x192xbf16>
    %cst = arith.constant dense<0.000000e+00> : vector<32x192xf32>
    %3 = tpu.matmul %1, %2, %cst {dimension_numbers = #tpu.dot_dimension_numbers<[1], [0], [0], [1], [0, 0, 1, 1], [], []>} : vector<32x4xbf16>, vector<4x192xbf16>, vector<32x192xf32> -> vector<32x192xf32>
    %c0_3 = arith.constant 0 : index
    %c0_4 = arith.constant 0 : index
    %4 = vector.load %arg2[%c0_3, %c0_4] : memref<16x64xf32, #tpu.memory_space<vmem>>, vector<16x64xf32>
    %5 = vector.extract_strided_slice %3 {offsets = [0, 0], sizes = [16, 192], strides = [1, 1]} : vector<32x192xf32> to vector<16x192xf32>
    %6 = vector.extract_strided_slice %5 {offsets = [0, 0], sizes = [16, 64], strides = [1, 1]} : vector<16x192xf32> to vector<16x64xf32>
    %c1_i32 = arith.constant 1 : i32
    %7 = tpu.dynamic_rotate %6 by %c1_i32 dim 0 : vector<16x64xf32>, i32 -> vector<16x64xf32>
    %8 = vector.extract_strided_slice %5 {offsets = [0, 64], sizes = [16, 64], strides = [1, 1]} : vector<16x192xf32> to vector<16x64xf32>
    %9 = arith.addf %7, %8 : vector<16x64xf32>
    %10 = vector.extract_strided_slice %5 {offsets = [0, 128], sizes = [16, 64], strides = [1, 1]} : vector<16x192xf32> to vector<16x64xf32>
    %c15_i32 = arith.constant 15 : i32
    %11 = tpu.dynamic_rotate %10 by %c15_i32 dim 0 : vector<16x64xf32>, i32 -> vector<16x64xf32>
    %12 = arith.addf %9, %11 : vector<16x64xf32>
    %13 = arith.addf %12, %4 : vector<16x64xf32>
    %14 = vector.extract_strided_slice %3 {offsets = [16, 0], sizes = [16, 192], strides = [1, 1]} : vector<32x192xf32> to vector<16x192xf32>
    %15 = vector.extract_strided_slice %14 {offsets = [0, 0], sizes = [16, 64], strides = [1, 1]} : vector<16x192xf32> to vector<16x64xf32>
    %c1_i32_5 = arith.constant 1 : i32
    %16 = tpu.dynamic_rotate %15 by %c1_i32_5 dim 0 : vector<16x64xf32>, i32 -> vector<16x64xf32>
    %17 = vector.extract_strided_slice %14 {offsets = [0, 64], sizes = [16, 64], strides = [1, 1]} : vector<16x192xf32> to vector<16x64xf32>
    %18 = arith.addf %16, %17 : vector<16x64xf32>
    %19 = vector.extract_strided_slice %14 {offsets = [0, 128], sizes = [16, 64], strides = [1, 1]} : vector<16x192xf32> to vector<16x64xf32>
    %c15_i32_6 = arith.constant 15 : i32
    %20 = tpu.dynamic_rotate %19 by %c15_i32_6 dim 0 : vector<16x64xf32>, i32 -> vector<16x64xf32>
    %21 = arith.addf %18, %20 : vector<16x64xf32>
    %22 = arith.addf %21, %4 : vector<16x64xf32>
    %23 = tpu.concatenate %13, %22 in 0 : vector<16x64xf32>, vector<16x64xf32> -> vector<32x64xf32>
    %c0_7 = arith.constant 0 : index
    %c0_8 = arith.constant 0 : index
    %24 = vector.load %arg9[%c0_7, %c0_8] : memref<11x192xf32, #tpu.memory_space<vmem>>, vector<1x192xf32>
    %25 = arith.truncf %23 : vector<32x64xf32> to vector<32x64xbf16>
    %c0_9 = arith.constant 0 : index
    %c0_10 = arith.constant 0 : index
    %26 = vector.load %arg4[%c0_9, %c0_10] : memref<64x192xbf16, #tpu.memory_space<vmem>>, vector<64x192xbf16>
    %cst_11 = arith.constant dense<0.000000e+00> : vector<32x192xf32>
    %27 = tpu.matmul %25, %26, %cst_11 {dimension_numbers = #tpu.dot_dimension_numbers<[1], [0], [0], [1], [0, 0, 1, 1], [], []>} : vector<32x64xbf16>, vector<64x192xbf16>, vector<32x192xf32> -> vector<32x192xf32>
    %28 = vector.broadcast %24 : vector<1x192xf32> to vector<32x192xf32>
    %29 = arith.addf %27, %28 : vector<32x192xf32>
    %30 = vector.extract_strided_slice %29 {offsets = [0, 0], sizes = [32, 64], strides = [1, 1]} : vector<32x192xf32> to vector<32x64xf32>
    %31 = vector.extract_strided_slice %29 {offsets = [0, 64], sizes = [32, 64], strides = [1, 1]} : vector<32x192xf32> to vector<32x64xf32>
    %32 = vector.extract_strided_slice %29 {offsets = [0, 128], sizes = [32, 64], strides = [1, 1]} : vector<32x192xf32> to vector<32x64xf32>
    %33 = tpu.iota {dimensions = array<i32: 1>} : vector<16x64xi32>
    %c0_i32 = arith.constant 0 : i32
    %34 = vector.broadcast %c0_i32 : i32 to vector<16x64xi32>
    %35 = arith.cmpi sge, %33, %34 : vector<16x64xi32>
    %c10_i32 = arith.constant 10 : i32
    %36 = vector.broadcast %c10_i32 : i32 to vector<16x64xi32>
    %37 = arith.cmpi slt, %33, %36 : vector<16x64xi32>
    %38 = arith.andi %35, %37 : vector<16x64xi1>
    %39 = arith.extui %38 : vector<16x64xi1> to vector<16x64xi32>
    %40 = arith.sitofp %39 : vector<16x64xi32> to vector<16x64xf32>
    %c10_i32_12 = arith.constant 10 : i32
    %41 = vector.broadcast %c10_i32_12 : i32 to vector<16x64xi32>
    %42 = arith.cmpi sge, %33, %41 : vector<16x64xi32>
    %c20_i32 = arith.constant 20 : i32
    %43 = vector.broadcast %c20_i32 : i32 to vector<16x64xi32>
    %44 = arith.cmpi slt, %33, %43 : vector<16x64xi32>
    %45 = arith.andi %42, %44 : vector<16x64xi1>
    %46 = arith.extui %45 : vector<16x64xi1> to vector<16x64xi32>
    %47 = arith.sitofp %46 : vector<16x64xi32> to vector<16x64xf32>
    %c20_i32_13 = arith.constant 20 : i32
    %48 = vector.broadcast %c20_i32_13 : i32 to vector<16x64xi32>
    %49 = arith.cmpi sge, %33, %48 : vector<16x64xi32>
    %c30_i32 = arith.constant 30 : i32
    %50 = vector.broadcast %c30_i32 : i32 to vector<16x64xi32>
    %51 = arith.cmpi slt, %33, %50 : vector<16x64xi32>
    %52 = arith.andi %49, %51 : vector<16x64xi1>
    %53 = arith.extui %52 : vector<16x64xi1> to vector<16x64xi32>
    %54 = arith.sitofp %53 : vector<16x64xi32> to vector<16x64xf32>
    %c30_i32_14 = arith.constant 30 : i32
    %55 = vector.broadcast %c30_i32_14 : i32 to vector<16x64xi32>
    %56 = arith.cmpi sge, %33, %55 : vector<16x64xi32>
    %c40_i32 = arith.constant 40 : i32
    %57 = vector.broadcast %c40_i32 : i32 to vector<16x64xi32>
    %58 = arith.cmpi slt, %33, %57 : vector<16x64xi32>
    %59 = arith.andi %56, %58 : vector<16x64xi1>
    %60 = arith.extui %59 : vector<16x64xi1> to vector<16x64xi32>
    %61 = arith.sitofp %60 : vector<16x64xi32> to vector<16x64xf32>
    %c40_i32_15 = arith.constant 40 : i32
    %62 = vector.broadcast %c40_i32_15 : i32 to vector<16x64xi32>
    %63 = arith.cmpi sge, %33, %62 : vector<16x64xi32>
    %c50_i32 = arith.constant 50 : i32
    %64 = vector.broadcast %c50_i32 : i32 to vector<16x64xi32>
    %65 = arith.cmpi slt, %33, %64 : vector<16x64xi32>
    %66 = arith.andi %63, %65 : vector<16x64xi1>
    %67 = arith.extui %66 : vector<16x64xi1> to vector<16x64xi32>
    %68 = arith.sitofp %67 : vector<16x64xi32> to vector<16x64xf32>
    %c50_i32_16 = arith.constant 50 : i32
    %69 = vector.broadcast %c50_i32_16 : i32 to vector<16x64xi32>
    %70 = arith.cmpi sge, %33, %69 : vector<16x64xi32>
    %c60_i32 = arith.constant 60 : i32
    %71 = vector.broadcast %c60_i32 : i32 to vector<16x64xi32>
    %72 = arith.cmpi slt, %33, %71 : vector<16x64xi32>
    %73 = arith.andi %70, %72 : vector<16x64xi1>
    %74 = arith.extui %73 : vector<16x64xi1> to vector<16x64xi32>
    %75 = arith.sitofp %74 : vector<16x64xi32> to vector<16x64xf32>
    %76 = vector.extract_strided_slice %30 {offsets = [0, 0], sizes = [16, 64], strides = [1, 1]} : vector<32x64xf32> to vector<16x64xf32>
    %77 = vector.extract_strided_slice %31 {offsets = [0, 0], sizes = [16, 64], strides = [1, 1]} : vector<32x64xf32> to vector<16x64xf32>
    %78 = arith.truncf %77 : vector<16x64xf32> to vector<16x64xbf16>
    %79 = vector.extract_strided_slice %32 {offsets = [0, 0], sizes = [16, 64], strides = [1, 1]} : vector<32x64xf32> to vector<16x64xf32>
    %80 = arith.mulf %76, %40 : vector<16x64xf32>
    %81 = arith.truncf %80 : vector<16x64xf32> to vector<16x64xbf16>
    %cst_17 = arith.constant dense<0.000000e+00> : vector<16x16xf32>
    %82 = tpu.matmul %81, %78, %cst_17 {dimension_numbers = #tpu.dot_dimension_numbers<[1], [1], [0], [0], [0, 0, 1, 0], [], []>} : vector<16x64xbf16>, vector<16x64xbf16>, vector<16x16xf32> -> vector<16x16xf32>
    %cst_18 = arith.constant 0.316227764 : f32
    %83 = vector.broadcast %cst_18 : f32 to vector<16x16xf32>
    %84 = arith.mulf %82, %83 : vector<16x16xf32>
    %cst_19 = arith.constant dense<0xFF800000> : vector<16xf32>
    %85 = vector.multi_reduction <maximumf>, %84, %cst_19 [1] : vector<16x16xf32> to vector<16xf32>
    %86 = vector.shape_cast %85 : vector<16xf32> to vector<16x1xf32>
    %87 = vector.broadcast %86 : vector<16x1xf32> to vector<16x16xf32>
    %88 = arith.subf %84, %87 : vector<16x16xf32>
    %89 = math.exp %88 : vector<16x16xf32>
    %cst_20 = arith.constant dense<0.000000e+00> : vector<16xf32>
    %90 = vector.multi_reduction <add>, %89, %cst_20 [1] : vector<16x16xf32> to vector<16xf32>
    %91 = vector.shape_cast %90 : vector<16xf32> to vector<16x1xf32>
    %92 = vector.broadcast %91 : vector<16x1xf32> to vector<16x16xf32>
    %93 = arith.divf %89, %92 : vector<16x16xf32>
    %94 = arith.truncf %93 : vector<16x16xf32> to vector<16x16xbf16>
    %95 = arith.mulf %79, %40 : vector<16x64xf32>
    %96 = arith.truncf %95 : vector<16x64xf32> to vector<16x64xbf16>
    %cst_21 = arith.constant dense<0.000000e+00> : vector<16x64xf32>
    %97 = tpu.matmul %94, %96, %cst_21 {dimension_numbers = #tpu.dot_dimension_numbers<[1], [0], [0], [1], [0, 0, 1, 1], [], []>} : vector<16x16xbf16>, vector<16x64xbf16>, vector<16x64xf32> -> vector<16x64xf32>
    %98 = arith.mulf %76, %47 : vector<16x64xf32>
    %99 = arith.truncf %98 : vector<16x64xf32> to vector<16x64xbf16>
    %cst_22 = arith.constant dense<0.000000e+00> : vector<16x16xf32>
    %100 = tpu.matmul %99, %78, %cst_22 {dimension_numbers = #tpu.dot_dimension_numbers<[1], [1], [0], [0], [0, 0, 1, 0], [], []>} : vector<16x64xbf16>, vector<16x64xbf16>, vector<16x16xf32> -> vector<16x16xf32>
    %cst_23 = arith.constant 0.316227764 : f32
    %101 = vector.broadcast %cst_23 : f32 to vector<16x16xf32>
    %102 = arith.mulf %100, %101 : vector<16x16xf32>
    %cst_24 = arith.constant dense<0xFF800000> : vector<16xf32>
    %103 = vector.multi_reduction <maximumf>, %102, %cst_24 [1] : vector<16x16xf32> to vector<16xf32>
    %104 = vector.shape_cast %103 : vector<16xf32> to vector<16x1xf32>
    %105 = vector.broadcast %104 : vector<16x1xf32> to vector<16x16xf32>
    %106 = arith.subf %102, %105 : vector<16x16xf32>
    %107 = math.exp %106 : vector<16x16xf32>
    %cst_25 = arith.constant dense<0.000000e+00> : vector<16xf32>
    %108 = vector.multi_reduction <add>, %107, %cst_25 [1] : vector<16x16xf32> to vector<16xf32>
    %109 = vector.shape_cast %108 : vector<16xf32> to vector<16x1xf32>
    %110 = vector.broadcast %109 : vector<16x1xf32> to vector<16x16xf32>
    %111 = arith.divf %107, %110 : vector<16x16xf32>
    %112 = arith.truncf %111 : vector<16x16xf32> to vector<16x16xbf16>
    %113 = arith.mulf %79, %47 : vector<16x64xf32>
    %114 = arith.truncf %113 : vector<16x64xf32> to vector<16x64xbf16>
    %cst_26 = arith.constant dense<0.000000e+00> : vector<16x64xf32>
    %115 = tpu.matmul %112, %114, %cst_26 {dimension_numbers = #tpu.dot_dimension_numbers<[1], [0], [0], [1], [0, 0, 1, 1], [], []>} : vector<16x16xbf16>, vector<16x64xbf16>, vector<16x64xf32> -> vector<16x64xf32>
    %116 = arith.mulf %76, %54 : vector<16x64xf32>
    %117 = arith.truncf %116 : vector<16x64xf32> to vector<16x64xbf16>
    %cst_27 = arith.constant dense<0.000000e+00> : vector<16x16xf32>
    %118 = tpu.matmul %117, %78, %cst_27 {dimension_numbers = #tpu.dot_dimension_numbers<[1], [1], [0], [0], [0, 0, 1, 0], [], []>} : vector<16x64xbf16>, vector<16x64xbf16>, vector<16x16xf32> -> vector<16x16xf32>
    %cst_28 = arith.constant 0.316227764 : f32
    %119 = vector.broadcast %cst_28 : f32 to vector<16x16xf32>
    %120 = arith.mulf %118, %119 : vector<16x16xf32>
    %cst_29 = arith.constant dense<0xFF800000> : vector<16xf32>
    %121 = vector.multi_reduction <maximumf>, %120, %cst_29 [1] : vector<16x16xf32> to vector<16xf32>
    %122 = vector.shape_cast %121 : vector<16xf32> to vector<16x1xf32>
    %123 = vector.broadcast %122 : vector<16x1xf32> to vector<16x16xf32>
    %124 = arith.subf %120, %123 : vector<16x16xf32>
    %125 = math.exp %124 : vector<16x16xf32>
    %cst_30 = arith.constant dense<0.000000e+00> : vector<16xf32>
    %126 = vector.multi_reduction <add>, %125, %cst_30 [1] : vector<16x16xf32> to vector<16xf32>
    %127 = vector.shape_cast %126 : vector<16xf32> to vector<16x1xf32>
    %128 = vector.broadcast %127 : vector<16x1xf32> to vector<16x16xf32>
    %129 = arith.divf %125, %128 : vector<16x16xf32>
    %130 = arith.truncf %129 : vector<16x16xf32> to vector<16x16xbf16>
    %131 = arith.mulf %79, %54 : vector<16x64xf32>
    %132 = arith.truncf %131 : vector<16x64xf32> to vector<16x64xbf16>
    %cst_31 = arith.constant dense<0.000000e+00> : vector<16x64xf32>
    %133 = tpu.matmul %130, %132, %cst_31 {dimension_numbers = #tpu.dot_dimension_numbers<[1], [0], [0], [1], [0, 0, 1, 1], [], []>} : vector<16x16xbf16>, vector<16x64xbf16>, vector<16x64xf32> -> vector<16x64xf32>
    %134 = arith.mulf %76, %61 : vector<16x64xf32>
    %135 = arith.truncf %134 : vector<16x64xf32> to vector<16x64xbf16>
    %cst_32 = arith.constant dense<0.000000e+00> : vector<16x16xf32>
    %136 = tpu.matmul %135, %78, %cst_32 {dimension_numbers = #tpu.dot_dimension_numbers<[1], [1], [0], [0], [0, 0, 1, 0], [], []>} : vector<16x64xbf16>, vector<16x64xbf16>, vector<16x16xf32> -> vector<16x16xf32>
    %cst_33 = arith.constant 0.316227764 : f32
    %137 = vector.broadcast %cst_33 : f32 to vector<16x16xf32>
    %138 = arith.mulf %136, %137 : vector<16x16xf32>
    %cst_34 = arith.constant dense<0xFF800000> : vector<16xf32>
    %139 = vector.multi_reduction <maximumf>, %138, %cst_34 [1] : vector<16x16xf32> to vector<16xf32>
    %140 = vector.shape_cast %139 : vector<16xf32> to vector<16x1xf32>
    %141 = vector.broadcast %140 : vector<16x1xf32> to vector<16x16xf32>
    %142 = arith.subf %138, %141 : vector<16x16xf32>
    %143 = math.exp %142 : vector<16x16xf32>
    %cst_35 = arith.constant dense<0.000000e+00> : vector<16xf32>
    %144 = vector.multi_reduction <add>, %143, %cst_35 [1] : vector<16x16xf32> to vector<16xf32>
    %145 = vector.shape_cast %144 : vector<16xf32> to vector<16x1xf32>
    %146 = vector.broadcast %145 : vector<16x1xf32> to vector<16x16xf32>
    %147 = arith.divf %143, %146 : vector<16x16xf32>
    %148 = arith.truncf %147 : vector<16x16xf32> to vector<16x16xbf16>
    %149 = arith.mulf %79, %61 : vector<16x64xf32>
    %150 = arith.truncf %149 : vector<16x64xf32> to vector<16x64xbf16>
    %cst_36 = arith.constant dense<0.000000e+00> : vector<16x64xf32>
    %151 = tpu.matmul %148, %150, %cst_36 {dimension_numbers = #tpu.dot_dimension_numbers<[1], [0], [0], [1], [0, 0, 1, 1], [], []>} : vector<16x16xbf16>, vector<16x64xbf16>, vector<16x64xf32> -> vector<16x64xf32>
    %152 = arith.mulf %76, %68 : vector<16x64xf32>
    %153 = arith.truncf %152 : vector<16x64xf32> to vector<16x64xbf16>
    %cst_37 = arith.constant dense<0.000000e+00> : vector<16x16xf32>
    %154 = tpu.matmul %153, %78, %cst_37 {dimension_numbers = #tpu.dot_dimension_numbers<[1], [1], [0], [0], [0, 0, 1, 0], [], []>} : vector<16x64xbf16>, vector<16x64xbf16>, vector<16x16xf32> -> vector<16x16xf32>
    %cst_38 = arith.constant 0.316227764 : f32
    %155 = vector.broadcast %cst_38 : f32 to vector<16x16xf32>
    %156 = arith.mulf %154, %155 : vector<16x16xf32>
    %cst_39 = arith.constant dense<0xFF800000> : vector<16xf32>
    %157 = vector.multi_reduction <maximumf>, %156, %cst_39 [1] : vector<16x16xf32> to vector<16xf32>
    %158 = vector.shape_cast %157 : vector<16xf32> to vector<16x1xf32>
    %159 = vector.broadcast %158 : vector<16x1xf32> to vector<16x16xf32>
    %160 = arith.subf %156, %159 : vector<16x16xf32>
    %161 = math.exp %160 : vector<16x16xf32>
    %cst_40 = arith.constant dense<0.000000e+00> : vector<16xf32>
    %162 = vector.multi_reduction <add>, %161, %cst_40 [1] : vector<16x16xf32> to vector<16xf32>
    %163 = vector.shape_cast %162 : vector<16xf32> to vector<16x1xf32>
    %164 = vector.broadcast %163 : vector<16x1xf32> to vector<16x16xf32>
    %165 = arith.divf %161, %164 : vector<16x16xf32>
    %166 = arith.truncf %165 : vector<16x16xf32> to vector<16x16xbf16>
    %167 = arith.mulf %79, %68 : vector<16x64xf32>
    %168 = arith.truncf %167 : vector<16x64xf32> to vector<16x64xbf16>
    %cst_41 = arith.constant dense<0.000000e+00> : vector<16x64xf32>
    %169 = tpu.matmul %166, %168, %cst_41 {dimension_numbers = #tpu.dot_dimension_numbers<[1], [0], [0], [1], [0, 0, 1, 1], [], []>} : vector<16x16xbf16>, vector<16x64xbf16>, vector<16x64xf32> -> vector<16x64xf32>
    %170 = arith.mulf %76, %75 : vector<16x64xf32>
    %171 = arith.truncf %170 : vector<16x64xf32> to vector<16x64xbf16>
    %cst_42 = arith.constant dense<0.000000e+00> : vector<16x16xf32>
    %172 = tpu.matmul %171, %78, %cst_42 {dimension_numbers = #tpu.dot_dimension_numbers<[1], [1], [0], [0], [0, 0, 1, 0], [], []>} : vector<16x64xbf16>, vector<16x64xbf16>, vector<16x16xf32> -> vector<16x16xf32>
    %cst_43 = arith.constant 0.316227764 : f32
    %173 = vector.broadcast %cst_43 : f32 to vector<16x16xf32>
    %174 = arith.mulf %172, %173 : vector<16x16xf32>
    %cst_44 = arith.constant dense<0xFF800000> : vector<16xf32>
    %175 = vector.multi_reduction <maximumf>, %174, %cst_44 [1] : vector<16x16xf32> to vector<16xf32>
    %176 = vector.shape_cast %175 : vector<16xf32> to vector<16x1xf32>
    %177 = vector.broadcast %176 : vector<16x1xf32> to vector<16x16xf32>
    %178 = arith.subf %174, %177 : vector<16x16xf32>
    %179 = math.exp %178 : vector<16x16xf32>
    %cst_45 = arith.constant dense<0.000000e+00> : vector<16xf32>
    %180 = vector.multi_reduction <add>, %179, %cst_45 [1] : vector<16x16xf32> to vector<16xf32>
    %181 = vector.shape_cast %180 : vector<16xf32> to vector<16x1xf32>
    %182 = vector.broadcast %181 : vector<16x1xf32> to vector<16x16xf32>
    %183 = arith.divf %179, %182 : vector<16x16xf32>
    %184 = arith.truncf %183 : vector<16x16xf32> to vector<16x16xbf16>
    %185 = arith.mulf %79, %75 : vector<16x64xf32>
    %186 = arith.truncf %185 : vector<16x64xf32> to vector<16x64xbf16>
    %cst_46 = arith.constant dense<0.000000e+00> : vector<16x64xf32>
    %187 = tpu.matmul %184, %186, %cst_46 {dimension_numbers = #tpu.dot_dimension_numbers<[1], [0], [0], [1], [0, 0, 1, 1], [], []>} : vector<16x16xbf16>, vector<16x64xbf16>, vector<16x64xf32> -> vector<16x64xf32>
    %188 = arith.addf %97, %115 : vector<16x64xf32>
    %189 = arith.addf %133, %151 : vector<16x64xf32>
    %190 = arith.addf %169, %187 : vector<16x64xf32>
    %191 = arith.addf %188, %189 : vector<16x64xf32>
    %192 = arith.addf %191, %190 : vector<16x64xf32>
    %193 = vector.extract_strided_slice %30 {offsets = [16, 0], sizes = [16, 64], strides = [1, 1]} : vector<32x64xf32> to vector<16x64xf32>
    %194 = vector.extract_strided_slice %31 {offsets = [16, 0], sizes = [16, 64], strides = [1, 1]} : vector<32x64xf32> to vector<16x64xf32>
    %195 = arith.truncf %194 : vector<16x64xf32> to vector<16x64xbf16>
    %196 = vector.extract_strided_slice %32 {offsets = [16, 0], sizes = [16, 64], strides = [1, 1]} : vector<32x64xf32> to vector<16x64xf32>
    %197 = arith.mulf %193, %40 : vector<16x64xf32>
    %198 = arith.truncf %197 : vector<16x64xf32> to vector<16x64xbf16>
    %cst_47 = arith.constant dense<0.000000e+00> : vector<16x16xf32>
    %199 = tpu.matmul %198, %195, %cst_47 {dimension_numbers = #tpu.dot_dimension_numbers<[1], [1], [0], [0], [0, 0, 1, 0], [], []>} : vector<16x64xbf16>, vector<16x64xbf16>, vector<16x16xf32> -> vector<16x16xf32>
    %cst_48 = arith.constant 0.316227764 : f32
    %200 = vector.broadcast %cst_48 : f32 to vector<16x16xf32>
    %201 = arith.mulf %199, %200 : vector<16x16xf32>
    %cst_49 = arith.constant dense<0xFF800000> : vector<16xf32>
    %202 = vector.multi_reduction <maximumf>, %201, %cst_49 [1] : vector<16x16xf32> to vector<16xf32>
    %203 = vector.shape_cast %202 : vector<16xf32> to vector<16x1xf32>
    %204 = vector.broadcast %203 : vector<16x1xf32> to vector<16x16xf32>
    %205 = arith.subf %201, %204 : vector<16x16xf32>
    %206 = math.exp %205 : vector<16x16xf32>
    %cst_50 = arith.constant dense<0.000000e+00> : vector<16xf32>
    %207 = vector.multi_reduction <add>, %206, %cst_50 [1] : vector<16x16xf32> to vector<16xf32>
    %208 = vector.shape_cast %207 : vector<16xf32> to vector<16x1xf32>
    %209 = vector.broadcast %208 : vector<16x1xf32> to vector<16x16xf32>
    %210 = arith.divf %206, %209 : vector<16x16xf32>
    %211 = arith.truncf %210 : vector<16x16xf32> to vector<16x16xbf16>
    %212 = arith.mulf %196, %40 : vector<16x64xf32>
    %213 = arith.truncf %212 : vector<16x64xf32> to vector<16x64xbf16>
    %cst_51 = arith.constant dense<0.000000e+00> : vector<16x64xf32>
    %214 = tpu.matmul %211, %213, %cst_51 {dimension_numbers = #tpu.dot_dimension_numbers<[1], [0], [0], [1], [0, 0, 1, 1], [], []>} : vector<16x16xbf16>, vector<16x64xbf16>, vector<16x64xf32> -> vector<16x64xf32>
    %215 = arith.mulf %193, %47 : vector<16x64xf32>
    %216 = arith.truncf %215 : vector<16x64xf32> to vector<16x64xbf16>
    %cst_52 = arith.constant dense<0.000000e+00> : vector<16x16xf32>
    %217 = tpu.matmul %216, %195, %cst_52 {dimension_numbers = #tpu.dot_dimension_numbers<[1], [1], [0], [0], [0, 0, 1, 0], [], []>} : vector<16x64xbf16>, vector<16x64xbf16>, vector<16x16xf32> -> vector<16x16xf32>
    %cst_53 = arith.constant 0.316227764 : f32
    %218 = vector.broadcast %cst_53 : f32 to vector<16x16xf32>
    %219 = arith.mulf %217, %218 : vector<16x16xf32>
    %cst_54 = arith.constant dense<0xFF800000> : vector<16xf32>
    %220 = vector.multi_reduction <maximumf>, %219, %cst_54 [1] : vector<16x16xf32> to vector<16xf32>
    %221 = vector.shape_cast %220 : vector<16xf32> to vector<16x1xf32>
    %222 = vector.broadcast %221 : vector<16x1xf32> to vector<16x16xf32>
    %223 = arith.subf %219, %222 : vector<16x16xf32>
    %224 = math.exp %223 : vector<16x16xf32>
    %cst_55 = arith.constant dense<0.000000e+00> : vector<16xf32>
    %225 = vector.multi_reduction <add>, %224, %cst_55 [1] : vector<16x16xf32> to vector<16xf32>
    %226 = vector.shape_cast %225 : vector<16xf32> to vector<16x1xf32>
    %227 = vector.broadcast %226 : vector<16x1xf32> to vector<16x16xf32>
    %228 = arith.divf %224, %227 : vector<16x16xf32>
    %229 = arith.truncf %228 : vector<16x16xf32> to vector<16x16xbf16>
    %230 = arith.mulf %196, %47 : vector<16x64xf32>
    %231 = arith.truncf %230 : vector<16x64xf32> to vector<16x64xbf16>
    %cst_56 = arith.constant dense<0.000000e+00> : vector<16x64xf32>
    %232 = tpu.matmul %229, %231, %cst_56 {dimension_numbers = #tpu.dot_dimension_numbers<[1], [0], [0], [1], [0, 0, 1, 1], [], []>} : vector<16x16xbf16>, vector<16x64xbf16>, vector<16x64xf32> -> vector<16x64xf32>
    %233 = arith.mulf %193, %54 : vector<16x64xf32>
    %234 = arith.truncf %233 : vector<16x64xf32> to vector<16x64xbf16>
    %cst_57 = arith.constant dense<0.000000e+00> : vector<16x16xf32>
    %235 = tpu.matmul %234, %195, %cst_57 {dimension_numbers = #tpu.dot_dimension_numbers<[1], [1], [0], [0], [0, 0, 1, 0], [], []>} : vector<16x64xbf16>, vector<16x64xbf16>, vector<16x16xf32> -> vector<16x16xf32>
    %cst_58 = arith.constant 0.316227764 : f32
    %236 = vector.broadcast %cst_58 : f32 to vector<16x16xf32>
    %237 = arith.mulf %235, %236 : vector<16x16xf32>
    %cst_59 = arith.constant dense<0xFF800000> : vector<16xf32>
    %238 = vector.multi_reduction <maximumf>, %237, %cst_59 [1] : vector<16x16xf32> to vector<16xf32>
    %239 = vector.shape_cast %238 : vector<16xf32> to vector<16x1xf32>
    %240 = vector.broadcast %239 : vector<16x1xf32> to vector<16x16xf32>
    %241 = arith.subf %237, %240 : vector<16x16xf32>
    %242 = math.exp %241 : vector<16x16xf32>
    %cst_60 = arith.constant dense<0.000000e+00> : vector<16xf32>
    %243 = vector.multi_reduction <add>, %242, %cst_60 [1] : vector<16x16xf32> to vector<16xf32>
    %244 = vector.shape_cast %243 : vector<16xf32> to vector<16x1xf32>
    %245 = vector.broadcast %244 : vector<16x1xf32> to vector<16x16xf32>
    %246 = arith.divf %242, %245 : vector<16x16xf32>
    %247 = arith.truncf %246 : vector<16x16xf32> to vector<16x16xbf16>
    %248 = arith.mulf %196, %54 : vector<16x64xf32>
    %249 = arith.truncf %248 : vector<16x64xf32> to vector<16x64xbf16>
    %cst_61 = arith.constant dense<0.000000e+00> : vector<16x64xf32>
    %250 = tpu.matmul %247, %249, %cst_61 {dimension_numbers = #tpu.dot_dimension_numbers<[1], [0], [0], [1], [0, 0, 1, 1], [], []>} : vector<16x16xbf16>, vector<16x64xbf16>, vector<16x64xf32> -> vector<16x64xf32>
    %251 = arith.mulf %193, %61 : vector<16x64xf32>
    %252 = arith.truncf %251 : vector<16x64xf32> to vector<16x64xbf16>
    %cst_62 = arith.constant dense<0.000000e+00> : vector<16x16xf32>
    %253 = tpu.matmul %252, %195, %cst_62 {dimension_numbers = #tpu.dot_dimension_numbers<[1], [1], [0], [0], [0, 0, 1, 0], [], []>} : vector<16x64xbf16>, vector<16x64xbf16>, vector<16x16xf32> -> vector<16x16xf32>
    %cst_63 = arith.constant 0.316227764 : f32
    %254 = vector.broadcast %cst_63 : f32 to vector<16x16xf32>
    %255 = arith.mulf %253, %254 : vector<16x16xf32>
    %cst_64 = arith.constant dense<0xFF800000> : vector<16xf32>
    %256 = vector.multi_reduction <maximumf>, %255, %cst_64 [1] : vector<16x16xf32> to vector<16xf32>
    %257 = vector.shape_cast %256 : vector<16xf32> to vector<16x1xf32>
    %258 = vector.broadcast %257 : vector<16x1xf32> to vector<16x16xf32>
    %259 = arith.subf %255, %258 : vector<16x16xf32>
    %260 = math.exp %259 : vector<16x16xf32>
    %cst_65 = arith.constant dense<0.000000e+00> : vector<16xf32>
    %261 = vector.multi_reduction <add>, %260, %cst_65 [1] : vector<16x16xf32> to vector<16xf32>
    %262 = vector.shape_cast %261 : vector<16xf32> to vector<16x1xf32>
    %263 = vector.broadcast %262 : vector<16x1xf32> to vector<16x16xf32>
    %264 = arith.divf %260, %263 : vector<16x16xf32>
    %265 = arith.truncf %264 : vector<16x16xf32> to vector<16x16xbf16>
    %266 = arith.mulf %196, %61 : vector<16x64xf32>
    %267 = arith.truncf %266 : vector<16x64xf32> to vector<16x64xbf16>
    %cst_66 = arith.constant dense<0.000000e+00> : vector<16x64xf32>
    %268 = tpu.matmul %265, %267, %cst_66 {dimension_numbers = #tpu.dot_dimension_numbers<[1], [0], [0], [1], [0, 0, 1, 1], [], []>} : vector<16x16xbf16>, vector<16x64xbf16>, vector<16x64xf32> -> vector<16x64xf32>
    %269 = arith.mulf %193, %68 : vector<16x64xf32>
    %270 = arith.truncf %269 : vector<16x64xf32> to vector<16x64xbf16>
    %cst_67 = arith.constant dense<0.000000e+00> : vector<16x16xf32>
    %271 = tpu.matmul %270, %195, %cst_67 {dimension_numbers = #tpu.dot_dimension_numbers<[1], [1], [0], [0], [0, 0, 1, 0], [], []>} : vector<16x64xbf16>, vector<16x64xbf16>, vector<16x16xf32> -> vector<16x16xf32>
    %cst_68 = arith.constant 0.316227764 : f32
    %272 = vector.broadcast %cst_68 : f32 to vector<16x16xf32>
    %273 = arith.mulf %271, %272 : vector<16x16xf32>
    %cst_69 = arith.constant dense<0xFF800000> : vector<16xf32>
    %274 = vector.multi_reduction <maximumf>, %273, %cst_69 [1] : vector<16x16xf32> to vector<16xf32>
    %275 = vector.shape_cast %274 : vector<16xf32> to vector<16x1xf32>
    %276 = vector.broadcast %275 : vector<16x1xf32> to vector<16x16xf32>
    %277 = arith.subf %273, %276 : vector<16x16xf32>
    %278 = math.exp %277 : vector<16x16xf32>
    %cst_70 = arith.constant dense<0.000000e+00> : vector<16xf32>
    %279 = vector.multi_reduction <add>, %278, %cst_70 [1] : vector<16x16xf32> to vector<16xf32>
    %280 = vector.shape_cast %279 : vector<16xf32> to vector<16x1xf32>
    %281 = vector.broadcast %280 : vector<16x1xf32> to vector<16x16xf32>
    %282 = arith.divf %278, %281 : vector<16x16xf32>
    %283 = arith.truncf %282 : vector<16x16xf32> to vector<16x16xbf16>
    %284 = arith.mulf %196, %68 : vector<16x64xf32>
    %285 = arith.truncf %284 : vector<16x64xf32> to vector<16x64xbf16>
    %cst_71 = arith.constant dense<0.000000e+00> : vector<16x64xf32>
    %286 = tpu.matmul %283, %285, %cst_71 {dimension_numbers = #tpu.dot_dimension_numbers<[1], [0], [0], [1], [0, 0, 1, 1], [], []>} : vector<16x16xbf16>, vector<16x64xbf16>, vector<16x64xf32> -> vector<16x64xf32>
    %287 = arith.mulf %193, %75 : vector<16x64xf32>
    %288 = arith.truncf %287 : vector<16x64xf32> to vector<16x64xbf16>
    %cst_72 = arith.constant dense<0.000000e+00> : vector<16x16xf32>
    %289 = tpu.matmul %288, %195, %cst_72 {dimension_numbers = #tpu.dot_dimension_numbers<[1], [1], [0], [0], [0, 0, 1, 0], [], []>} : vector<16x64xbf16>, vector<16x64xbf16>, vector<16x16xf32> -> vector<16x16xf32>
    %cst_73 = arith.constant 0.316227764 : f32
    %290 = vector.broadcast %cst_73 : f32 to vector<16x16xf32>
    %291 = arith.mulf %289, %290 : vector<16x16xf32>
    %cst_74 = arith.constant dense<0xFF800000> : vector<16xf32>
    %292 = vector.multi_reduction <maximumf>, %291, %cst_74 [1] : vector<16x16xf32> to vector<16xf32>
    %293 = vector.shape_cast %292 : vector<16xf32> to vector<16x1xf32>
    %294 = vector.broadcast %293 : vector<16x1xf32> to vector<16x16xf32>
    %295 = arith.subf %291, %294 : vector<16x16xf32>
    %296 = math.exp %295 : vector<16x16xf32>
    %cst_75 = arith.constant dense<0.000000e+00> : vector<16xf32>
    %297 = vector.multi_reduction <add>, %296, %cst_75 [1] : vector<16x16xf32> to vector<16xf32>
    %298 = vector.shape_cast %297 : vector<16xf32> to vector<16x1xf32>
    %299 = vector.broadcast %298 : vector<16x1xf32> to vector<16x16xf32>
    %300 = arith.divf %296, %299 : vector<16x16xf32>
    %301 = arith.truncf %300 : vector<16x16xf32> to vector<16x16xbf16>
    %302 = arith.mulf %196, %75 : vector<16x64xf32>
    %303 = arith.truncf %302 : vector<16x64xf32> to vector<16x64xbf16>
    %cst_76 = arith.constant dense<0.000000e+00> : vector<16x64xf32>
    %304 = tpu.matmul %301, %303, %cst_76 {dimension_numbers = #tpu.dot_dimension_numbers<[1], [0], [0], [1], [0, 0, 1, 1], [], []>} : vector<16x16xbf16>, vector<16x64xbf16>, vector<16x64xf32> -> vector<16x64xf32>
    %305 = arith.addf %214, %232 : vector<16x64xf32>
    %306 = arith.addf %250, %268 : vector<16x64xf32>
    %307 = arith.addf %286, %304 : vector<16x64xf32>
    %308 = arith.addf %305, %306 : vector<16x64xf32>
    %309 = arith.addf %308, %307 : vector<16x64xf32>
    %310 = tpu.concatenate %192, %309 in 0 : vector<16x64xf32>, vector<16x64xf32> -> vector<32x64xf32>
    %c1 = arith.constant 1 : index
    %c0_77 = arith.constant 0 : index
    %311 = vector.load %arg9[%c1, %c0_77] : memref<11x192xf32, #tpu.memory_space<vmem>>, vector<1x64xf32>
    %312 = arith.truncf %310 : vector<32x64xf32> to vector<32x64xbf16>
    %c0_78 = arith.constant 0 : index
    %c0_79 = arith.constant 0 : index
    %313 = vector.load %arg5[%c0_78, %c0_79] : memref<64x64xbf16, #tpu.memory_space<vmem>>, vector<64x64xbf16>
    %cst_80 = arith.constant dense<0.000000e+00> : vector<32x64xf32>
    %314 = tpu.matmul %312, %313, %cst_80 {dimension_numbers = #tpu.dot_dimension_numbers<[1], [0], [0], [1], [0, 0, 1, 1], [], []>} : vector<32x64xbf16>, vector<64x64xbf16>, vector<32x64xf32> -> vector<32x64xf32>
    %315 = vector.broadcast %311 : vector<1x64xf32> to vector<32x64xf32>
    %316 = arith.addf %314, %315 : vector<32x64xf32>
    %317 = arith.addf %23, %316 : vector<32x64xf32>
    %c2 = arith.constant 2 : index
    %c0_81 = arith.constant 0 : index
    %318 = vector.load %arg9[%c2, %c0_81] : memref<11x192xf32, #tpu.memory_space<vmem>>, vector<1x64xf32>
    %c3 = arith.constant 3 : index
    %c0_82 = arith.constant 0 : index
    %319 = vector.load %arg9[%c3, %c0_82] : memref<11x192xf32, #tpu.memory_space<vmem>>, vector<1x64xf32>
    %cst_83 = arith.constant dense<0.000000e+00> : vector<32xf32>
    %320 = vector.multi_reduction <add>, %317, %cst_83 [1] : vector<32x64xf32> to vector<32xf32>
    %321 = vector.shape_cast %320 : vector<32xf32> to vector<32x1xf32>
    %cst_84 = arith.constant 6.400000e+01 : f32
    %322 = vector.broadcast %cst_84 : f32 to vector<32x1xf32>
    %323 = arith.divf %321, %322 : vector<32x1xf32>
    %324 = vector.broadcast %323 : vector<32x1xf32> to vector<32x64xf32>
    %325 = arith.subf %317, %324 : vector<32x64xf32>
    %326 = arith.mulf %325, %325 : vector<32x64xf32>
    %cst_85 = arith.constant dense<0.000000e+00> : vector<32xf32>
    %327 = vector.multi_reduction <add>, %326, %cst_85 [1] : vector<32x64xf32> to vector<32xf32>
    %328 = vector.shape_cast %327 : vector<32xf32> to vector<32x1xf32>
    %cst_86 = arith.constant 6.400000e+01 : f32
    %329 = vector.broadcast %cst_86 : f32 to vector<32x1xf32>
    %330 = arith.divf %328, %329 : vector<32x1xf32>
    %cst_87 = arith.constant 9.99999974E-6 : f32
    %331 = vector.broadcast %cst_87 : f32 to vector<32x1xf32>
    %332 = arith.addf %330, %331 : vector<32x1xf32>
    %333 = math.rsqrt %332 : vector<32x1xf32>
    %334 = vector.broadcast %333 : vector<32x1xf32> to vector<32x64xf32>
    %335 = arith.mulf %325, %334 : vector<32x64xf32>
    %336 = vector.broadcast %318 : vector<1x64xf32> to vector<32x64xf32>
    %337 = arith.mulf %335, %336 : vector<32x64xf32>
    %338 = vector.broadcast %319 : vector<1x64xf32> to vector<32x64xf32>
    %339 = arith.addf %337, %338 : vector<32x64xf32>
    %340 = arith.truncf %339 : vector<32x64xf32> to vector<32x64xbf16>
    %c0_88 = arith.constant 0 : index
    %c0_89 = arith.constant 0 : index
    %341 = vector.load %arg6[%c0_88, %c0_89] : memref<64x64xbf16, #tpu.memory_space<vmem>>, vector<64x64xbf16>
    %cst_90 = arith.constant dense<0.000000e+00> : vector<32x64xf32>
    %342 = tpu.matmul %340, %341, %cst_90 {dimension_numbers = #tpu.dot_dimension_numbers<[1], [0], [0], [1], [0, 0, 1, 1], [], []>} : vector<32x64xbf16>, vector<64x64xbf16>, vector<32x64xf32> -> vector<32x64xf32>
    %c4 = arith.constant 4 : index
    %c0_91 = arith.constant 0 : index
    %343 = vector.load %arg9[%c4, %c0_91] : memref<11x192xf32, #tpu.memory_space<vmem>>, vector<1x64xf32>
    %344 = vector.broadcast %343 : vector<1x64xf32> to vector<32x64xf32>
    %345 = arith.addf %342, %344 : vector<32x64xf32>
    %cst_92 = arith.constant 5.000000e-01 : f32
    %346 = vector.broadcast %cst_92 : f32 to vector<32x64xf32>
    %347 = arith.mulf %346, %345 : vector<32x64xf32>
    %cst_93 = arith.constant 0.707106769 : f32
    %348 = vector.broadcast %cst_93 : f32 to vector<32x64xf32>
    %349 = arith.mulf %345, %348 : vector<32x64xf32>
    %350 = math.erf %349 : vector<32x64xf32>
    %cst_94 = arith.constant 1.000000e+00 : f32
    %351 = vector.broadcast %cst_94 : f32 to vector<32x64xf32>
    %352 = arith.addf %351, %350 : vector<32x64xf32>
    %353 = arith.mulf %347, %352 : vector<32x64xf32>
    %354 = arith.truncf %353 : vector<32x64xf32> to vector<32x64xbf16>
    %c0_95 = arith.constant 0 : index
    %c0_96 = arith.constant 0 : index
    %355 = vector.load %arg7[%c0_95, %c0_96] : memref<64x64xbf16, #tpu.memory_space<vmem>>, vector<64x64xbf16>
    %cst_97 = arith.constant dense<0.000000e+00> : vector<32x64xf32>
    %356 = tpu.matmul %354, %355, %cst_97 {dimension_numbers = #tpu.dot_dimension_numbers<[1], [0], [0], [1], [0, 0, 1, 1], [], []>} : vector<32x64xbf16>, vector<64x64xbf16>, vector<32x64xf32> -> vector<32x64xf32>
    %c5 = arith.constant 5 : index
    %c0_98 = arith.constant 0 : index
    %357 = vector.load %arg9[%c5, %c0_98] : memref<11x192xf32, #tpu.memory_space<vmem>>, vector<1x64xf32>
    %358 = vector.broadcast %357 : vector<1x64xf32> to vector<32x64xf32>
    %359 = arith.addf %356, %358 : vector<32x64xf32>
    %360 = arith.addf %339, %359 : vector<32x64xf32>
    %c6 = arith.constant 6 : index
    %c0_99 = arith.constant 0 : index
    %361 = vector.load %arg9[%c6, %c0_99] : memref<11x192xf32, #tpu.memory_space<vmem>>, vector<1x64xf32>
    %c7 = arith.constant 7 : index
    %c0_100 = arith.constant 0 : index
    %362 = vector.load %arg9[%c7, %c0_100] : memref<11x192xf32, #tpu.memory_space<vmem>>, vector<1x64xf32>
    %cst_101 = arith.constant dense<0.000000e+00> : vector<32xf32>
    %363 = vector.multi_reduction <add>, %360, %cst_101 [1] : vector<32x64xf32> to vector<32xf32>
    %364 = vector.shape_cast %363 : vector<32xf32> to vector<32x1xf32>
    %cst_102 = arith.constant 6.400000e+01 : f32
    %365 = vector.broadcast %cst_102 : f32 to vector<32x1xf32>
    %366 = arith.divf %364, %365 : vector<32x1xf32>
    %367 = vector.broadcast %366 : vector<32x1xf32> to vector<32x64xf32>
    %368 = arith.subf %360, %367 : vector<32x64xf32>
    %369 = arith.mulf %368, %368 : vector<32x64xf32>
    %cst_103 = arith.constant dense<0.000000e+00> : vector<32xf32>
    %370 = vector.multi_reduction <add>, %369, %cst_103 [1] : vector<32x64xf32> to vector<32xf32>
    %371 = vector.shape_cast %370 : vector<32xf32> to vector<32x1xf32>
    %cst_104 = arith.constant 6.400000e+01 : f32
    %372 = vector.broadcast %cst_104 : f32 to vector<32x1xf32>
    %373 = arith.divf %371, %372 : vector<32x1xf32>
    %cst_105 = arith.constant 9.99999974E-6 : f32
    %374 = vector.broadcast %cst_105 : f32 to vector<32x1xf32>
    %375 = arith.addf %373, %374 : vector<32x1xf32>
    %376 = math.rsqrt %375 : vector<32x1xf32>
    %377 = vector.broadcast %376 : vector<32x1xf32> to vector<32x64xf32>
    %378 = arith.mulf %368, %377 : vector<32x64xf32>
    %379 = vector.broadcast %361 : vector<1x64xf32> to vector<32x64xf32>
    %380 = arith.mulf %378, %379 : vector<32x64xf32>
    %381 = vector.broadcast %362 : vector<1x64xf32> to vector<32x64xf32>
    %382 = arith.addf %380, %381 : vector<32x64xf32>
    %c8 = arith.constant 8 : index
    %c0_106 = arith.constant 0 : index
    %383 = vector.load %arg9[%c8, %c0_106] : memref<11x192xf32, #tpu.memory_space<vmem>>, vector<1x64xf32>
    %c9 = arith.constant 9 : index
    %c0_107 = arith.constant 0 : index
    %384 = vector.load %arg9[%c9, %c0_107] : memref<11x192xf32, #tpu.memory_space<vmem>>, vector<1x64xf32>
    %cst_108 = arith.constant dense<0.000000e+00> : vector<32xf32>
    %385 = vector.multi_reduction <add>, %382, %cst_108 [1] : vector<32x64xf32> to vector<32xf32>
    %386 = vector.shape_cast %385 : vector<32xf32> to vector<32x1xf32>
    %cst_109 = arith.constant 6.400000e+01 : f32
    %387 = vector.broadcast %cst_109 : f32 to vector<32x1xf32>
    %388 = arith.divf %386, %387 : vector<32x1xf32>
    %389 = vector.broadcast %388 : vector<32x1xf32> to vector<32x64xf32>
    %390 = arith.subf %382, %389 : vector<32x64xf32>
    %391 = arith.mulf %390, %390 : vector<32x64xf32>
    %cst_110 = arith.constant dense<0.000000e+00> : vector<32xf32>
    %392 = vector.multi_reduction <add>, %391, %cst_110 [1] : vector<32x64xf32> to vector<32xf32>
    %393 = vector.shape_cast %392 : vector<32xf32> to vector<32x1xf32>
    %cst_111 = arith.constant 6.400000e+01 : f32
    %394 = vector.broadcast %cst_111 : f32 to vector<32x1xf32>
    %395 = arith.divf %393, %394 : vector<32x1xf32>
    %cst_112 = arith.constant 9.99999974E-6 : f32
    %396 = vector.broadcast %cst_112 : f32 to vector<32x1xf32>
    %397 = arith.addf %395, %396 : vector<32x1xf32>
    %398 = math.rsqrt %397 : vector<32x1xf32>
    %399 = vector.broadcast %398 : vector<32x1xf32> to vector<32x64xf32>
    %400 = arith.mulf %390, %399 : vector<32x64xf32>
    %401 = vector.broadcast %383 : vector<1x64xf32> to vector<32x64xf32>
    %402 = arith.mulf %400, %401 : vector<32x64xf32>
    %403 = vector.broadcast %384 : vector<1x64xf32> to vector<32x64xf32>
    %404 = arith.addf %402, %403 : vector<32x64xf32>
    %405 = arith.truncf %404 : vector<32x64xf32> to vector<32x64xbf16>
    %c0_113 = arith.constant 0 : index
    %c0_114 = arith.constant 0 : index
    %406 = vector.load %arg8[%c0_113, %c0_114] : memref<64x4xbf16, #tpu.memory_space<vmem>>, vector<64x4xbf16>
    %cst_115 = arith.constant dense<0.000000e+00> : vector<32x4xf32>
    %407 = tpu.matmul %405, %406, %cst_115 {dimension_numbers = #tpu.dot_dimension_numbers<[1], [0], [0], [1], [0, 0, 1, 1], [], []>} : vector<32x64xbf16>, vector<64x4xbf16>, vector<32x4xf32> -> vector<32x4xf32>
    %c10 = arith.constant 10 : index
    %c0_116 = arith.constant 0 : index
    %408 = vector.load %arg9[%c10, %c0_116] : memref<11x192xf32, #tpu.memory_space<vmem>>, vector<1x4xf32>
    %409 = vector.broadcast %408 : vector<1x4xf32> to vector<32x4xf32>
    %410 = arith.addf %407, %409 : vector<32x4xf32>
    %c0_117 = arith.constant 0 : index
    %c0_118 = arith.constant 0 : index
    %411 = vector.load %arg10[%c0_117, %c0_118] : memref<32x4xf32, #tpu.memory_space<vmem>>, vector<32x4xf32>
    tpu.vector_store %arg10[%c0_117, %c0_118], %410 {strides = array<i32>} : memref<32x4xf32, #tpu.memory_space<vmem>>, vector<32x4xf32>,
    return
  }
  func.func @transform_0(%arg0: i32) -> (i32, i32) {
    %c0_i32 = arith.constant 0 : i32
    %c0_i32_0 = arith.constant 0 : i32
    return %arg0, %c0_i32 : i32, i32
  }
  func.func @transform_1(%arg0: i32) -> (i32, i32) {
    %c0_i32 = arith.constant 0 : i32
    %c0_i32_0 = arith.constant 0 : i32
    %c0_i32_1 = arith.constant 0 : i32
    return %c0_i32, %c0_i32_0 : i32, i32
  }
  func.func @transform_2(%arg0: i32) -> (i32, i32) {
    %c0_i32 = arith.constant 0 : i32
    %c0_i32_0 = arith.constant 0 : i32
    %c0_i32_1 = arith.constant 0 : i32
    return %c0_i32, %c0_i32_0 : i32, i32
  }
  func.func @transform_3(%arg0: i32) -> (i32, i32) {
    %c0_i32 = arith.constant 0 : i32
    %c0_i32_0 = arith.constant 0 : i32
    %c0_i32_1 = arith.constant 0 : i32
    return %c0_i32, %c0_i32_0 : i32, i32
  }
  func.func @transform_4(%arg0: i32) -> (i32, i32) {
    %c0_i32 = arith.constant 0 : i32
    %c0_i32_0 = arith.constant 0 : i32
    %c0_i32_1 = arith.constant 0 : i32
    return %c0_i32, %c0_i32_0 : i32, i32
  }
  func.func @transform_5(%arg0: i32) -> (i32, i32) {
    %c0_i32 = arith.constant 0 : i32
    %c0_i32_0 = arith.constant 0 : i32
    %c0_i32_1 = arith.constant 0 : i32
    return %c0_i32, %c0_i32_0 : i32, i32
  }
  func.func @transform_6(%arg0: i32) -> (i32, i32) {
    %c0_i32 = arith.constant 0 : i32
    %c0_i32_0 = arith.constant 0 : i32
    %c0_i32_1 = arith.constant 0 : i32
    return %c0_i32, %c0_i32_0 : i32, i32
  }
  func.func @transform_7(%arg0: i32) -> (i32, i32) {
    %c0_i32 = arith.constant 0 : i32
    %c0_i32_0 = arith.constant 0 : i32
    %c0_i32_1 = arith.constant 0 : i32
    return %c0_i32, %c0_i32_0 : i32, i32
  }
  func.func @transform_8(%arg0: i32) -> (i32, i32) {
    %c0_i32 = arith.constant 0 : i32
    %c0_i32_0 = arith.constant 0 : i32
    %c0_i32_1 = arith.constant 0 : i32
    return %c0_i32, %c0_i32_0 : i32, i32
  }
  func.func @transform_9(%arg0: i32) -> (i32, i32) {
    %c0_i32 = arith.constant 0 : i32
    %c0_i32_0 = arith.constant 0 : i32
    return %arg0, %c0_i32 : i32, i32
  }
}

</mosaic_0001>

<bundles_post_ra>
// kernel: attention_layer_forward.1
= control target key start
LH: loop header
LB: loop body
LE: loop exit
PB: predicated region body
PF: predicated region fallthrough
CT: control target
= control target key end

     0   :  { %14 = vsyncpa [#allocation3], 0  ;;  %s4134_s0 = inlined_call_operand.vmem [shape: f32[64,4], index: 0, kind: input, shape index: {}]   ;;  %s4135_s1 = inlined_call_operand.hbm [shape: f32[16,64], index: 1, kind: input, shape index: {}]   ;;  %s4136_s2 = inlined_call_operand.vmem [shape: bf16[4,192], index: 2, kind: input, shape index: {}]   ;;  %s4137_s3 = inlined_call_operand.vmem [shape: bf16[64,192], index: 3, kind: input, shape index: {}]   ;;  %s4138_s4 = inlined_call_operand.vmem [shape: bf16[64,64], index: 4, kind: input, shape index: {}]   ;;  %s4139_s5 = inlined_call_operand.hbm [shape: bf16[64,64], index: 5, kind: input, shape index: {}]   ;;  %s4140_s6 = inlined_call_operand.hbm [shape: bf16[64,64], index: 6, kind: input, shape index: {}]   ;;  %s4141_s7 = inlined_call_operand.vmem [shape: bf16[64,4], index: 7, kind: input, shape index: {}]   ;;  %s4142_s8 = inlined_call_operand.hbm [shape: f32[11,192], index: 8, kind: input, shape index: {}]   ;;  %s4143_s9 = inlined_call_operand.vmem [shape: f32[64,4], index: 9, kind: output, shape index: {}]  }
   0x1   :  { %15 = vsyncpa [#allocation5], 0 }
   0x2   :  { %16 = vsyncpa [#allocation8], 0  ;;  %s3169_s30 = smov 0  }
   0x3 LB: > { %s281_s12 = sshll.u32 %s4139_s5, 4  ;;  %s2589_s13 = sadd.s32 4294967295, %s3104_s30   ;;  %s3104_s30 = sphi %s3169_s30, %s22_s30   ;;  %s282_s12 = int_to_ptr.hbm [resolvable:$true] %s281_s12 }
   0x4   : > { %p2591_p0 = scmp.ge.s32.totalorder %s3104_s30, 1  ;;  %p247_p1 = scmp.lt.s32.totalorder %s3104_s30, 3 }
   0x5   : > { %p3182_p2 = scmp.eq.s32.totalorder %s2589_s13, 0  ;;  %s3106_s16 = smov [#allocation4]  }
   0x6   : > { %p3186_p3 = pnand %p2591_p0, %p247_p1  ;;  %s283_s17 = sshll.u32 %s3106_s16, 4  ;;  %s284_s17 = int_to_ptr.vmem [resolvable:$true] %s283_s17 }
   0x7   : > { %s258_s20 = sshll.u32 %s4135_s1, 4  ;;  %s3107_s22 = smov [#allocation2]   ;;  %s259_s20 = int_to_ptr.hbm [resolvable:$true] %s258_s20 }
   0x8   : > { %p2794_p4 = pneg %p3186_p3  ;;  %s260_s23 = sshll.u32 %s3107_s22, 4  ;;  %s261_s23 = int_to_ptr.vmem [resolvable:$true] %s260_s23 }
   0x9   : > { %s3108_s24 = smov 64   ;;  %s3109_s25 = smov 4  }
   0xa   : > { %p3197_p5 = pnand %p3182_p2, %p2794_p4  ;;  %s295_s28 = sshll.u32 %s4140_s6, 4  ;;  %s296_s28 = int_to_ptr.hbm [resolvable:$true] %s295_s28 }
   0xb   : > { %s3110_s29 = smov 128   ;;  %s3111_s10 = smov 8  }
   0xc   : > { %2800 = dma.hbm_to_vmem [thread:$0]  (!%p3197_p5), %s282_s12, 512, %s284_s17, [#allocation5], %s3108_s24, %s3108_s24, %s3109_s25  }
   0xd   : > { %2797 = dma.hbm_to_vmem [thread:$0]  (!%p3197_p5), %s259_s20, 256, %s261_s23, [#allocation3], %s3110_s29, %s3110_s29, %s3111_s10  }
   0xe   : > { %s3112_s11 = smov [#allocation6]   ;;  %s312_s22 = sshll.u32 %s4142_s8, 4  ;;  %s313_s22 = int_to_ptr.hbm [resolvable:$true] %s312_s22 }
   0xf   : > { %s297_s16 = sshll.u32 %s3112_s11, 4  ;;  %s3113_s12 = smov [#allocation7]   ;;  %s298_s16 = int_to_ptr.vmem [resolvable:$true] %s297_s16 }
  0x10   : > { %2803 = dma.hbm_to_vmem [thread:$0]  (!%p3197_p5), %s296_s28, 512, %s298_s16, [#allocation5], %s3108_s24, %s3108_s24, %s3109_s25  }
  0x11   : > { %s314_s17 = sshll.u32 %s3113_s12, 4  ;;  %s3114_s26 = smov 256   ;;  %s315_s17 = int_to_ptr.vmem [resolvable:$true] %s314_s17 }
  0x12   : > { %s3115_s27 = smov 16   ;;  %339 = sbr.rel (%p3186_p3) target bundleno = 3411 (0xd53), region = 56 }
  0x13   : > { %2806 = dma.hbm_to_vmem [thread:$0]  (!%p3197_p5), %s313_s22, 512, %s315_s17, [#allocation8], %s3114_s26, %s3114_s26, %s3115_s27  }
  0x17   : > { %3091 = dma.done.wait (%p3182_p2), [#allocation3], 256  }
  0x18   : > { %3093 = vsyncadd (%p3182_p2), [#allocation3], 4294967040 }
  0x19   : > { %3095 = dma.done.wait (%p3182_p2), [#allocation5], 1024  }
  0x1a   : > { %3097 = vsyncadd (%p3182_p2), [#allocation5], 4294966272 }
  0x1b   : > { %3099 = dma.done.wait (%p3182_p2), [#allocation8], 512  }
  0x1c   : > { %3101 = vsyncadd (%p3182_p2), [#allocation8], 4294966784  ;;  %s2602_s15 = sshll.u32 %s2589_s13, 2  ;;  %v410_v0 = vld [vmem:[%s4136_s2] sm:$0xf]  ;;  %vm422_vm0 = vcmask 1041408   ;;  %v469_v38 = vlaneseq }
  0x1d   : > { %p392_p6 = scmp.lt.s32.totalorder %s2602_s15, 7  ;;  %412 = vst [vmem:[#allocation1] ss:$4 sm:$0xff] %v410_v0  ;;  %vm4144_vm1 = vcmask 31744   ;;  %s3116_s13 = smov 64   ;;  %v3312_v53 = vld [vmem:[#allocation2] sm:$0xff] }
  0x1e   : > { %v2636_v10 = vld [vmem:[%s4137_s3 + $0x30] sm:$0xf]  ;;  %v2761_v11 = vld [vmem:[%s4137_s3 + $0x34] sm:$0xf0]  ;;  %v2760_v12 = vld [vmem:[%s4137_s3 + $0x34] sm:$0xf] }
  0x1f   : > { %s4175_s15 = smov (!%p392_p6, %s2602_s15), 7  ;;  %v2637_v13 = vor.u32 %v2761_v11, %v2636_v10  ;;  %v2638_v14 = vld [vmem:[%s4137_s3 + $0x38] sm:$0xf0]  ;;  %v2628_v16 = vld [vmem:[%s4137_s3 + $0x20] sm:$0xf]  ;;  %v3302_v39 = vshrl.u32 %v469_v38, 7 }
  0x20   : > { %s2603_s23 = sshll.u32 %s4175_s15, 3  ;;  %v2641_v15 = vor.u32 %v2760_v12, %v2638_v14  ;;  %v2759_v17 = vld [vmem:[%s4137_s3 + $0x24] sm:$0xf0]  ;;  %v2758_v18 = vld [vmem:[%s4137_s3 + $0x24] sm:$0xf]  ;;  %v3314_v54 = vld [vmem:[#allocation2 + $0x8] sm:$0xff] }
  0x21   : > { %s3242_s14 = scalar_lea.vmem %s4134_s0, %s2603_s23  ;;  %582 = vmatpush.bf16.msra.mxu2 %v2637_v13  ;;  %v2629_v19 = vor.u32 %v2759_v17, %v2628_v16  ;;  %v2630_v20 = vld [vmem:[%s4137_s3 + $0x28] sm:$0xf0]  ;;  %v2620_v22 = vld [vmem:[%s4137_s3 + $0x10] sm:$0xf]  ;;  %v2757_v23 = vld [vmem:[%s4137_s3 + $0x14] sm:$0xf0] }
  0x22   : > { %v404_v1 = vld [vmem:[%s3242_s14] sm:$0xff]  ;;  %v405_v2 = vld [vmem:[%s3242_s14 + $0x8] sm:$0xff]  ;;  %601 = vmatpush.bf16.msra.mxu3 %v2641_v15  ;;  %v2633_v21 = vor.u32 %v2758_v18, %v2630_v20  ;;  %v2756_v24 = vld [vmem:[%s4137_s3 + $0x14] sm:$0xf]  ;;  %v2621_v25 = vor.u32 %v2757_v23, %v2620_v22  ;;  %vm471_vm2 = vcmp.lt.s32.totalorder %v3302_v39, 1  ;;  %vm486_vm3 = vcmp.lt.s32.totalorder %v3302_v39, 7 }
  0x23   : > { %v408_v6 = vpack.c.bf16 %v405_v2, %v404_v1  ;;  %v2622_v26 = vld [vmem:[%s4137_s3 + $0x18] sm:$0xf0]  ;;  %v2612_v28 = vld [vmem:[%s4137_s3] sm:$0xf]  ;;  %v2755_v29 = vld [vmem:[%s4137_s3 + $0x4] sm:$0xf0] }
  0x24   : > { %v413_v3 = vld.sshfl [vmem:[#allocation1] sm:$0xff pattern:$0x73625140]  ;;  %v414_v4 = vld.sshfl [vmem:[#allocation1 + $0x8] sm:$0xff pattern:$0x73625140]  ;;  %v2625_v27 = vor.u32 %v2756_v24, %v2622_v26  ;;  %v2613_v31 = vor.u32 %v2755_v29, %v2612_v28 }
  0x25   : > { %v423_v5 = vsel %vm422_vm0, %v413_v3, 0  ;;  %v425_v7 = vsel %vm422_vm0, %v414_v4, 0  ;;  %583 = vmatpush.bf16.msra.mxu2 %v2629_v19  ;;  %v2754_v30 = vld [vmem:[%s4137_s3 + $0x4] sm:$0xf]  ;;  %v2614_v32 = vld [vmem:[%s4137_s3 + $0x8] sm:$0xf0] }
  0x26   : > { %434 = vmatpush.bf16.msra.mxu0 %v423_v5  ;;  %453 = vmatpush.bf16.msra.mxu1 %v425_v7  ;;  %v2617_v33 = vor.u32 %v2754_v30, %v2614_v32  ;;  %v406_v34 = vld [vmem:[%s3242_s14 + $0x10] sm:$0xff]  ;;  %v407_v35 = vld [vmem:[%s3242_s14 + $0x18] sm:$0xff]  ;;  %vm571_vm4 = vcmask 523264   ;;  %v617_v60 = vand.u32 127, %v469_v38  ;;  %v3117_v61 = vmov 0.0   ;;  %s401_s14 = scalar_lea.vmem %s4143_s9, %s2603_s23 }
  0x27   : > { %602 = vmatpush.bf16.msra.mxu3 %v2633_v21  ;;  %v409_v36 = vpack.c.bf16 %v407_v35, %v406_v34  ;;  %v515_v5 = vld [vmem:[#allocation7] ss:$8 sm:$0x3] }
  0x28   : > { %vm633_vm5 = vcmp.ge.s32.totalorder %v617_v60, 30  ;;  %vm634_vm6 = vcmp.lt.s32.totalorder %v617_v60, 40  ;;  %vm643_vm8 = vcmp.ge.s32.totalorder %v617_v60, 50  ;;  %vm644_vm9 = vcmp.lt.s32.totalorder %v617_v60, 60 }
  0x29   : > { %2606 = vmatmul.msk.bf16.vlgmr.msra.gmra.mxu0 %vm4144_vm1, %v408_v6  ;;  %2608 = vmatmul.msk.bf16.vlgmr.msra.gmra.mxu1 %vm4144_vm1, %v408_v6  ;;  %vm635_vm7 = vmand %vm633_vm5, %vm634_vm6  ;;  %vm628_vm10 = vcmp.ge.s32.totalorder %v617_v60, 20  ;;  %vm619_vm11 = vcmp.lt.s32.totalorder %v617_v60, 10  ;;  %vm629_vm13 = vcmp.lt.s32.totalorder %v617_v60, 30  ;;  %vm638_vm14 = vcmp.ge.s32.totalorder %v617_v60, 40 }
  0x2a   : > { %584 = vmatpush.bf16.msra.mxu2 %v2621_v25  ;;  %v3328_v62 = vsel %vm635_vm7, 1.0, %v3117_v61  ;;  %vm645_vm12 = vmand %vm643_vm8, %vm644_vm9  ;;  %v3330_v63 = vsel %vm619_vm11, 1.0, %v3117_v61  ;;  %vm639_vm0 = vcmp.lt.s32.totalorder %v617_v60, 50  ;;  %vm623_vm5 = vcmp.ge.s32.totalorder %v617_v60, 10 }
  0x2b   : > { %603 = vmatpush.bf16.msra.mxu3 %v2625_v27  ;;  %v3332_v0 = vsel %vm645_vm12, 1.0, %v3117_v61  ;;  %vm630_vm15 = vmand %vm628_vm10, %vm629_vm13  ;;  %vm624_vm6 = vcmp.lt.s32.totalorder %v617_v60, 20  ;;  %v3344_v6 = vperm.slane %v515_v5, 1  ;;  %v3346_v7 = vperm.slane %v515_v5, 0 }
  0x2c   : > { %v3334_v1 = vsel %vm630_vm15, 1.0, %v3117_v61  ;;  %vm625_vm7 = vmand %vm623_vm5, %vm624_vm6 }
  0x2d   : > { %v3350_v12 = vsel %vm625_vm7, 1.0, %v3117_v61 }
  0x2e   : > { %585 = vmatpush.bf16.msra.mxu2 %v2613_v31 }
  0x2f   : > { %604 = vmatpush.bf16.msra.mxu3 %v2617_v33 }
  0x39   : > { %2607 = vmatmul.msk.bf16.gmra.mxu0 %vm4144_vm1, %v409_v36  ;;  %2609 = vmatmul.msk.bf16.gmra.mxu1 %vm4144_vm1, %v409_v36  ;;  %vm640_vm1 = vmand %vm638_vm14, %vm639_vm0 }
  0x3a   : > { %v3336_v2 = vsel %vm640_vm1, 1.0, %v3117_v61  ;;  %vm677_vm1 = vcmask 130048  }
  0xa6   : > { %v436_v8 = vpop.f32.mrf.mxu0  ;;  %v455_v37 = vpop.f32.mrf.mxu1 }
  0xa7   : > { %476 = vrot.lane.b32.xlu0 %v436_v8, %s3116_s13  ;;  %v467_v43 = vrot.slane %v436_v8, 7  ;;  %v484_v44 = vrot.slane %v455_v37, 1 }
  0xae   : > { %v438_v9 = vpop.f32.mrf.mxu0  ;;  %v457_v40 = vpop.f32.mrf.mxu1 }
  0xaf   : > { %478 = vrot.lane.b32.xlu0 %v438_v9, %s3116_s13  ;;  %v468_v41 = vrot.slane %v438_v9, 7  ;;  %v485_v45 = vrot.slane %v457_v40, 1 }
  0xb1   : > { %v473_v46 = vsel %vm471_vm2, %v468_v41, %v467_v43  ;;  %v487_v48 = vsel %vm486_vm3, %v484_v44, %v485_v45  ;;  %v472_v50 = vsel %vm471_vm2, %v467_v43, %v468_v41  ;;  %v488_v55 = vsel %vm486_vm3, %v485_v45, %v484_v44 }
  0xb6   : > { %v3338_v3 = vpop.f32.mrf.mxu0 }
  0xb7   : > { %v493_v60 = vrot.slane %v3338_v3, 7 }
  0xbe   : > { %v3340_v4 = vpop.f32.mrf.mxu0 }
  0xbf   : > { %501 = vrot.lane.b32.xlu2 %v3340_v4, %s3116_s13  ;;  %v494_v61 = vrot.slane %v3340_v4, 7 }
  0xc1   : > { %v496_v4 = vsel %vm471_vm2, %v494_v61, %v493_v60 }
 0x119   : > { %v477_v42 = vpop.permute.xlu0 %476 }
 0x11a   : > { %v482_v47 = vadd.f32 %v477_v42, %v473_v46 }
 0x11c   : > { %v489_v51 = vadd.f32 %v487_v48, %v482_v47 }
 0x11e   : > { %v3319_v57 = vadd.f32 %v489_v51, %v3312_v53 }
 0x121   : > { %v479_v49 = vpop.permute.xlu0 %478 }
 0x122   : > { %v483_v52 = vadd.f32 %v479_v49, %v472_v50 }
 0x124   : > { %v490_v56 = vadd.f32 %v488_v55, %v483_v52 }
 0x126   : > { %v3322_v58 = vadd.f32 %v490_v56, %v3314_v54 }
 0x128   : > { %v516_v59 = vpack.c.bf16 %v3322_v58, %v3319_v57 }
 0x12a   : > { %2642 = vmatmul.msk.bf16.vlgmr.msra.gmra.mxu2 %vm571_vm4, %v516_v59  ;;  %2644 = vmatmul.msk.bf16.vlgmr.msra.gmra.mxu3 %vm571_vm4, %v516_v59  ;;  %v460_v59 = vpop.f32.mrf.mxu1 }
 0x132   : > { %v462_v5 = vpop.f32.mrf.mxu1 }
 0x1ad   : > { %v587_v8 = vpop.f32.mrf.mxu2  ;;  %v606_v9 = vpop.f32.mrf.mxu3 }
 0x1ae   : > { %v607_v10 = vadd.f32 %v606_v9, %v3344_v6  ;;  %v588_v11 = vadd.f32 %v587_v8, %v3346_v7  ;;  %v507_v8 = vrot.slane %v460_v59, 1 }
 0x1b0   : > { %v801_v13 = vmul.f32 %v3350_v12, %v607_v10  ;;  %v966_v16 = vmul.f32 %v3328_v62, %v607_v10  ;;  %v3355_v17 = vmul.f32 %v3330_v63, %v588_v11  ;;  %v3358_v18 = vmul.f32 %v3350_v12, %v588_v11 }
 0x1b1   : > { %v3361_v19 = vmul.f32 %v3332_v0, %v607_v10  ;;  %v727_v22 = vmul.f32 %v3330_v63, %v607_v10  ;;  %v3367_v23 = vmul.f32 %v3328_v62, %v588_v11  ;;  %v3370_v24 = vmul.f32 %v3334_v1, %v588_v11 }
 0x1b2   : > { %v3373_v25 = vmul.f32 %v3336_v2, %v607_v10  ;;  %v3376_v26 = vmul.f32 %v3332_v0, %v588_v11  ;;  %v3379_v27 = vmul.f32 %v3334_v1, %v607_v10  ;;  %v3401_v49 = vmul.f32 %v3336_v2, %v588_v11 }
 0x1b3   : > { %v508_v10 = vrot.slane %v462_v5, 1 }
 0x1b5   : > { %v589_v14 = vpop.f32.mrf.mxu2  ;;  %v608_v15 = vpop.f32.mrf.mxu3 }
 0x1b6   : > { %v590_v20 = vadd.f32 %v589_v14, %v3346_v7  ;;  %v609_v21 = vadd.f32 %v608_v15, %v3344_v6 }
 0x1b8   : > { %v648_v28 = vpack.c.bf16 %v590_v20, %v588_v11  ;;  %v802_v29 = vmul.f32 %v3350_v12, %v609_v21  ;;  %v967_v30 = vmul.f32 %v3328_v62, %v609_v21  ;;  %v650_v31 = vmul.f32 %v3330_v63, %v590_v20  ;;  %v502_v11 = vpop.permute.xlu2 %501 }
 0x1b9   : > { %v731_v32 = vmul.f32 %v3350_v12, %v590_v20  ;;  %v1132_v33 = vmul.f32 %v3332_v0, %v609_v21  ;;  %v728_v34 = vmul.f32 %v3330_v63, %v609_v21  ;;  %v896_v35 = vmul.f32 %v3328_v62, %v590_v20 }
 0x1ba   : > { %653 = vrot.lane.b32.xlu1 %v648_v28, %s3116_s13  ;;  %v803_v36 = vpack.c.bf16 %v802_v29, %v801_v13  ;;  %v968_v37 = vpack.c.bf16 %v967_v30, %v966_v16  ;;  %v651_v38 = vpack.c.bf16 %v650_v31, %v3355_v17  ;;  %v822_v40 = vmul.f32 %v3334_v1, %v590_v20 }
 0x1bb   : > { %v732_v41 = vpack.c.bf16 %v731_v32, %v3358_v18  ;;  %v1133_v42 = vpack.c.bf16 %v1132_v33, %v3361_v19  ;;  %v729_v43 = vpack.c.bf16 %v728_v34, %v727_v22  ;;  %v897_v44 = vpack.c.bf16 %v896_v35, %v3367_v23 }
 0x1bc   : > { %814 = vmatpush.bf16.msrb.mxu2 %v803_v36  ;;  %v823_v45 = vpack.c.bf16 %v822_v40, %v3370_v24  ;;  %v1058_v46 = vmul.f32 %v3336_v2, %v609_v21  ;;  %v1061_v47 = vmul.f32 %v3332_v0, %v590_v20  ;;  %v3398_v48 = vmul.f32 %v3334_v1, %v609_v21 }
 0x1bd   : > { %v3404_v50 = vmul.f32 %v3336_v2, %v590_v20  ;;  %v495_v13 = vsel %vm471_vm2, %v493_v60, %v494_v61  ;;  %v509_v17 = vsel %vm486_vm3, %v507_v8, %v508_v10 }
 0x1be   : > { %v1059_v51 = vpack.c.bf16 %v1058_v46, %v3373_v25  ;;  %v1062_v52 = vpack.c.bf16 %v1061_v47, %v3376_v26  ;;  %v506_v15 = vadd.f32 %v502_v11, %v495_v13 }
 0x1c2   : > { %499 = vrot.lane.b32.xlu1 %v3338_v3, %s3116_s13  ;;  %v510_v3 = vsel %vm486_vm3, %v508_v10, %v507_v8 }
 0x1c3   : > { %v512_v16 = vadd.f32 %v510_v3, %v506_v15 }
 0x1c5   : > { %v3428_v21 = vadd.f32 %v512_v16, %v3314_v54 }
 0x22c   : > { %v654_v9 = vpop.permute.xlu1 %653 }
 0x22d   : > { %v659_v14 = vsel %vm571_vm4, %v654_v9, 0 }
 0x22e   : > { %668 = vmatpush.bf16.xpose.msrb.mxu0 %v659_v14  ;;  %743 = vmatpush.bf16.xpose.msrb.mxu1 %v659_v14 }
 0x22f   : > { %834 = vmatpush.bf16.xpose.msrb.mxu3 %v659_v14  ;;  %999 = vmatpush.bf16.xpose.msra.mxu2 %v659_v14 }
 0x234   : > { %v500_v18 = vpop.permute.xlu1 %499 }
 0x235   : > { %v505_v19 = vadd.f32 %v500_v18, %v496_v4  ;;  %2652 = vmatmul.msk.bf16.vlgmr.msrb.gmra.mxu0 %vm571_vm4, %v651_v38  ;;  %2653 = vmatmul.msk.bf16.vlgmr.msrb.gmra.mxu1 %vm571_vm4, %v732_v41 }
 0x236   : > { %908 = vmatpush.bf16.xpose.msra.mxu0 %v659_v14  ;;  %979 = vmatpush.bf16.msra.mxu1 %v968_v37 }
 0x237   : > { %1073 = vmatpush.bf16.xpose.msra.mxu3 %v659_v14  ;;  %v511_v20 = vadd.f32 %v509_v17, %v505_v19 }
 0x239   : > { %v3431_v22 = vadd.f32 %v511_v20, %v3312_v53 }
 0x23a   : > { %1161 = vmatpush.bf16.msrb.mxu1 %v729_v43 }
 0x23b   : > { %v517_v23 = vpack.c.bf16 %v3428_v21, %v3431_v22 }
 0x23d   : > { %2645 = vmatmul.msk.bf16.gmra.mxu3 %vm571_vm4, %v517_v23  ;;  %2643 = vmatmul.msk.bf16.gmra.mxu2 %vm571_vm4, %v517_v23 }
 0x23e   : > { %1144 = vmatpush.bf16.msrb.mxu0 %v1133_v42 }
 0x245   : > { %2656 = vmatmul.msk.bf16.vlgmr.msra.gmra.mxu0 %vm571_vm4, %v897_v44 }
 0x24d   : > { %2655 = vmatmul.msk.bf16.vlgmr.msrb.gmra.mxu3 %vm571_vm4, %v823_v45 }
 0x24e   : > { %1195 = vmatpush.bf16.msrb.mxu3 %v1059_v51 }
 0x25d   : > { %2659 = vmatmul.msk.bf16.vlgmr.msra.gmra.mxu3 %vm571_vm4, %v1062_v52 }
 0x2b2   : > { %v670_v39 = vpop.f32.mrf.mxu0  ;;  %v745_v54 = vpop.f32.mrf.mxu1 }
 0x2b3   : > { %v3440_v24 = vmul.f32 0.31622776, %v745_v54  ;;  %v3460_v38 = vmul.f32 0.31622776, %v670_v39 }
 0x2b5   : > { %v752_v53 = vsel %vm677_vm1, %v3440_v24, -inf  ;;  %v678_v40 = vsel %vm677_vm1, %v3460_v38, -inf }
 0x2b6   : > { %753 = vmax.xlane.f32.xlu2 %v752_v53 }
 0x2ba   : > { %v672_v25 = vpop.f32.mrf.mxu0  ;;  %v747_v26 = vpop.f32.mrf.mxu1 }
 0x2bb   : > { %v3444_v28 = vmul.f32 0.31622776, %v747_v26  ;;  %v3448_v30 = vmul.f32 0.31622776, %v672_v25 }
 0x2bd   : > { %v755_v29 = vsel %vm677_vm1, %v3444_v28, -inf  ;;  %v681_v34 = vsel %vm677_vm1, %v3448_v30, -inf }
 0x2be   : > { %756 = vmax.xlane.f32.xlu0 %v755_v29 }
 0x2c0   : > { %v592_v41 = vpop.f32.mrf.mxu2  ;;  %v611_v42 = vpop.f32.mrf.mxu3 }
 0x2c1   : > { %v612_v45 = vadd.f32 %v611_v42, %v3344_v6  ;;  %v3467_v47 = vadd.f32 %v592_v41, %v3346_v7 }
 0x2c2   : > { %v910_v31 = vpop.f32.mrf.mxu0 }
 0x2c3   : > { %v3450_v32 = vmul.f32 0.31622776, %v910_v31  ;;  %v3473_v52 = vmul.f32 %v3350_v12, %v612_v45  ;;  %v3479_v60 = vmul.f32 %v3328_v62, %v612_v45  ;;  %v3493_v5 = vmul.f32 %v3330_v63, %v612_v45 }
 0x2c4   : > { %v3504_v11 = vmul.f32 %v3330_v63, %v3467_v47  ;;  %v3515_v15 = vmul.f32 %v3332_v0, %v612_v45  ;;  %v3522_v4 = vmul.f32 %v3328_v62, %v3467_v47  ;;  %v3539_v19 = vmul.f32 %v3336_v2, %v612_v45 }
 0x2c5   : > { %v917_v33 = vsel %vm677_vm1, %v3450_v32, -inf  ;;  %v3549_v39 = vmul.f32 %v3334_v1, %v612_v45  ;;  %v3558_v25 = vmul.f32 %v3332_v0, %v3467_v47  ;;  %v3568_v31 = vmul.f32 %v3336_v2, %v3467_v47 }
 0x2c6   : > { %918 = vmax.xlane.f32.xlu1 %v917_v33  ;;  %682 = vmax.xlane.f32.xlu0 %v681_v34 }
 0x2c8   : > { %v594_v43 = vpop.f32.mrf.mxu2  ;;  %v613_v44 = vpop.f32.mrf.mxu3 }
 0x2c9   : > { %v614_v46 = vadd.f32 %v613_v44, %v3344_v6  ;;  %v3470_v51 = vadd.f32 %v594_v43, %v3346_v7  ;;  %v3486_v6 = vmul.f32 %v3350_v12, %v3467_v47 }
 0x2ca   : > { %v912_v35 = vpop.f32.mrf.mxu0 }
 0x2cb   : > { %v3456_v36 = vmul.f32 0.31622776, %v912_v35  ;;  %v3476_v59 = vmul.f32 %v3350_v12, %v614_v46  ;;  %v3482_v61 = vmul.f32 %v3328_v62, %v614_v46  ;;  %v3490_v7 = vmul.f32 %v3350_v12, %v3470_v51 }
 0x2cc   : > { %v3496_v8 = vmul.f32 %v3330_v63, %v614_v46  ;;  %v3512_v14 = vmul.f32 %v3330_v63, %v3470_v51  ;;  %v3518_v3 = vmul.f32 %v3332_v0, %v614_v46  ;;  %v3526_v16 = vmul.f32 %v3328_v62, %v3470_v51 }
 0x2cd   : > { %v920_v37 = vsel %vm677_vm1, %v3456_v36, -inf  ;;  %v3532_v63 = vmul.f32 %v3334_v1, %v3467_v47  ;;  %v3536_v18 = vmul.f32 %v3334_v1, %v3470_v51  ;;  %v3546_v23 = vmul.f32 %v3336_v2, %v614_v46 }
 0x2ce   : > { %921 = vmax.xlane.f32.xlu2 %v920_v37  ;;  %v3554_v53 = vmul.f32 %v3334_v1, %v614_v46  ;;  %v3562_v26 = vmul.f32 %v3332_v0, %v3470_v51  ;;  %v3572_v33 = vmul.f32 %v3336_v2, %v3470_v51 }
 0x2d0   : > { %v836_v41 = vpop.f32.mrf.mxu3 }
 0x2d6   : > { %679 = vmax.xlane.f32.xlu2 %v678_v40 }
 0x2d8   : > { %v838_v0 = vpop.f32.mrf.mxu3 }
 0x329   : > { %v754_v35 = vpop.xlane.xlu2 %753 }
 0x32a   : > { %v758_v37 = vsub.f32 %v3440_v24, %v754_v35 }
 0x32c   : > { %v760_v40 = vmul.f32 1.442695, %v758_v37 }
 0x32e   : > { %2836 = vpow2.f32 %v760_v40 }
 0x331   : > { %v757_v42 = vpop.xlane.xlu0 %756 }
 0x332   : > { %v759_v43 = vsub.f32 %v3444_v28, %v757_v42 }
 0x334   : > { %v3582_v2 = vpop.eup %2836  ;;  %v762_v44 = vmul.f32 1.442695, %v759_v43 }
 0x335   : > { %v764_v45 = vsel %vm677_vm1, %v3582_v2, 0.0 }
 0x336   : > { %2838 = vpow2.f32 %v762_v44  ;;  %765 = vadd.xlane.f32.xlu1 %v764_v45  ;;  %v1075_v45 = vpop.f32.mrf.mxu3 }
 0x339   : > { %v919_v46 = vpop.xlane.xlu1 %918  ;;  %v683_v34 = vpop.xlane.xlu0 %682 }
 0x33a   : > { %v923_v1 = vsub.f32 %v3450_v32, %v919_v46  ;;  %v685_v37 = vsub.f32 %v3448_v30, %v683_v34 }
 0x33c   : > { %v3587_v24 = vpop.eup %2838  ;;  %v925_v35 = vmul.f32 1.442695, %v923_v1  ;;  %v688_v40 = vmul.f32 1.442695, %v685_v37 }
 0x33d   : > { %v767_v28 = vsel %vm677_vm1, %v3587_v24, 0.0 }
 0x33e   : > { %2840 = vpow2.f32 %v925_v35  ;;  %768 = vadd.xlane.f32.xlu2 %v767_v28  ;;  %v1077_v28 = vpop.f32.mrf.mxu3 }
 0x33f   : > { %2842 = vpow2.f32 %v688_v40 }
 0x341   : > { %v922_v42 = vpop.xlane.xlu2 %921 }
 0x342   : > { %v924_v43 = vsub.f32 %v3456_v36, %v922_v42 }
 0x344   : > { %v3593_v44 = vpop.eup %2840  ;;  %v927_v29 = vmul.f32 1.442695, %v924_v43  ;;  %v3614_v43 = vmul.f32 0.31622776, %v838_v0 }
 0x345   : > { %v929_v32 = vsel %vm677_vm1, %v3593_v44, 0.0  ;;  %v3597_v1 = vpop.eup %2842 }
 0x346   : > { %2844 = vpow2.f32 %v927_v29  ;;  %930 = vadd.xlane.f32.xlu0 %v929_v32  ;;  %v693_v37 = vsel %vm677_vm1, %v3597_v1, 0.0  ;;  %v3606_v29 = vmul.f32 0.31622776, %v1077_v28  ;;  %v3616_v32 = vmul.f32 0.31622776, %v1075_v45 }
 0x348   : > { %v1085_v42 = vsel %vm677_vm1, %v3606_v29, -inf }
 0x349   : > { %v680_v30 = vpop.xlane.xlu2 %679 }
 0x34a   : > { %v684_v34 = vsub.f32 %v3460_v38, %v680_v30  ;;  %v1082_v30 = vsel %vm677_vm1, %v3616_v32, -inf }
 0x34c   : > { %v3600_v46 = vpop.eup %2844  ;;  %v686_v35 = vmul.f32 1.442695, %v684_v34  ;;  %v846_v34 = vsel %vm677_vm1, %v3614_v43, -inf }
 0x34d   : > { %v932_v36 = vsel %vm677_vm1, %v3600_v46, 0.0 }
 0x34e   : > { %2846 = vpow2.f32 %v686_v35  ;;  %933 = vadd.xlane.f32.xlu1 %v932_v36  ;;  %694 = vadd.xlane.f32.xlu0 %v693_v37  ;;  %v3622_v35 = vmul.f32 0.31622776, %v836_v41  ;;  %v1206_v37 = vpack.c.bf16 %v3470_v51, %v3467_v47 }
 0x350   : > { %v843_v36 = vsel %vm677_vm1, %v3622_v35, -inf }
 0x354   : > { %v3608_v40 = vpop.eup %2846 }
 0x355   : > { %v690_v38 = vsel %vm677_vm1, %v3608_v40, 0.0 }
 0x356   : > { %691 = vadd.xlane.f32.xlu2 %v690_v38  ;;  %1086 = vmax.xlane.f32.xlu0 %v1085_v42 }
 0x35e   : > { %1083 = vmax.xlane.f32.xlu2 %v1082_v30  ;;  %847 = vmax.xlane.f32.xlu0 %v846_v34 }
 0x366   : > { %844 = vmax.xlane.f32.xlu2 %v843_v36 }
 0x367   : > { %1211 = vrot.lane.b32.xlu1 %v1206_v37, %s3116_s13 }
 0x3a9   : > { %v766_v0 = vpop.xlane.xlu1 %765 }
 0x3aa   : > { %2848 = vrcp.f32 %v766_v0  ;;  %v781_v17 = vand.u32 2147483648, %v766_v0  ;;  %vm775_vm3 = vweird.f32 %v766_v0  ;;  %v779_v47 = vand.u32 2147483647, %v766_v0 }
 0x3ac   : > { %vm780_vm12 = vcmp.eq.f32.partialorder %v779_v47, 8.507059e+37 }
 0x3b0   : > { %v2849_v45 = vpop.eup %2848 }
 0x3b1   : > { %v771_v28 = vmul.f32 %v2849_v45, %v766_v0  ;;  %v769_v38 = vpop.xlane.xlu2 %768  ;;  %vm776_vm2 = vweird.f32 %v2849_v45 }
 0x3b2   : > { %2850 = vrcp.f32 %v769_v38  ;;  %vm3629_vm9 = vmor %vm775_vm3, %vm776_vm2  ;;  %v796_v37 = vand.u32 2147483648, %v769_v38  ;;  %vm790_vm10 = vweird.f32 %v769_v38  ;;  %v794_v13 = vand.u32 2147483647, %v769_v38 }
 0x3b3   : > { %v772_v42 = vsub.f32 1.0, %v771_v28 }
 0x3b4   : > { %v797_v9 = vor.u32 1.1754944e-38, %v796_v37  ;;  %vm795_vm13 = vcmp.eq.f32.partialorder %v794_v13, 8.507059e+37 }
 0x3b5   : > { %v773_v30 = vmul.f32 %v2849_v45, %v772_v42 }
 0x3b7   : > { %v774_v62 = vadd.f32 %v2849_v45, %v773_v30  ;;  %v782_v30 = vor.u32 1.1754944e-38, %v781_v17 }
 0x3b8   : > { %v2851_v34 = vpop.eup %2850 }
 0x3b9   : > { %v786_v41 = vmul.f32 %v2851_v34, %v769_v38  ;;  %v931_v54 = vpop.xlane.xlu0 %930  ;;  %vm791_vm8 = vweird.f32 %v2851_v34  ;;  %v778_v28 = vsel %vm3629_vm9, %v2849_v45, %v774_v62 }
 0x3ba   : > { %2852 = vrcp.f32 %v931_v54  ;;  %vm792_vm11 = vmor %vm790_vm10, %vm791_vm8  ;;  %v783_v56 = vsel %vm780_vm12, %v782_v30, %v778_v28  ;;  %v946_v28 = vand.u32 2147483648, %v931_v54  ;;  %vm940_vm15 = vweird.f32 %v931_v54 }
 0x3bb   : > { %v787_v20 = vsub.f32 1.0, %v786_v41  ;;  %v784_v38 = vmul.f32 %v3582_v2, %v783_v56 }
 0x3bd   : > { %v788_v51 = vmul.f32 %v2851_v34, %v787_v20 }
 0x3bf   : > { %v789_v42 = vadd.f32 %v2851_v34, %v788_v51 }
 0x3c0   : > { %v2853_v12 = vpop.eup %2852 }
 0x3c1   : > { %v793_v41 = vsel %vm792_vm11, %v2851_v34, %v789_v42  ;;  %v936_v10 = vmul.f32 %v2853_v12, %v931_v54  ;;  %v934_v0 = vpop.xlane.xlu1 %933  ;;  %v3635_v20 = vpop.xlane.xlu0 %694  ;;  %vm941_vm14 = vweird.f32 %v2853_v12 }
 0x3c2   : > { %2854 = vrcp.f32 %v934_v0  ;;  %v798_v62 = vsel %vm795_vm13, %v797_v9, %v793_v41  ;;  %vm942_vm0 = vmor %vm940_vm15, %vm941_vm14  ;;  %v959_v9 = vand.u32 2147483647, %v934_v0  ;;  %v961_v13 = vand.u32 2147483648, %v934_v0 }
 0x3c3   : > { %v937_v55 = vsub.f32 1.0, %v936_v10  ;;  %2856 = vrcp.f32 %v3635_v20  ;;  %v799_v17 = vmul.f32 %v3587_v24, %v798_v62  ;;  %v4150_v10 = vpack.c.bf16 %v3398_v48, %v3379_v27 }
 0x3c4   : > { %v947_v41 = vor.u32 1.1754944e-38, %v946_v28  ;;  %vm955_vm7 = vweird.f32 %v934_v0  ;;  %v962_v27 = vor.u32 1.1754944e-38, %v961_v13  ;;  %vm960_vm3 = vcmp.eq.f32.partialorder %v959_v9, 8.507059e+37 }
 0x3c5   : > { %v938_v45 = vmul.f32 %v2853_v12, %v937_v55  ;;  %v800_v51 = vpack.c.bf16 %v799_v17, %v784_v38  ;;  %v944_v55 = vand.u32 2147483647, %v931_v54  ;;  %v4151_v9 = vpack.c.bf16 %v3404_v50, %v3401_v49 }
 0x3c6   : > { %v4152_v13 = vpack.c.bf16 %v3476_v59, %v3473_v52  ;;  %vm716_vm12 = vweird.f32 %v3635_v20 }
 0x3c7   : > { %v939_v34 = vadd.f32 %v2853_v12, %v938_v45  ;;  %2654 = vmatmul.msk.bf16.vlgmr.msrb.gmra.mxu2 %vm677_vm1, %v800_v51  ;;  %vm945_vm6 = vcmp.eq.f32.partialorder %v944_v55, 8.507059e+37 }
 0x3c8   : > { %v2855_v47 = vpop.eup %2854  ;;  %1178 = vmatpush.bf16.msrb.mxu2 %v4150_v10 }
 0x3c9   : > { %v951_v36 = vmul.f32 %v2855_v47, %v934_v0  ;;  %v692_v37 = vpop.xlane.xlu2 %691  ;;  %v2857_v42 = vpop.eup %2856  ;;  %v943_v2 = vsel %vm942_vm0, %v2853_v12, %v939_v34  ;;  %vm956_vm5 = vweird.f32 %v2855_v47 }
 0x3ca   : > { %2858 = vrcp.f32 %v692_v37  ;;  %v712_v30 = vmul.f32 %v2857_v42, %v3635_v20  ;;  %v948_v38 = vsel %vm945_vm6, %v947_v41, %v943_v2  ;;  %vm957_vm2 = vmor %vm955_vm7, %vm956_vm5  ;;  %v707_v0 = vand.u32 2147483648, %v692_v37 }
 0x3cb   : > { %v952_v56 = vsub.f32 1.0, %v951_v36  ;;  %v949_v36 = vmul.f32 %v3593_v44, %v948_v38  ;;  %vm717_vm9 = vweird.f32 %v2857_v42  ;;  %vm701_vm10 = vweird.f32 %v692_v37 }
 0x3cc   : > { %v713_v54 = vsub.f32 1.0, %v712_v30  ;;  %vm718_vm13 = vmor %vm716_vm12, %vm717_vm9  ;;  %v708_v49 = vor.u32 1.1754944e-38, %v707_v0 }
 0x3cd   : > { %v953_v24 = vmul.f32 %v2855_v47, %v952_v56 }
 0x3ce   : > { %v714_v10 = vmul.f32 %v2857_v42, %v713_v54 }
 0x3cf   : > { %v954_v62 = vadd.f32 %v2855_v47, %v953_v24 }
 0x3d0   : > { %v2859_v45 = vpop.eup %2858  ;;  %v715_v2 = vadd.f32 %v2857_v42, %v714_v10 }
 0x3d1   : > { %v958_v48 = vsel %vm957_vm2, %v2855_v47, %v954_v62  ;;  %v697_v17 = vmul.f32 %v2859_v45, %v692_v37  ;;  %vm702_vm8 = vweird.f32 %v2859_v45  ;;  %v705_v47 = vand.u32 2147483647, %v692_v37 }
 0x3d2   : > { %v963_v51 = vsel %vm960_vm3, %v962_v27, %v958_v48  ;;  %vm703_vm11 = vmor %vm701_vm10, %vm702_vm8  ;;  %v720_v37 = vand.u32 2147483647, %v3635_v20  ;;  %v719_v50 = vsel %vm718_vm13, %v2857_v42, %v715_v2  ;;  %v4154_v27 = vpack.c.bf16 %v3490_v7, %v3486_v6 }
 0x3d3   : > { %v964_v12 = vmul.f32 %v3600_v46, %v963_v51  ;;  %v698_v34 = vsub.f32 1.0, %v697_v17  ;;  %v722_v46 = vand.u32 2147483648, %v3635_v20  ;;  %vm706_vm14 = vcmp.eq.f32.partialorder %v705_v47, 8.507059e+37  ;;  %v1087_v47 = vpop.xlane.xlu0 %1086 }
 0x3d4   : > { %vm721_vm15 = vcmp.eq.f32.partialorder %v720_v37, 8.507059e+37  ;;  %v4155_v42 = vpack.c.bf16 %v3496_v8, %v3493_v5 }
 0x3d5   : > { %v699_v56 = vmul.f32 %v2859_v45, %v698_v34  ;;  %v965_v28 = vpack.c.bf16 %v964_v12, %v949_v36  ;;  %v723_v52 = vor.u32 1.1754944e-38, %v722_v46 }
 0x3d7   : > { %v700_v55 = vadd.f32 %v2859_v45, %v699_v56  ;;  %2657 = vmatmul.msk.bf16.vlgmr.msra.gmra.mxu1 %vm677_vm1, %v965_v28  ;;  %2658 = vmatmul.msk.bf16.vlgmr.msra.gmra.mxu2 %vm571_vm4, %v4151_v9  ;;  %v724_v41 = vsel %vm721_vm15, %v723_v52, %v719_v50 }
 0x3d8   : > { %1371 = vmatpush.bf16.msra.mxu2 %v4152_v13  ;;  %v725_v38 = vmul.f32 %v3597_v1, %v724_v41  ;;  %v1084_v1 = vpop.xlane.xlu2 %1083 }
 0x3d9   : > { %v1212_v44 = vpop.permute.xlu1 %1211  ;;  %v704_v30 = vsel %vm703_vm11, %v2859_v45, %v700_v55  ;;  %v4153_v45 = vpack.c.bf16 %v3482_v61, %v3479_v60  ;;  %v1088_v60 = vsub.f32 %v3616_v32, %v1084_v1 }
 0x3da   : > { %v3657_v24 = vsel %vm571_vm4, %v1212_v44, 0  ;;  %v709_v59 = vsel %vm706_vm14, %v708_v49, %v704_v30 }
 0x3db   : > { %1226 = vmatpush.bf16.xpose.msra.mxu0 %v3657_v24  ;;  %1300 = vmatpush.bf16.xpose.msra.mxu1 %v3657_v24  ;;  %v710_v62 = vmul.f32 %v3608_v40, %v709_v59  ;;  %v1090_v6 = vmul.f32 1.442695, %v1088_v60  ;;  %v848_v49 = vpop.xlane.xlu0 %847 }
 0x3dc   : > { %1391 = vmatpush.bf16.xpose.msra.mxu3 %v3657_v24  ;;  %v850_v59 = vsub.f32 %v3614_v43, %v848_v49 }
 0x3dd   : > { %v726_v20 = vpack.c.bf16 %v725_v38, %v710_v62  ;;  %2860 = vpow2.f32 %v1090_v6 }
 0x3de   : > { %v853_v62 = vmul.f32 1.442695, %v850_v59 }
 0x3e0   : > { %v845_v7 = vpop.xlane.xlu2 %844 }
 0x3e1   : > { %v849_v10 = vsub.f32 %v3622_v35, %v845_v7  ;;  %v1089_v35 = vsub.f32 %v3606_v29, %v1087_v47 }
 0x3e3   : > { %v851_v28 = vmul.f32 1.442695, %v849_v10  ;;  %v3687_v55 = vpop.eup %2860  ;;  %v1092_v30 = vmul.f32 1.442695, %v1089_v35 }
 0x3e4   : > { %v1094_v2 = vsel %vm677_vm1, %v3687_v55, 0.0 }
 0x3e5   : > { %2862 = vpow2.f32 %v851_v28 }
 0x3e6   : > { %2864 = vpow2.f32 %v1092_v30 }
 0x3e7   : > { %2661 = vmatmul.msk.bf16.vlgmr.msrb.gmra.mxu1 %vm677_vm1, %v726_v20  ;;  %2866 = vpow2.f32 %v853_v62 }
 0x3e8   : > { %1536 = vmatpush.bf16.msrb.mxu1 %v4153_v45 }
 0x3eb   : > { %v3693_v9 = vpop.eup %2862 }
 0x3ec   : > { %v855_v13 = vsel %vm677_vm1, %v3693_v9, 0.0  ;;  %v3701_v38 = vpop.eup %2864 }
 0x3ed   : > { %v1097_v29 = vsel %vm677_vm1, %v3701_v38, 0.0  ;;  %v3705_v20 = vpop.eup %2866 }
 0x3ee   : > { %v858_v45 = vsel %vm677_vm1, %v3705_v20, 0.0 }
 0x3f7   : > { %2665 = vmatmul.msk.bf16.vlgmr.msra.gmra.mxu1 %vm571_vm4, %v4154_v27 }
 0x3f8   : > { %1718 = vmatpush.bf16.msra.mxu1 %v4155_v42 }
 0x44a   : > { %v816_v48 = vpop.f32.mrf.mxu2 }
 0x452   : > { %v818_v40 = vpop.f32.mrf.mxu2 }
 0x454   : > { %v3677_v54 = vpop.f32.mrf.mxu1 }
 0x45a   : > { %v1001_v17 = vpop.f32.mrf.mxu2 }
 0x45b   : > { %v1006_v36 = vmul.f32 0.31622776, %v1001_v17 }
 0x45c   : > { %v3679_v51 = vpop.f32.mrf.mxu1 }
 0x45d   : > { %v1008_v61 = vsel %vm677_vm1, %v1006_v36, -inf }
 0x45e   : > { %1009 = vmax.xlane.f32.xlu2 %v1008_v61 }
 0x462   : > { %v1003_v12 = vpop.f32.mrf.mxu2 }
 0x463   : > { %v1007_v5 = vmul.f32 0.31622776, %v1003_v12 }
 0x464   : > { %v1163_v34 = vpop.f32.mrf.mxu1 }
 0x465   : > { %v3683_v8 = vadd.f32 %v1163_v34, %v816_v48  ;;  %v1011_v56 = vsel %vm677_vm1, %v1007_v5, -inf }
 0x466   : > { %1012 = vmax.xlane.f32.xlu0 %v1011_v56 }
 0x46c   : > { %v1165_v32 = vpop.f32.mrf.mxu1 }
 0x46d   : > { %v3689_v0 = vadd.f32 %v1165_v32, %v818_v40 }
 0x46e   : > { %1095 = vadd.xlane.f32.xlu0 %v1094_v2 }
 0x474   : > { %v1302_v44 = vpop.f32.mrf.mxu1 }
 0x475   : > { %v1307_v46 = vmul.f32 0.31622776, %v1302_v44 }
 0x476   : > { %856 = vadd.xlane.f32.xlu0 %v855_v13 }
 0x477   : > { %v1309_v37 = vsel %vm677_vm1, %v1307_v46, -inf }
 0x478   : > { %1310 = vmax.xlane.f32.xlu1 %v1309_v37 }
 0x47c   : > { %v1304_v50 = vpop.f32.mrf.mxu1 }
 0x47d   : > { %v1308_v52 = vmul.f32 0.31622776, %v1304_v50 }
 0x47f   : > { %v1312_v41 = vsel %vm677_vm1, %v1308_v52, -inf }
 0x480   : > { %1313 = vmax.xlane.f32.xlu2 %v1312_v41 }
 0x488   : > { %1098 = vadd.xlane.f32.xlu2 %v1097_v29 }
 0x490   : > { %859 = vadd.xlane.f32.xlu2 %v858_v45 }
 0x4d1   : > { %v1010_v27 = vpop.xlane.xlu2 %1009 }
 0x4d2   : > { %v1014_v42 = vsub.f32 %v1006_v36, %v1010_v27 }
 0x4d4   : > { %v1016_v43 = vmul.f32 1.442695, %v1014_v42 }
 0x4d6   : > { %2868 = vpow2.f32 %v1016_v43 }
 0x4d9   : > { %v1013_v48 = vpop.xlane.xlu0 %1012 }
 0x4da   : > { %v1015_v40 = vsub.f32 %v1007_v5, %v1013_v48 }
 0x4dc   : > { %v3709_v1 = vpop.eup %2868  ;;  %v1018_v17 = vmul.f32 1.442695, %v1015_v40 }
 0x4dd   : > { %v1020_v60 = vsel %vm677_vm1, %v3709_v1, 0.0 }
 0x4de   : > { %2870 = vpow2.f32 %v1018_v17  ;;  %1021 = vadd.xlane.f32.xlu0 %v1020_v60 }
 0x4e1   : > { %v1096_v7 = vpop.xlane.xlu0 %1095 }
 0x4e2   : > { %2872 = vrcp.f32 %v1096_v7  ;;  %v1111_v45 = vand.u32 2147483648, %v1096_v7  ;;  %vm1105_vm5 = vweird.f32 %v1096_v7  ;;  %v1109_v27 = vand.u32 2147483647, %v1096_v7 }
 0x4e4   : > { %v3713_v61 = vpop.eup %2870  ;;  %vm1110_vm2 = vcmp.eq.f32.partialorder %v1109_v27, 8.507059e+37 }
 0x4e5   : > { %v1023_v6 = vsel %vm677_vm1, %v3713_v61, 0.0 }
 0x4e6   : > { %1024 = vadd.xlane.f32.xlu2 %v1023_v6  ;;  %v1112_v6 = vor.u32 1.1754944e-38, %v1111_v45 }
 0x4e8   : > { %v2873_v56 = vpop.eup %2872 }
 0x4e9   : > { %v3717_v5 = vpop.xlane.xlu0 %856  ;;  %v1101_v47 = vmul.f32 %v2873_v56, %v1096_v7  ;;  %vm1106_vm0 = vweird.f32 %v2873_v56 }
 0x4ea   : > { %vm1107_vm6 = vmor %vm1105_vm5, %vm1106_vm0  ;;  %vm866_vm11 = vweird.f32 %v3717_v5 }
 0x4eb   : > { %v1311_v36 = vpop.xlane.xlu1 %1310  ;;  %v1102_v35 = vsub.f32 1.0, %v1101_v47 }
 0x4ec   : > { %v1315_v12 = vsub.f32 %v1307_v46, %v1311_v36 }
 0x4ed   : > { %v1103_v49 = vmul.f32 %v2873_v56, %v1102_v35 }
 0x4ee   : > { %v1317_v34 = vmul.f32 1.442695, %v1315_v12 }
 0x4ef   : > { %v1104_v41 = vadd.f32 %v2873_v56, %v1103_v49 }
 0x4f0   : > { %2874 = vpow2.f32 %v1317_v34 }
 0x4f1   : > { %2876 = vrcp.f32 %v3717_v5  ;;  %v1108_v40 = vsel %vm1107_vm6, %v2873_v56, %v1104_v41  ;;  %v872_v56 = vand.u32 2147483648, %v3717_v5 }
 0x4f2   : > { %v1113_v34 = vsel %vm1110_vm2, %v1112_v6, %v1108_v40  ;;  %v4159_v40 = vpack.c.bf16 %v3518_v3, %v3515_v15 }
 0x4f3   : > { %v1314_v10 = vpop.xlane.xlu2 %1313  ;;  %v873_v45 = vor.u32 1.1754944e-38, %v872_v56 }
 0x4f4   : > { %v1316_v28 = vsub.f32 %v1308_v52, %v1314_v10 }
 0x4f6   : > { %v1319_v32 = vmul.f32 1.442695, %v1316_v28  ;;  %v3720_v2 = vpop.eup %2874 }
 0x4f7   : > { %v1321_v44 = vsel %vm677_vm1, %v3720_v2, 0.0  ;;  %v2877_v46 = vpop.eup %2876 }
 0x4f8   : > { %2878 = vpow2.f32 %v1319_v32  ;;  %1322 = vadd.xlane.f32.xlu0 %v1321_v44  ;;  %v862_v30 = vmul.f32 %v2877_v46, %v3717_v5  ;;  %vm867_vm8 = vweird.f32 %v2877_v46  ;;  %v1114_v44 = vmul.f32 %v3687_v55, %v1113_v34 }
 0x4f9   : > { %vm3732_vm12 = vmor %vm866_vm11, %vm867_vm8 }
 0x4fa   : > { %v863_v59 = vsub.f32 1.0, %v862_v30 }
 0x4fb   : > { %v1099_v13 = vpop.xlane.xlu2 %1098 }
 0x4fc   : > { %2880 = vrcp.f32 %v1099_v13  ;;  %v864_v43 = vmul.f32 %v2877_v46, %v863_v59  ;;  %v1126_v48 = vand.u32 2147483648, %v1099_v13  ;;  %v1124_v60 = vand.u32 2147483647, %v1099_v13 }
 0x4fd   : > { %vm1120_vm3 = vweird.f32 %v1099_v13 }
 0x4fe   : > { %v3724_v37 = vpop.eup %2878  ;;  %v865_v10 = vadd.f32 %v2877_v46, %v864_v43  ;;  %v1127_v28 = vor.u32 1.1754944e-38, %v1126_v48  ;;  %vm1125_vm10 = vcmp.eq.f32.partialorder %v1124_v60, 8.507059e+37 }
 0x4ff   : > { %v1324_v50 = vsel %vm677_vm1, %v3724_v37, 0.0 }
 0x500   : > { %1325 = vadd.xlane.f32.xlu2 %v1324_v50  ;;  %v869_v50 = vsel %vm3732_vm12, %v2877_v46, %v865_v10 }
 0x502   : > { %v2881_v52 = vpop.eup %2880 }
 0x503   : > { %v1116_v62 = vmul.f32 %v2881_v52, %v1099_v13  ;;  %v860_v29 = vpop.xlane.xlu2 %859  ;;  %vm1121_vm7 = vweird.f32 %v2881_v52  ;;  %v870_v13 = vand.u32 2147483647, %v3717_v5 }
 0x504   : > { %2882 = vrcp.f32 %v860_v29  ;;  %vm1122_vm9 = vmor %vm1120_vm3, %vm1121_vm7  ;;  %v885_v41 = vand.u32 2147483647, %v860_v29  ;;  %vm881_vm15 = vweird.f32 %v860_v29 }
 0x505   : > { %v1117_v42 = vsub.f32 1.0, %v1116_v62  ;;  %vm871_vm14 = vcmp.eq.f32.partialorder %v870_v13, 8.507059e+37 }
 0x506   : > { %v874_v27 = vsel %vm871_vm14, %v873_v45, %v869_v50  ;;  %vm886_vm5 = vcmp.eq.f32.partialorder %v885_v41, 8.507059e+37 }
 0x507   : > { %v1118_v17 = vmul.f32 %v2881_v52, %v1117_v42  ;;  %v875_v46 = vmul.f32 %v3693_v9, %v874_v27 }
 0x509   : > { %v1119_v36 = vadd.f32 %v2881_v52, %v1118_v17  ;;  %v4160_v17 = vpack.c.bf16 %v3526_v16, %v3522_v4 }
 0x50a   : > { %v2883_v12 = vpop.eup %2882 }
 0x50b   : > { %v1123_v32 = vsel %vm1122_vm9, %v2881_v52, %v1119_v36  ;;  %v877_v7 = vmul.f32 %v2883_v12, %v860_v29  ;;  %v887_v52 = vand.u32 2147483648, %v860_v29  ;;  %vm882_vm13 = vweird.f32 %v2883_v12 }
 0x50c   : > { %v1128_v47 = vsel %vm1125_vm10, %v1127_v28, %v1123_v32  ;;  %vm883_vm0 = vmor %vm881_vm15, %vm882_vm13  ;;  %v4158_v29 = vpack.c.bf16 %v3512_v14, %v3504_v11 }
 0x50d   : > { %v1129_v30 = vmul.f32 %v3701_v38, %v1128_v47  ;;  %v878_v49 = vsub.f32 1.0, %v877_v7  ;;  %v888_v5 = vor.u32 1.1754944e-38, %v887_v52 }
 0x50f   : > { %v879_v59 = vmul.f32 %v2883_v12, %v878_v49  ;;  %v1130_v62 = vpack.c.bf16 %v1129_v30, %v1114_v44 }
 0x511   : > { %v880_v55 = vadd.f32 %v2883_v12, %v879_v59  ;;  %2660 = vmatmul.msk.bf16.vlgmr.msrb.gmra.mxu0 %vm677_vm1, %v1130_v62 }
 0x512   : > { %1465 = vmatpush.bf16.xpose.msrb.mxu0 %v3657_v24 }
 0x513   : > { %v884_v38 = vsel %vm883_vm0, %v2883_v12, %v880_v55 }
 0x514   : > { %v889_v42 = vsel %vm886_vm5, %v888_v5, %v884_v38 }
 0x515   : > { %v890_v43 = vmul.f32 %v3705_v20, %v889_v42 }
 0x517   : > { %v891_v48 = vpack.c.bf16 %v890_v43, %v875_v46 }
 0x519   : > { %2662 = vmatmul.msk.bf16.vlgmr.msrb.gmra.mxu2 %vm677_vm1, %v891_v48 }
 0x51a   : > { %1556 = vmatpush.bf16.xpose.msrb.mxu2 %v3657_v24 }
 0x521   : > { %2664 = vmatmul.msk.bf16.vlgmr.msra.gmra.mxu0 %vm571_vm4, %v4158_v29 }
 0x522   : > { %1701 = vmatpush.bf16.msra.mxu0 %v4159_v40 }
 0x531   : > { %2668 = vmatmul.msk.bf16.vlgmr.msrb.gmra.mxu0 %vm571_vm4, %v4160_v17  ;;  %v4161_v17 = vpack.c.bf16 %v3536_v18, %v3532_v63  ;;  %v4163_v63 = vpack.c.bf16 %v3554_v53, %v3549_v39 }
 0x551   : > { %v1022_v9 = vpop.xlane.xlu0 %1021 }
 0x552   : > { %2884 = vrcp.f32 %v1022_v9  ;;  %v1037_v10 = vand.u32 2147483648, %v1022_v9  ;;  %vm1031_vm7 = vweird.f32 %v1022_v9  ;;  %v1035_v15 = vand.u32 2147483647, %v1022_v9 }
 0x554   : > { %v1038_v7 = vor.u32 1.1754944e-38, %v1037_v10  ;;  %vm1036_vm8 = vcmp.eq.f32.partialorder %v1035_v15, 8.507059e+37 }
 0x558   : > { %v2885_v20 = vpop.eup %2884 }
 0x559   : > { %v1027_v60 = vmul.f32 %v2885_v20, %v1022_v9  ;;  %v1025_v6 = vpop.xlane.xlu2 %1024  ;;  %vm1032_vm6 = vweird.f32 %v2885_v20 }
 0x55a   : > { %2886 = vrcp.f32 %v1025_v6  ;;  %vm1033_vm2 = vmor %vm1031_vm7, %vm1032_vm6  ;;  %v1052_v4 = vand.u32 2147483648, %v1025_v6  ;;  %v1050_v32 = vand.u32 2147483647, %v1025_v6  ;;  %vm1046_vm9 = vweird.f32 %v1025_v6 }
 0x55b   : > { %v1028_v36 = vsub.f32 1.0, %v1027_v60  ;;  %v4162_v60 = vpack.c.bf16 %v3546_v23, %v3539_v19  ;;  %v4165_v23 = vpack.c.bf16 %v3572_v33, %v3568_v31 }
 0x55c   : > { %v1053_v44 = vor.u32 1.1754944e-38, %v1052_v4  ;;  %vm1051_vm11 = vcmp.eq.f32.partialorder %v1050_v32, 8.507059e+37 }
 0x55d   : > { %v1029_v12 = vmul.f32 %v2885_v20, %v1028_v36 }
 0x55f   : > { %v1030_v14 = vadd.f32 %v2885_v20, %v1029_v12 }
 0x560   : > { %v2887_v11 = vpop.eup %2886 }
 0x561   : > { %v1042_v34 = vmul.f32 %v2887_v11, %v1025_v6  ;;  %v1034_v16 = vsel %vm1033_vm2, %v2885_v20, %v1030_v14  ;;  %vm1047_vm3 = vweird.f32 %v2887_v11 }
 0x562   : > { %v1039_v47 = vsel %vm1036_vm8, %v1038_v7, %v1034_v16  ;;  %vm1048_vm10 = vmor %vm1046_vm9, %vm1047_vm3 }
 0x563   : > { %v1043_v3 = vsub.f32 1.0, %v1042_v34  ;;  %v1040_v49 = vmul.f32 %v3709_v1, %v1039_v47  ;;  %v4164_v34 = vpack.c.bf16 %v3562_v26, %v3558_v25 }
 0x565   : > { %v1044_v28 = vmul.f32 %v2887_v11, %v1043_v3 }
 0x567   : > { %v1045_v56 = vadd.f32 %v2887_v11, %v1044_v28 }
 0x569   : > { %v1049_v35 = vsel %vm1048_vm10, %v2887_v11, %v1045_v56 }
 0x56a   : > { %v1054_v13 = vsel %vm1051_vm11, %v1053_v44, %v1049_v35 }
 0x56b   : > { %v1323_v30 = vpop.xlane.xlu0 %1322  ;;  %v1055_v50 = vmul.f32 %v3713_v61, %v1054_v13 }
 0x56c   : > { %2888 = vrcp.f32 %v1323_v30  ;;  %v1338_v42 = vand.u32 2147483648, %v1323_v30  ;;  %vm1332_vm13 = vweird.f32 %v1323_v30  ;;  %v1336_v1 = vand.u32 2147483647, %v1323_v30 }
 0x56d   : > { %v1056_v52 = vpack.c.bf16 %v1055_v50, %v1040_v49 }
 0x56e   : > { %v1339_v29 = vor.u32 1.1754944e-38, %v1338_v42  ;;  %vm1337_vm0 = vcmp.eq.f32.partialorder %v1336_v1, 8.507059e+37 }
 0x56f   : > { %2663 = vmatmul.msk.bf16.vlgmr.msrb.gmra.mxu3 %vm677_vm1, %v1056_v52 }
 0x570   : > { %1630 = vmatpush.bf16.xpose.msrb.mxu3 %v3657_v24 }
 0x572   : > { %v2889_v59 = vpop.eup %2888 }
 0x573   : > { %v1326_v41 = vpop.xlane.xlu2 %1325  ;;  %v1328_v62 = vmul.f32 %v2889_v59, %v1323_v30  ;;  %vm1333_vm12 = vweird.f32 %v2889_v59 }
 0x574   : > { %2890 = vrcp.f32 %v1326_v41  ;;  %vm1334_vm14 = vmor %vm1332_vm13, %vm1333_vm12  ;;  %v1353_v46 = vand.u32 2147483648, %v1326_v41  ;;  %v1351_v24 = vand.u32 2147483647, %v1326_v41  ;;  %vm1347_vm5 = vweird.f32 %v1326_v41 }
 0x575   : > { %v1329_v45 = vsub.f32 1.0, %v1328_v62 }
 0x576   : > { %v1354_v20 = vor.u32 1.1754944e-38, %v1353_v46  ;;  %vm1352_vm7 = vcmp.eq.f32.partialorder %v1351_v24, 8.507059e+37 }
 0x577   : > { %v1330_v55 = vmul.f32 %v2889_v59, %v1329_v45 }
 0x579   : > { %v1331_v5 = vadd.f32 %v2889_v59, %v1330_v55 }
 0x57a   : > { %v2891_v27 = vpop.eup %2890 }
 0x57b   : > { %v1343_v38 = vmul.f32 %v2891_v27, %v1326_v41  ;;  %v1335_v43 = vsel %vm1334_vm14, %v2889_v59, %v1331_v5  ;;  %vm1348_vm15 = vweird.f32 %v2891_v27 }
 0x57c   : > { %v1340_v9 = vsel %vm1337_vm0, %v1339_v29, %v1335_v43  ;;  %vm1349_vm6 = vmor %vm1347_vm5, %vm1348_vm15 }
 0x57d   : > { %v1344_v61 = vsub.f32 1.0, %v1343_v38  ;;  %v1341_v12 = vmul.f32 %v3720_v2, %v1340_v9 }
 0x57f   : > { %v1345_v48 = vmul.f32 %v2891_v27, %v1344_v61  ;;  %2667 = vmatmul.msk.bf16.vlgmr.msra.gmra.mxu3 %vm571_vm4, %v4161_v17 }
 0x580   : > { %1752 = vmatpush.bf16.msra.mxu3 %v4162_v60 }
 0x581   : > { %v1346_v40 = vadd.f32 %v2891_v27, %v1345_v48 }
 0x583   : > { %v1350_v6 = vsel %vm1349_vm6, %v2891_v27, %v1346_v40 }
 0x584   : > { %v1355_v36 = vsel %vm1352_vm7, %v1354_v20, %v1350_v6 }
 0x585   : > { %v1356_v11 = vmul.f32 %v3724_v37, %v1355_v36 }
 0x587   : > { %v1357_v14 = vpack.c.bf16 %v1356_v11, %v1341_v12 }
 0x589   : > { %2666 = vmatmul.msk.bf16.vlgmr.msra.gmra.mxu2 %vm677_vm1, %v1357_v14 }
 0x58a   : > { %1735 = vmatpush.bf16.msra.mxu2 %v4163_v63 }
 0x58e   : > { %v1146_v18 = vpop.f32.mrf.mxu0 }
 0x58f   : > { %2671 = vmatmul.msk.bf16.vlgmr.msrb.gmra.mxu3 %vm571_vm4, %v4164_v34 }
 0x596   : > { %v1148_v19 = vpop.f32.mrf.mxu0 }
 0x599   : > { %2670 = vmatmul.msk.bf16.vlgmr.msrb.gmra.mxu2 %vm571_vm4, %v4165_v23 }
 0x59c   : > { %v1180_v2 = vpop.f32.mrf.mxu2 }
 0x59d   : > { %v1181_v37 = vadd.f32 %v1180_v2, %v3677_v54 }
 0x59e   : > { %v1228_v10 = vpop.f32.mrf.mxu0 }
 0x59f   : > { %v1202_v15 = vadd.f32 %v1181_v37, %v3683_v8  ;;  %v1233_v25 = vmul.f32 0.31622776, %v1228_v10 }
 0x5a1   : > { %v1235_v28 = vsel %vm677_vm1, %v1233_v25, -inf }
 0x5a4   : > { %v1182_v32 = vpop.f32.mrf.mxu2 }
 0x5a5   : > { %v1183_v8 = vadd.f32 %v1182_v32, %v3679_v51 }
 0x5a6   : > { %v1230_v39 = vpop.f32.mrf.mxu0 }
 0x5a7   : > { %v1203_v47 = vadd.f32 %v1183_v8, %v3689_v0  ;;  %v1234_v1 = vmul.f32 0.31622776, %v1230_v39 }
 0x5a9   : > { %v1238_v29 = vsel %vm677_vm1, %v1234_v1, -inf }
 0x5ae   : > { %v1467_v53 = vpop.f32.mrf.mxu0 }
 0x5af   : > { %v1472_v3 = vmul.f32 0.31622776, %v1467_v53 }
 0x5b1   : > { %v1474_v4 = vsel %vm677_vm1, %v1472_v3, -inf }
 0x5b2   : > { %1475 = vmax.xlane.f32.xlu0 %v1474_v4 }
 0x5b6   : > { %v1469_v26 = vpop.f32.mrf.mxu0 }
 0x5b7   : > { %v1473_v16 = vmul.f32 0.31622776, %v1469_v26 }
 0x5b9   : > { %v1477_v31 = vsel %vm677_vm1, %v1473_v16, -inf }
 0x5ba   : > { %1236 = vmax.xlane.f32.xlu0 %v1235_v28  ;;  %1478 = vmax.xlane.f32.xlu1 %v1477_v31 }
 0x5f2   : > { %v1197_v33 = vpop.f32.mrf.mxu3 }
 0x5f3   : > { %v1198_v54 = vadd.f32 %v1197_v33, %v1146_v18 }
 0x5f5   : > { %v3787_v7 = vadd.f32 %v1202_v15, %v1198_v54 }
 0x5fa   : > { %v1199_v56 = vpop.f32.mrf.mxu3 }
 0x5fb   : > { %v1200_v44 = vadd.f32 %v1199_v56, %v1148_v19 }
 0x5fd   : > { %v3791_v35 = vadd.f32 %v1203_v47, %v1200_v44 }
 0x5ff   : > { %v1764_v13 = vpack.c.bf16 %v3791_v35, %v3787_v7 }
 0x602   : > { %v1393_v30 = vpop.f32.mrf.mxu3 }
 0x603   : > { %v1398_v49 = vmul.f32 0.31622776, %v1393_v30 }
 0x605   : > { %v1400_v50 = vsel %vm677_vm1, %v1398_v49, -inf }
 0x606   : > { %1401 = vmax.xlane.f32.xlu2 %v1400_v50 }
 0x60a   : > { %v1395_v52 = vpop.f32.mrf.mxu3 }
 0x60b   : > { %v1399_v41 = vmul.f32 0.31622776, %v1395_v52 }
 0x60c   : > { %v3796_v59 = vpop.f32.mrf.mxu2 }
 0x60d   : > { %v1403_v51 = vsel %vm677_vm1, %v1399_v41, -inf }
 0x60e   : > { %1404 = vmax.xlane.f32.xlu0 %v1403_v51 }
 0x612   : > { %v1632_v62 = vpop.f32.mrf.mxu3 }
 0x613   : > { %v1637_v17 = vmul.f32 0.31622776, %v1632_v62 }
 0x614   : > { %v3799_v0 = vpop.f32.mrf.mxu2 }
 0x615   : > { %v1639_v36 = vsel %vm677_vm1, %v1637_v17, -inf }
 0x61a   : > { %v1634_v45 = vpop.f32.mrf.mxu3 }
 0x61b   : > { %v1638_v27 = vmul.f32 0.31622776, %v1634_v45 }
 0x61c   : > { %v1558_v55 = vpop.f32.mrf.mxu2 }
 0x61d   : > { %v1563_v5 = vmul.f32 0.31622776, %v1558_v55  ;;  %v1642_v38 = vsel %vm677_vm1, %v1638_v27, -inf }
 0x61e   : > { %1643 = vmax.xlane.f32.xlu0 %v1642_v38 }
 0x61f   : > { %v1565_v42 = vsel %vm677_vm1, %v1563_v5, -inf }
 0x620   : > { %1566 = vmax.xlane.f32.xlu1 %v1565_v42 }
 0x624   : > { %v1560_v61 = vpop.f32.mrf.mxu2 }
 0x625   : > { %v1564_v46 = vmul.f32 0.31622776, %v1560_v61  ;;  %v1476_v43 = vpop.xlane.xlu0 %1475 }
 0x626   : > { %v1480_v48 = vsub.f32 %v1472_v3, %v1476_v43 }
 0x627   : > { %v1568_v24 = vsel %vm677_vm1, %v1564_v46, -inf }
 0x628   : > { %v1482_v40 = vmul.f32 1.442695, %v1480_v48  ;;  %1569 = vmax.xlane.f32.xlu2 %v1568_v24  ;;  %1239 = vmax.xlane.f32.xlu1 %v1238_v29 }
 0x62a   : > { %2892 = vpow2.f32 %v1482_v40 }
 0x62d   : > { %v1237_v9 = vpop.xlane.xlu0 %1236  ;;  %v1479_v20 = vpop.xlane.xlu1 %1478 }
 0x62e   : > { %v1241_v60 = vsub.f32 %v1233_v25, %v1237_v9  ;;  %v1481_v6 = vsub.f32 %v1473_v16, %v1479_v20 }
 0x630   : > { %v3806_v12 = vpop.eup %2892  ;;  %v1243_v11 = vmul.f32 1.442695, %v1241_v60  ;;  %v1484_v14 = vmul.f32 1.442695, %v1481_v6  ;;  %1640 = vmax.xlane.f32.xlu2 %v1639_v36 }
 0x631   : > { %v1486_v63 = vsel %vm677_vm1, %v3806_v12, 0.0 }
 0x632   : > { %2894 = vpow2.f32 %v1243_v11  ;;  %1487 = vadd.xlane.f32.xlu1 %v1486_v63 }
 0x633   : > { %2896 = vpow2.f32 %v1484_v14 }
 0x638   : > { %v3810_v18 = vpop.eup %2894 }
 0x639   : > { %v3812_v34 = vpop.eup %2896  ;;  %v1247_v19 = vsel %vm677_vm1, %v3810_v18, 0.0 }
 0x63a   : > { %v1489_v23 = vsel %vm677_vm1, %v3812_v34, 0.0  ;;  %1248 = vadd.xlane.f32.xlu1 %v1247_v19 }
 0x63b   : > { %1490 = vadd.xlane.f32.xlu2 %v1489_v23 }
 0x679   : > { %v1402_v2 = vpop.xlane.xlu2 %1401 }
 0x67a   : > { %v1406_v37 = vsub.f32 %v1398_v49, %v1402_v2 }
 0x67c   : > { %v1408_v10 = vmul.f32 1.442695, %v1406_v37 }
 0x67e   : > { %2898 = vpow2.f32 %v1408_v10 }
 0x681   : > { %v1405_v15 = vpop.xlane.xlu0 %1404 }
 0x682   : > { %v1407_v39 = vsub.f32 %v1399_v41, %v1405_v15 }
 0x684   : > { %v3818_v53 = vpop.eup %2898  ;;  %v1410_v3 = vmul.f32 1.442695, %v1407_v39 }
 0x685   : > { %v1412_v4 = vsel %vm677_vm1, %v3818_v53, 0.0 }
 0x686   : > { %2900 = vpow2.f32 %v1410_v3  ;;  %1413 = vadd.xlane.f32.xlu0 %v1412_v4 }
 0x68c   : > { %v3822_v25 = vpop.eup %2900 }
 0x68d   : > { %v1415_v26 = vsel %vm677_vm1, %v3822_v25, 0.0 }
 0x68e   : > { %1416 = vadd.xlane.f32.xlu1 %v1415_v26 }
 0x691   : > { %v1644_v16 = vpop.xlane.xlu0 %1643 }
 0x692   : > { %v1646_v31 = vsub.f32 %v1638_v27, %v1644_v16 }
 0x693   : > { %v1567_v28 = vpop.xlane.xlu1 %1566 }
 0x694   : > { %v1571_v33 = vsub.f32 %v1563_v5, %v1567_v28  ;;  %v1649_v54 = vmul.f32 1.442695, %v1646_v31 }
 0x696   : > { %v1573_v32 = vmul.f32 1.442695, %v1571_v33  ;;  %2902 = vpow2.f32 %v1649_v54 }
 0x698   : > { %2904 = vpow2.f32 %v1573_v32 }
 0x69b   : > { %v1570_v8 = vpop.xlane.xlu2 %1569  ;;  %v1240_v56 = vpop.xlane.xlu1 %1239 }
 0x69c   : > { %v1572_v47 = vsub.f32 %v1564_v46, %v1570_v8  ;;  %v1242_v44 = vsub.f32 %v1234_v1, %v1240_v56  ;;  %v3826_v30 = vpop.eup %2902 }
 0x69d   : > { %v1654_v41 = vsel %vm677_vm1, %v3826_v30, 0.0 }
 0x69e   : > { %v1575_v49 = vmul.f32 1.442695, %v1572_v47  ;;  %v1245_v50 = vmul.f32 1.442695, %v1242_v44  ;;  %v3828_v52 = vpop.eup %2904  ;;  %1655 = vadd.xlane.f32.xlu1 %v1654_v41 }
 0x69f   : > { %v1577_v51 = vsel %vm677_vm1, %v3828_v52, 0.0 }
 0x6a0   : > { %2906 = vpow2.f32 %v1575_v49  ;;  %1578 = vadd.xlane.f32.xlu2 %v1577_v51 }
 0x6a1   : > { %2908 = vpow2.f32 %v1245_v50 }
 0x6a3   : > { %v1641_v62 = vpop.xlane.xlu2 %1640 }
 0x6a4   : > { %v1645_v45 = vsub.f32 %v1637_v17, %v1641_v62 }
 0x6a5   : > { %v1488_v55 = vpop.xlane.xlu1 %1487 }
 0x6a6   : > { %v3834_v27 = vpop.eup %2906  ;;  %v1647_v5 = vmul.f32 1.442695, %v1645_v45  ;;  %2910 = vrcp.f32 %v1488_v55  ;;  %v1503_v60 = vand.u32 2147483648, %v1488_v55  ;;  %vm1497_vm3 = vweird.f32 %v1488_v55 }
 0x6a7   : > { %v3836_v38 = vpop.eup %2908  ;;  %v1580_v42 = vsel %vm677_vm1, %v3834_v27, 0.0  ;;  %v1501_v6 = vand.u32 2147483647, %v1488_v55 }
 0x6a8   : > { %2912 = vpow2.f32 %v1647_v5  ;;  %1581 = vadd.xlane.f32.xlu0 %v1580_v42  ;;  %v1250_v1 = vsel %vm677_vm1, %v3836_v38, 0.0  ;;  %v1504_v23 = vor.u32 1.1754944e-38, %v1503_v60 }
 0x6a9   : > { %1251 = vadd.xlane.f32.xlu2 %v1250_v1  ;;  %vm1502_vm10 = vcmp.eq.f32.partialorder %v1501_v6, 8.507059e+37  ;;  %v2765_v6 = vld [vmem:[%s4138_s4 + $0x18] sm:$0xff] }
 0x6aa   : > { %1808 = vmatpush.bf16.msrb.mxu0 %v2765_v6 }
 0x6ac   : > { %v2911_v61 = vpop.eup %2910 }
 0x6ad   : > { %v1493_v46 = vmul.f32 %v2911_v61, %v1488_v55  ;;  %vm1498_vm2 = vweird.f32 %v2911_v61  ;;  %v3849_v16 = vpop.xlane.xlu1 %1248 }
 0x6ae   : > { %v3842_v43 = vpop.eup %2912  ;;  %v1491_v48 = vpop.xlane.xlu2 %1490  ;;  %vm1499_vm8 = vmor %vm1497_vm3, %vm1498_vm2 }
 0x6af   : > { %v1494_v24 = vsub.f32 1.0, %v1493_v46  ;;  %2914 = vrcp.f32 %v1491_v48  ;;  %v1651_v29 = vsel %vm677_vm1, %v3842_v43, 0.0  ;;  %v1518_v11 = vand.u32 2147483648, %v1491_v48 }
 0x6b0   : > { %1652 = vadd.xlane.f32.xlu0 %v1651_v29  ;;  %v1516_v19 = vand.u32 2147483647, %v1491_v48  ;;  %vm1512_vm11 = vweird.f32 %v1491_v48 }
 0x6b1   : > { %v1495_v40 = vmul.f32 %v2911_v61, %v1494_v24  ;;  %v1519_v10 = vor.u32 1.1754944e-38, %v1518_v11 }
 0x6b2   : > { %vm1517_vm13 = vcmp.eq.f32.partialorder %v1516_v19, 8.507059e+37 }
 0x6b3   : > { %v1496_v9 = vadd.f32 %v2911_v61, %v1495_v40 }
 0x6b5   : > { %v2915_v17 = vpop.eup %2914  ;;  %v1500_v14 = vsel %vm1499_vm8, %v2911_v61, %v1496_v9 }
 0x6b6   : > { %v1508_v20 = vmul.f32 %v2915_v17, %v1491_v48  ;;  %vm1513_vm9 = vweird.f32 %v2915_v17  ;;  %v1505_v37 = vsel %vm1502_vm10, %v1504_v23, %v1500_v14  ;;  %v1262_v23 = vand.u32 2147483647, %v3849_v16 }
 0x6b7   : > { %vm1514_vm12 = vmor %vm1512_vm11, %vm1513_vm9  ;;  %v1506_v3 = vmul.f32 %v3806_v12, %v1505_v37  ;;  %vm1258_vm9 = vweird.f32 %v3849_v16 }
 0x6b8   : > { %v1509_v36 = vsub.f32 1.0, %v1508_v20  ;;  %vm1263_vm11 = vcmp.eq.f32.partialorder %v1262_v23, 8.507059e+37 }
 0x6ba   : > { %v1510_v63 = vmul.f32 %v2915_v17, %v1509_v36 }
 0x6bc   : > { %v1511_v2 = vadd.f32 %v2915_v17, %v1510_v63  ;;  %v2764_v63 = vld [vmem:[%s4138_s4 + $0x10] sm:$0xff] }
 0x6bd   : > { %1809 = vmatpush.bf16.msrb.mxu0 %v2764_v63 }
 0x6be   : > { %v1515_v15 = vsel %vm1514_vm12, %v2915_v17, %v1511_v2  ;;  %v1264_v2 = vand.u32 2147483648, %v3849_v16 }
 0x6bf   : > { %v1520_v39 = vsel %vm1517_vm13, %v1519_v10, %v1515_v15 }
 0x6c0   : > { %v1521_v4 = vmul.f32 %v3812_v34, %v1520_v39 }
 0x6c2   : > { %v1522_v26 = vpack.c.bf16 %v1521_v4, %v1506_v3  ;;  %v2763_v3 = vld [vmem:[%s4138_s4 + $0x8] sm:$0xff] }
 0x6c3   : > { %1810 = vmatpush.bf16.msrb.mxu0 %v2763_v3 }
 0x6c4   : > { %2669 = vmatmul.msk.bf16.vlgmr.msrb.gmra.mxu1 %vm677_vm1, %v1522_v26  ;;  %v1265_v26 = vor.u32 1.1754944e-38, %v1264_v2 }
 0x6f9   : > { %v1414_v28 = vpop.xlane.xlu0 %1413 }
 0x6fa   : > { %2916 = vrcp.f32 %v1414_v28  ;;  %v1429_v34 = vand.u32 2147483648, %v1414_v28  ;;  %vm1423_vm15 = vweird.f32 %v1414_v28  ;;  %v1427_v44 = vand.u32 2147483647, %v1414_v28 }
 0x6fc   : > { %v1430_v55 = vor.u32 1.1754944e-38, %v1429_v34  ;;  %vm1428_vm6 = vcmp.eq.f32.partialorder %v1427_v44, 8.507059e+37 }
 0x700   : > { %v2917_v31 = vpop.eup %2916 }
 0x701   : > { %v1419_v33 = vmul.f32 %v2917_v31, %v1414_v28  ;;  %v1417_v54 = vpop.xlane.xlu1 %1416  ;;  %vm1424_vm14 = vweird.f32 %v2917_v31 }
 0x702   : > { %2918 = vrcp.f32 %v1417_v54  ;;  %vm1425_vm0 = vmor %vm1423_vm15, %vm1424_vm14  ;;  %v1444_v41 = vand.u32 2147483648, %v1417_v54  ;;  %v1442_v45 = vand.u32 2147483647, %v1417_v54  ;;  %vm1438_vm7 = vweird.f32 %v1417_v54 }
 0x703   : > { %v1420_v32 = vsub.f32 1.0, %v1419_v33  ;;  %2920 = vrcp.f32 %v3849_v16 }
 0x704   : > { %v1445_v61 = vor.u32 1.1754944e-38, %v1444_v41  ;;  %vm1443_vm3 = vcmp.eq.f32.partialorder %v1442_v45, 8.507059e+37 }
 0x705   : > { %v1421_v8 = vmul.f32 %v2917_v31, %v1420_v32 }
 0x707   : > { %v1422_v47 = vadd.f32 %v2917_v31, %v1421_v8 }
 0x708   : > { %v2919_v56 = vpop.eup %2918 }
 0x709   : > { %v1434_v12 = vmul.f32 %v2919_v56, %v1417_v54  ;;  %v2921_v50 = vpop.eup %2920  ;;  %v1426_v51 = vsel %vm1425_vm0, %v2917_v31, %v1422_v47  ;;  %vm1439_vm5 = vweird.f32 %v2919_v56  ;;  %v2762_v47 = vld [vmem:[%s4138_s4] sm:$0xff] }
 0x70a   : > { %v1254_v5 = vmul.f32 %v2921_v50, %v3849_v16  ;;  %v1431_v1 = vsel %vm1428_vm6, %v1430_v55, %v1426_v51  ;;  %vm1440_vm2 = vmor %vm1438_vm7, %vm1439_vm5  ;;  %vm1259_vm8 = vweird.f32 %v2921_v50  ;;  %1811 = vmatpush.bf16.msrb.mxu0 %v2762_v47 }
 0x70b   : > { %v1435_v49 = vsub.f32 1.0, %v1434_v12  ;;  %v1432_v17 = vmul.f32 %v3818_v53, %v1431_v1  ;;  %vm1260_vm10 = vmor %vm1258_vm9, %vm1259_vm8 }
 0x70c   : > { %v1255_v40 = vsub.f32 1.0, %v1254_v5 }
 0x70d   : > { %v1436_v62 = vmul.f32 %v2919_v56, %v1435_v49 }
 0x70e   : > { %v1256_v60 = vmul.f32 %v2921_v50, %v1255_v40 }
 0x70f   : > { %v1437_v42 = vadd.f32 %v2919_v56, %v1436_v62 }
 0x710   : > { %v1257_v19 = vadd.f32 %v2921_v50, %v1256_v60 }
 0x711   : > { %v1441_v46 = vsel %vm1440_vm2, %v2919_v56, %v1437_v42  ;;  %v3853_v48 = vpop.xlane.xlu1 %1655 }
 0x712   : > { %v1446_v24 = vsel %vm1443_vm3, %v1445_v61, %v1441_v46  ;;  %v1261_v39 = vsel %vm1260_vm10, %v2921_v50, %v1257_v19  ;;  %vm1677_vm13 = vweird.f32 %v3853_v48  ;;  %v1681_v2 = vand.u32 2147483647, %v3853_v48 }
 0x713   : > { %v3855_v29 = vpop.xlane.xlu2 %1578  ;;  %v1447_v9 = vmul.f32 %v3822_v25, %v1446_v24  ;;  %v1266_v54 = vsel %vm1263_vm11, %v1265_v26, %v1261_v39 }
 0x714   : > { %2922 = vrcp.f32 %v3855_v29  ;;  %v1594_v32 = vand.u32 2147483648, %v3855_v29  ;;  %vm1588_vm14 = vweird.f32 %v3855_v29  ;;  %v1592_v12 = vand.u32 2147483647, %v3855_v29 }
 0x715   : > { %2924 = vrcp.f32 %v3853_v48  ;;  %v1448_v20 = vpack.c.bf16 %v1447_v9, %v1432_v17  ;;  %v1267_v19 = vmul.f32 %v3810_v18, %v1266_v54 }
 0x716   : > { %v1595_v5 = vor.u32 1.1754944e-38, %v1594_v32  ;;  %vm1593_vm7 = vcmp.eq.f32.partialorder %v1592_v12, 8.507059e+37 }
 0x717   : > { %2674 = vmatmul.msk.bf16.vlgmr.msra.gmra.mxu2 %vm677_vm1, %v1448_v20 }
 0x71a   : > { %v2923_v36 = vpop.eup %2922 }
 0x71b   : > { %v3865_v11 = vpop.xlane.xlu0 %1581  ;;  %v3867_v14 = vpop.eup %2924  ;;  %v1584_v53 = vmul.f32 %v2923_v36, %v3855_v29  ;;  %vm1589_vm12 = vweird.f32 %v2923_v36 }
 0x71c   : > { %2926 = vrcp.f32 %v3865_v11  ;;  %v3871_v25 = vpop.xlane.xlu2 %1251  ;;  %v1673_v10 = vmul.f32 %v3867_v14, %v3853_v48  ;;  %vm3897_vm15 = vmor %vm1588_vm14, %vm1589_vm12  ;;  %v1607_v49 = vand.u32 2147483647, %v3865_v11  ;;  %v1609_v50 = vand.u32 2147483648, %v3865_v11 }
 0x71d   : > { %2928 = vrcp.f32 %v3871_v25  ;;  %v1585_v37 = vsub.f32 1.0, %v1584_v53  ;;  %v1279_v51 = vand.u32 2147483648, %v3871_v25  ;;  %v1277_v1 = vand.u32 2147483647, %v3871_v25 }
 0x71e   : > { %v1674_v31 = vsub.f32 1.0, %v1673_v10  ;;  %vm1678_vm6 = vweird.f32 %v3867_v14  ;;  %vm1603_vm2 = vweird.f32 %v3865_v11  ;;  %v1610_v24 = vor.u32 1.1754944e-38, %v1609_v50 }
 0x71f   : > { %v1586_v15 = vmul.f32 %v2923_v36, %v1585_v37  ;;  %vm1273_vm8 = vweird.f32 %v3871_v25  ;;  %vm1608_vm9 = vcmp.eq.f32.partialorder %v1607_v49, 8.507059e+37  ;;  %v1280_v20 = vor.u32 1.1754944e-38, %v1279_v51  ;;  %vm3922_vm12 = vmor %vm1677_vm13, %vm1678_vm6 }
 0x720   : > { %v1675_v62 = vmul.f32 %v3867_v14, %v1674_v31  ;;  %vm1278_vm11 = vcmp.eq.f32.partialorder %v1277_v1, 8.507059e+37  ;;  %vm1682_vm13 = vcmp.eq.f32.partialorder %v1681_v2, 8.507059e+37 }
 0x721   : > { %v1587_v33 = vadd.f32 %v2923_v36, %v1586_v15 }
 0x722   : > { %v2927_v4 = vpop.eup %2926  ;;  %v1676_v17 = vadd.f32 %v3867_v14, %v1675_v62 }
 0x723   : > { %v2929_v28 = vpop.eup %2928  ;;  %v1599_v16 = vmul.f32 %v2927_v4, %v3865_v11  ;;  %v3888_v56 = vpop.xlane.xlu0 %1652  ;;  %v1591_v45 = vsel %vm3897_vm15, %v2923_v36, %v1587_v33  ;;  %vm1604_vm0 = vweird.f32 %v2927_v4  ;;  %v1683_v11 = vand.u32 2147483648, %v3853_v48 }
 0x724   : > { %v1269_v8 = vmul.f32 %v2929_v28, %v3871_v25  ;;  %2930 = vrcp.f32 %v3888_v56  ;;  %vm1274_vm5 = vweird.f32 %v2929_v28  ;;  %v1596_v46 = vsel %vm1593_vm7, %v1595_v5, %v1591_v45  ;;  %vm1605_vm3 = vmor %vm1603_vm2, %vm1604_vm0 }
 0x725   : > { %v1600_v34 = vsub.f32 1.0, %v1599_v16  ;;  %vm1275_vm10 = vmor %vm1273_vm8, %vm1274_vm5  ;;  %v1597_v53 = vmul.f32 %v3828_v52, %v1596_v46  ;;  %v1680_v52 = vsel %vm3922_vm12, %v3867_v14, %v1676_v17  ;;  %v1666_v39 = vand.u32 2147483647, %v3888_v56 }
 0x726   : > { %v1270_v41 = vsub.f32 1.0, %v1269_v8  ;;  %vm1662_vm15 = vweird.f32 %v3888_v56  ;;  %v3118_v17 = vmov 64.0  }
 0x727   : > { %v1601_v55 = vmul.f32 %v2927_v4, %v1600_v34  ;;  %vm1667_vm5 = vcmp.eq.f32.partialorder %v1666_v39, 8.507059e+37  ;;  %2932 = vrcp.f32 %v3118_v17 }
 0x728   : > { %v1271_v42 = vmul.f32 %v2929_v28, %v1270_v41 }
 0x729   : > { %v1602_v61 = vadd.f32 %v2927_v4, %v1601_v55 }
 0x72a   : > { %v1272_v29 = vadd.f32 %v2929_v28, %v1271_v42  ;;  %v2931_v40 = vpop.eup %2930  ;;  %v1763_v42 = vld [vmem:[#allocation7 + $0x1] ss:$0 sm:$0xff] }
 0x72b   : > { %v1606_v9 = vsel %vm1605_vm3, %v2927_v4, %v1602_v61  ;;  %v1658_v36 = vmul.f32 %v2931_v40, %v3888_v56  ;;  %vm1663_vm14 = vweird.f32 %v2931_v40  ;;  %v1684_v4 = vor.u32 1.1754944e-38, %v1683_v11 }
 0x72c   : > { %v1611_v60 = vsel %vm1608_vm9, %v1610_v24, %v1606_v9  ;;  %v1276_v6 = vsel %vm1275_vm10, %v2929_v28, %v1272_v29  ;;  %vm1664_vm0 = vmor %vm1662_vm15, %vm1663_vm14 }
 0x72d   : > { %v1612_v63 = vmul.f32 %v3834_v27, %v1611_v60  ;;  %v1281_v25 = vsel %vm1278_vm11, %v1280_v20, %v1276_v6  ;;  %v1659_v10 = vsub.f32 1.0, %v1658_v36  ;;  %v1668_v27 = vand.u32 2147483648, %v3888_v56  ;;  %v2933_v9 = vpop.eup %2932 }
 0x72e   : > { %v1282_v37 = vmul.f32 %v3836_v38, %v1281_v25  ;;  %v1685_v38 = vsel %vm1682_vm13, %v1684_v4, %v1680_v52  ;;  %v1842_v20 = vmul.f32 64.0, %v2933_v9 }
 0x72f   : > { %v1613_v18 = vpack.c.bf16 %v1612_v63, %v1597_v53  ;;  %v1660_v15 = vmul.f32 %v2931_v40, %v1659_v10  ;;  %v1669_v14 = vor.u32 1.1754944e-38, %v1668_v27  ;;  %v1686_v31 = vmul.f32 %v3826_v30, %v1685_v38  ;;  %v2768_v38 = vld [vmem:[#allocation4 + $0x10] sm:$0xff] }
 0x730   : > { %v1283_v3 = vpack.c.bf16 %v1282_v37, %v1267_v19  ;;  %v1843_v60 = vsub.f32 1.0, %v1842_v20 }
 0x731   : > { %2675 = vmatmul.msk.bf16.vlgmr.msra.gmra.mxu3 %vm677_vm1, %v1613_v18  ;;  %v1661_v48 = vadd.f32 %v2931_v40, %v1660_v15 }
 0x732   : > { %2673 = vmatmul.msk.bf16.vlgmr.msra.gmra.mxu1 %vm677_vm1, %v1283_v3  ;;  %v1844_v6 = vmul.f32 %v2933_v9, %v1843_v60 }
 0x733   : > { %v1665_v26 = vsel %vm1664_vm0, %v2931_v40, %v1661_v48 }
 0x734   : > { %v1670_v28 = vsel %vm1667_vm5, %v1669_v14, %v1665_v26  ;;  %v1845_v36 = vadd.f32 %v2933_v9, %v1844_v6 }
 0x735   : > { %v1671_v33 = vmul.f32 %v3842_v43, %v1670_v28 }
 0x737   : > { %v1687_v16 = vpack.c.bf16 %v1686_v31, %v1671_v33 }
 0x739   : > { %2672 = vmatmul.msk.bf16.vlgmr.msra.gmra.mxu0 %vm677_vm1, %v1687_v16  ;;  %vm1846_vm1 = vweird.f32 %v2933_v9  ;;  %v2767_v16 = vld [vmem:[#allocation4 + $0x8] sm:$0xff] }
 0x73a   : > { %v3950_v11 = vsel %vm1846_vm1, %v2933_v9, %v1845_v36 }
 0x741   : > { %v1538_v54 = vpop.f32.mrf.mxu1 }
 0x749   : > { %2692 = vmatmul.msk.bf16.vlgmr.msrb.gmra.mxu0 %vm571_vm4, %v1764_v13  ;;  %v1540_v32 = vpop.f32.mrf.mxu1 }
 0x79a   : > { %v1737_v56 = vpop.f32.mrf.mxu2 }
 0x79b   : > { %v1738_v49 = vadd.f32 %v1737_v56, %v1538_v54 }
 0x7a2   : > { %v1739_v44 = vpop.f32.mrf.mxu2 }
 0x7a3   : > { %v1740_v50 = vadd.f32 %v1739_v44, %v1540_v32 }
 0x7af   : > { %v1720_v8 = vpop.f32.mrf.mxu1 }
 0x7b0   : > { %v1721_v30 = vadd.f32 %v1720_v8, %v3796_v59 }
 0x7b2   : > { %v1759_v7 = vadd.f32 %v1738_v49, %v1721_v30 }
 0x7b4   : > { %v1754_v47 = vpop.f32.mrf.mxu3 }
 0x7b6   : > { %v1703_v12 = vpop.f32.mrf.mxu0 }
 0x7b7   : > { %v1722_v34 = vpop.f32.mrf.mxu1  ;;  %v1755_v41 = vadd.f32 %v1754_v47, %v1703_v12 }
 0x7b8   : > { %v1723_v43 = vadd.f32 %v1722_v34, %v3799_v0 }
 0x7b9   : > { %v1761_v45 = vadd.f32 %v1759_v7, %v1755_v41 }
 0x7ba   : > { %v1760_v35 = vadd.f32 %v1740_v50, %v1723_v43 }
 0x7bc   : > { %v1756_v51 = vpop.f32.mrf.mxu3 }
 0x7be   : > { %v1705_v62 = vpop.f32.mrf.mxu0 }
 0x7bf   : > { %v1757_v13 = vadd.f32 %v1756_v51, %v1705_v62 }
 0x7c1   : > { %v1762_v55 = vadd.f32 %v1760_v35, %v1757_v13 }
 0x7c3   : > { %v1765_v5 = vpack.c.bf16 %v1762_v55, %v1761_v45 }
 0x7c5   : > { %2693 = vmatmul.msk.bf16.gmra.mxu0 %vm571_vm4, %v1765_v5 }
 0x7c6   : > { %v1813_v1 = vpop.f32.mrf.mxu0 }
 0x7c7   : > { %v1814_v61 = vadd.f32 %v1813_v1, %v1763_v42 }
 0x7c9   : > { %v1823_v59 = vadd.f32 %v1814_v61, %v3319_v57 }
 0x7cb   : > { %v1829_v0 = vsel %vm571_vm4, %v1823_v59, 0.0 }
 0x7cc   : > { %1830 = vadd.xlane.f32.xlu2 %v1829_v0 }
 0x7ce   : > { %v1815_v46 = vpop.f32.mrf.mxu0 }
 0x7cf   : > { %v1816_v24 = vadd.f32 %v1815_v46, %v1763_v42 }
 0x7d1   : > { %v1824_v29 = vadd.f32 %v1816_v24, %v3322_v58 }
 0x7d3   : > { %v1832_v40 = vsel %vm571_vm4, %v1824_v29, 0.0 }
 0x7d4   : > { %1833 = vadd.xlane.f32.xlu0 %v1832_v40  ;;  %v1828_v40 = vld [vmem:[#allocation7 + $0x3] ss:$0 sm:$0xff] }
 0x83f   : > { %v1831_v57 = vpop.xlane.xlu2 %1830 }
 0x840   : > { %v1848_v53 = vmul.f32 %v3950_v11, %v1831_v57 }
 0x842   : > { %v3953_v63 = vsub.f32 %v1823_v59, %v1848_v53  ;;  %v1818_v25 = vpop.f32.mrf.mxu0  ;;  %v1827_v59 = vld [vmem:[#allocation7 + $0x2] ss:$0 sm:$0xff] }
 0x843   : > { %v1819_v58 = vadd.f32 %v1818_v25, %v1763_v42 }
 0x844   : > { %v1856_v19 = vmul.f32 %v3953_v63, %v3953_v63 }
 0x845   : > { %v1825_v23 = vadd.f32 %v1819_v58, %v3431_v22  ;;  %v2769_v22 = vld [vmem:[#allocation4 + $0x18] sm:$0xff] }
 0x846   : > { %v1860_v2 = vsel %vm571_vm4, %v1856_v19, 0.0  ;;  %1977 = vmatpush.bf16.msrb.mxu1 %v2769_v22 }
 0x847   : > { %v1834_v37 = vpop.xlane.xlu0 %1833  ;;  %1861 = vadd.xlane.f32.xlu0 %v1860_v2  ;;  %v1835_v10 = vsel %vm571_vm4, %v1825_v23, 0.0 }
 0x848   : > { %v1849_v52 = vmul.f32 %v3950_v11, %v1834_v37  ;;  %1836 = vadd.xlane.f32.xlu1 %v1835_v10 }
 0x84a   : > { %v1853_v27 = vsub.f32 %v1824_v29, %v1849_v52  ;;  %v1820_v18 = vpop.f32.mrf.mxu0  ;;  %1978 = vmatpush.bf16.msrb.mxu1 %v2768_v38 }
 0x84b   : > { %v1821_v15 = vadd.f32 %v1820_v18, %v1763_v42 }
 0x84c   : > { %v1857_v39 = vmul.f32 %v1853_v27, %v1853_v27 }
 0x84d   : > { %v1826_v3 = vadd.f32 %v1821_v15, %v3428_v21  ;;  %v2766_v21 = vld [vmem:[#allocation4] sm:$0xff] }
 0x84e   : > { %v1863_v4 = vsel %vm571_vm4, %v1857_v39, 0.0  ;;  %1979 = vmatpush.bf16.msrb.mxu1 %v2767_v16  ;;  %v3997_v16 = vld [vmem:[#allocation7 + $0x4] ss:$0 sm:$0xff] }
 0x84f   : > { %v1838_v48 = vsel %vm571_vm4, %v1826_v3, 0.0 }
 0x850   : > { %1839 = vadd.xlane.f32.xlu2 %v1838_v48  ;;  %1864 = vadd.xlane.f32.xlu1 %v1863_v4 }
 0x852   : > { %1980 = vmatpush.bf16.msrb.mxu1 %v2766_v21 }
 0x8ba   : > { %v1862_v14 = vpop.xlane.xlu0 %1861 }
 0x8bb   : > { %v1872_v26 = vmul.f32 %v1862_v14, %v3950_v11  ;;  %v1837_v28 = vpop.xlane.xlu1 %1836 }
 0x8bc   : > { %v1850_v31 = vmul.f32 %v3950_v11, %v1837_v28 }
 0x8bd   : > { %v1876_v33 = vadd.f32 1e-05, %v1872_v26 }
 0x8be   : > { %v3966_v54 = vsub.f32 %v1825_v23, %v1850_v31 }
 0x8bf   : > { %2934 = vrsqrt.f32 %v1876_v33  ;;  %vm1886_vm7 = vweird.f32 %v1876_v33 }
 0x8c0   : > { %v1858_v32 = vmul.f32 %v3966_v54, %v3966_v54 }
 0x8c2   : > { %v1866_v8 = vsel %vm571_vm4, %v1858_v32, 0.0 }
 0x8c3   : > { %v1840_v56 = vpop.xlane.xlu2 %1839  ;;  %1867 = vadd.xlane.f32.xlu2 %v1866_v8  ;;  %v1865_v47 = vpop.xlane.xlu1 %1864 }
 0x8c4   : > { %v1851_v12 = vmul.f32 %v3950_v11, %v1840_v56  ;;  %v1873_v34 = vmul.f32 %v1865_v47, %v3950_v11 }
 0x8c5   : > { %v2935_v44 = vpop.eup %2934 }
 0x8c6   : > { %v1881_v30 = vmul.f32 %v2935_v44, %v1876_v33  ;;  %v3973_v43 = vsub.f32 %v1826_v3, %v1851_v12  ;;  %v1877_v49 = vadd.f32 1e-05, %v1873_v34  ;;  %vm1887_vm6 = vweird.f32 %v2935_v44 }
 0x8c7   : > { %vm1888_vm2 = vmor %vm1886_vm7, %vm1887_vm6 }
 0x8c8   : > { %v1882_v50 = vmul.f32 %v2935_v44, %v1881_v30  ;;  %2936 = vrsqrt.f32 %v1877_v49  ;;  %v1859_v41 = vmul.f32 %v3973_v43, %v3973_v43  ;;  %vm1896_vm8 = vweird.f32 %v1877_v49 }
 0x8ca   : > { %v1883_v51 = vmul.f32 0.5, %v1882_v50  ;;  %v1869_v62 = vsel %vm571_vm4, %v1859_v41, 0.0 }
 0x8cb   : > { %1870 = vadd.xlane.f32.xlu0 %v1869_v62 }
 0x8cc   : > { %v1884_v7 = vsub.f32 1.5, %v1883_v51 }
 0x8ce   : > { %v2937_v35 = vpop.eup %2936  ;;  %v1885_v13 = vmul.f32 %v2935_v44, %v1884_v7 }
 0x8cf   : > { %v1891_v45 = vmul.f32 %v2937_v35, %v1877_v49  ;;  %vm1897_vm3 = vweird.f32 %v2937_v35 }
 0x8d0   : > { %v1889_v5 = vsel %vm1888_vm2, %v2935_v44, %v1885_v13  ;;  %vm1898_vm9 = vmor %vm1896_vm8, %vm1897_vm3 }
 0x8d1   : > { %v1892_v55 = vmul.f32 %v2937_v35, %v1891_v45  ;;  %v1920_v61 = vmul.f32 %v1889_v5, %v3953_v63 }
 0x8d3   : > { %v1893_v42 = vmul.f32 0.5, %v1892_v55  ;;  %v1924_v24 = vmul.f32 %v1920_v61, %v1827_v59 }
 0x8d5   : > { %v1894_v1 = vsub.f32 1.5, %v1893_v42  ;;  %v3979_v9 = vadd.f32 %v1924_v24, %v1828_v40  ;;  %v2773_v42 = vld [vmem:[#allocation6 + $0x18] sm:$0xff] }
 0x8d6   : > { %2213 = vmatpush.bf16.msrb.mxu2 %v2773_v42 }
 0x8d7   : > { %v1895_v0 = vmul.f32 %v2937_v35, %v1894_v1 }
 0x8d9   : > { %v1899_v46 = vsel %vm1898_vm9, %v2937_v35, %v1895_v0 }
 0x8da   : > { %v1921_v29 = vmul.f32 %v1899_v46, %v1853_v27 }
 0x8dc   : > { %v1925_v17 = vmul.f32 %v1921_v29, %v1827_v59 }
 0x8de   : > { %v3981_v20 = vadd.f32 %v1925_v17, %v1828_v40 }
 0x8e0   : > { %v1932_v60 = vpack.c.bf16 %v3981_v20, %v3979_v9 }
 0x8e2   : > { %2710 = vmatmul.msk.bf16.vlgmr.msrb.gmra.mxu1 %vm571_vm4, %v1932_v60 }
 0x936   : > { %v1868_v6 = vpop.xlane.xlu2 %1867 }
 0x937   : > { %v1874_v36 = vmul.f32 %v1868_v6, %v3950_v11 }
 0x939   : > { %v1878_v57 = vadd.f32 1e-05, %v1874_v36 }
 0x93b   : > { %2938 = vrsqrt.f32 %v1878_v57  ;;  %vm1906_vm11 = vweird.f32 %v1878_v57 }
 0x93e   : > { %v1871_v53 = vpop.xlane.xlu0 %1870 }
 0x93f   : > { %v1875_v63 = vmul.f32 %v1871_v53, %v3950_v11 }
 0x941   : > { %v2939_v25 = vpop.eup %2938  ;;  %v1879_v58 = vadd.f32 1e-05, %v1875_v63  ;;  %v2771_v63 = vld [vmem:[#allocation6 + $0x8] sm:$0xff] }
 0x942   : > { %v1901_v19 = vmul.f32 %v2939_v25, %v1878_v57  ;;  %vm1907_vm10 = vweird.f32 %v2939_v25 }
 0x943   : > { %2940 = vrsqrt.f32 %v1879_v58  ;;  %vm1908_vm12 = vmor %vm1906_vm11, %vm1907_vm10  ;;  %vm1916_vm13 = vweird.f32 %v1879_v58 }
 0x944   : > { %v1902_v23 = vmul.f32 %v2939_v25, %v1901_v19 }
 0x946   : > { %v1903_v2 = vmul.f32 0.5, %v1902_v23 }
 0x948   : > { %v1904_v37 = vsub.f32 1.5, %v1903_v2  ;;  %v2770_v2 = vld [vmem:[#allocation6] sm:$0xff] }
 0x949   : > { %v2941_v10 = vpop.eup %2940 }
 0x94a   : > { %v1905_v52 = vmul.f32 %v2939_v25, %v1904_v37  ;;  %v1911_v27 = vmul.f32 %v2941_v10, %v1879_v58  ;;  %vm1917_vm14 = vweird.f32 %v2941_v10 }
 0x94b   : > { %vm1918_vm15 = vmor %vm1916_vm13, %vm1917_vm14 }
 0x94c   : > { %v1912_v18 = vmul.f32 %v2941_v10, %v1911_v27  ;;  %v1909_v15 = vsel %vm1908_vm12, %v2939_v25, %v1905_v52 }
 0x94d   : > { %v1922_v4 = vmul.f32 %v1909_v15, %v3966_v54 }
 0x94e   : > { %v1913_v39 = vmul.f32 0.5, %v1912_v18 }
 0x94f   : > { %v1926_v14 = vmul.f32 %v1922_v4, %v1827_v59 }
 0x950   : > { %v1914_v3 = vsub.f32 1.5, %v1913_v39 }
 0x951   : > { %v3990_v28 = vadd.f32 %v1926_v14, %v1828_v40 }
 0x952   : > { %v1915_v48 = vmul.f32 %v2941_v10, %v1914_v3 }
 0x954   : > { %v1919_v22 = vsel %vm1918_vm15, %v2941_v10, %v1915_v48 }
 0x955   : > { %v1923_v38 = vmul.f32 %v1919_v22, %v3973_v43 }
 0x957   : > { %v1927_v26 = vmul.f32 %v1923_v38, %v1827_v59 }
 0x959   : > { %v3992_v31 = vadd.f32 %v1927_v26, %v1828_v40  ;;  %v2772_v40 = vld [vmem:[#allocation6 + $0x10] sm:$0xff] }
 0x95a   : > { %2214 = vmatpush.bf16.msrb.mxu2 %v2772_v40 }
 0x95b   : > { %v1933_v33 = vpack.c.bf16 %v3992_v31, %v3990_v28 }
 0x95d   : > { %2711 = vmatmul.msk.bf16.gmra.mxu1 %vm571_vm4, %v1933_v33 }
 0x95e   : > { %2215 = vmatpush.bf16.msrb.mxu2 %v2771_v63 }
 0x95f   : > { %v1982_v54 = vpop.f32.mrf.mxu1 }
 0x960   : > { %v4000_v21 = vadd.f32 %v1982_v54, %v3997_v16 }
 0x962   : > { %v4003_v32 = vmul.f32 0.70710677, %v4000_v21  ;;  %2216 = vmatpush.bf16.msrb.mxu2 %v2770_v2 }
 0x964   : > { %v2000_v8 = vmul.f32 %v4003_v32, %v4003_v32 }
 0x966   : > { %v2001_v56 = vmin.f32 %v2000_v8, 16.0 }
 0x967   : > { %v1984_v47 = vpop.f32.mrf.mxu1 }
 0x968   : > { %v2002_v12 = vmul.f32 2.1237322e-06, %v2001_v56  ;;  %v2013_v34 = vmul.f32 3.8918573e-05, %v2001_v56  ;;  %v4008_v44 = vadd.f32 %v1984_v47, %v3997_v16 }
 0x96a   : > { %v2003_v30 = vadd.f32 0.00028619796, %v2002_v12  ;;  %v2014_v43 = vadd.f32 0.001143296, %v2013_v34  ;;  %v4011_v49 = vmul.f32 0.70710677, %v4008_v44 }
 0x96c   : > { %v2015_v50 = vmul.f32 %v2014_v43, %v2001_v56  ;;  %v2040_v41 = vmul.f32 %v4011_v49, %v4011_v49  ;;  %v2004_v51 = vmul.f32 %v2003_v30, %v2001_v56 }
 0x96e   : > { %v2016_v62 = vadd.f32 0.014752088, %v2015_v50  ;;  %v2041_v7 = vmin.f32 %v2040_v41, 16.0  ;;  %v2005_v55 = vadd.f32 0.0036580483, %v2004_v51 }
 0x970   : > { %v2017_v35 = vmul.f32 %v2016_v62, %v2001_v56  ;;  %v2042_v13 = vmul.f32 2.1237322e-06, %v2041_v7  ;;  %v2053_v45 = vmul.f32 3.8918573e-05, %v2041_v7  ;;  %v2006_v24 = vmul.f32 %v2005_v55, %v2001_v56 }
 0x972   : > { %v2018_v5 = vadd.f32 0.112945676, %v2017_v35  ;;  %v2043_v1 = vadd.f32 0.00028619796, %v2042_v13  ;;  %v2054_v61 = vadd.f32 0.001143296, %v2053_v45 }
 0x973   : > { %v2007_v57 = vadd.f32 0.05243302, %v2006_v24 }
 0x974   : > { %v2019_v59 = vmul.f32 %v2018_v5, %v2001_v56  ;;  %v2044_v0 = vmul.f32 %v2043_v1, %v2041_v7  ;;  %v2055_v46 = vmul.f32 %v2054_v61, %v2041_v7 }
 0x975   : > { %v2008_v23 = vmul.f32 %v2007_v57, %v2001_v56 }
 0x976   : > { %v2020_v29 = vadd.f32 0.4994258, %v2019_v59  ;;  %v2045_v17 = vadd.f32 0.0036580483, %v2044_v0  ;;  %v2056_v60 = vadd.f32 0.014752088, %v2055_v46 }
 0x977   : > { %v2009_v18 = vadd.f32 0.18741608, %v2008_v23  ;;  %v1992_v0 = vmul.f32 0.5, %v4000_v21  ;;  %v1993_v46 = vmul.f32 0.5, %v4008_v44 }
 0x978   : > { %v2021_v6 = vmul.f32 %v2020_v29, %v2001_v56  ;;  %v2057_v36 = vmul.f32 %v2056_v60, %v2041_v7  ;;  %v2046_v25 = vmul.f32 %v2045_v17, %v2041_v7 }
 0x979   : > { %v2010_v48 = vmul.f32 %v2009_v18, %v2001_v56 }
 0x97a   : > { %v2022_v53 = vadd.f32 1.0, %v2021_v6  ;;  %v2058_v58 = vadd.f32 0.112945676, %v2057_v36  ;;  %v2047_v37 = vadd.f32 0.05243302, %v2046_v25 }
 0x97b   : > { %v2011_v54 = vadd.f32 1.1283791, %v2010_v48 }
 0x97c   : > { %2942 = vrcp.f32 %v2022_v53  ;;  %v2059_v19 = vmul.f32 %v2058_v58, %v2041_v7  ;;  %v2048_v39 = vmul.f32 %v2047_v37, %v2041_v7  ;;  %v2034_v38 = vand.u32 2147483648, %v2022_v53 }
 0x97d   : > { %v2032_v26 = vand.u32 2147483647, %v2022_v53  ;;  %vm2028_vm5 = vweird.f32 %v2022_v53  ;;  %v2012_v50 = vmul.f32 %v2011_v54, %v4003_v32 }
 0x97e   : > { %v2060_v10 = vadd.f32 0.4994258, %v2059_v19  ;;  %v2049_v14 = vadd.f32 0.18741608, %v2048_v39  ;;  %v2035_v12 = vor.u32 1.1754944e-38, %v2034_v38 }
 0x97f   : > { %vm2033_vm6 = vcmp.eq.f32.partialorder %v2032_v26, 8.507059e+37 }
 0x980   : > { %v2061_v52 = vmul.f32 %v2060_v10, %v2041_v7  ;;  %v2050_v34 = vmul.f32 %v2049_v14, %v2041_v7 }
 0x982   : > { %v2943_v27 = vpop.eup %2942  ;;  %v2062_v3 = vadd.f32 1.0, %v2061_v52  ;;  %v2051_v56 = vadd.f32 1.1283791, %v2050_v34 }
 0x983   : > { %v2024_v15 = vmul.f32 %v2943_v27, %v2022_v53  ;;  %vm2029_vm0 = vweird.f32 %v2943_v27 }
 0x984   : > { %2944 = vrcp.f32 %v2062_v3  ;;  %vm2030_vm1 = vmor %vm2028_vm5, %vm2029_vm0  ;;  %v2074_v51 = vand.u32 2147483648, %v2062_v3  ;;  %v2072_v13 = vand.u32 2147483647, %v2062_v3  ;;  %vm2068_vm2 = vweird.f32 %v2062_v3 }
 0x985   : > { %v2025_v4 = vsub.f32 1.0, %v2024_v15  ;;  %v2052_v42 = vmul.f32 %v2051_v56, %v4011_v49 }
 0x986   : > { %v2075_v55 = vor.u32 1.1754944e-38, %v2074_v51  ;;  %vm2073_vm8 = vcmp.eq.f32.partialorder %v2072_v13, 8.507059e+37 }
 0x987   : > { %v2026_v22 = vmul.f32 %v2943_v27, %v2025_v4 }
 0x989   : > { %v2027_v33 = vadd.f32 %v2943_v27, %v2026_v22 }
 0x98a   : > { %v2945_v8 = vpop.eup %2944 }
 0x98b   : > { %v2031_v47 = vsel %vm2030_vm1, %v2943_v27, %v2027_v33  ;;  %v2064_v30 = vmul.f32 %v2945_v8, %v2062_v3  ;;  %vm2069_vm7 = vweird.f32 %v2945_v8 }
 0x98c   : > { %v2036_v43 = vsel %vm2033_vm6, %v2035_v12, %v2031_v47  ;;  %vm2070_vm3 = vmor %vm2068_vm2, %vm2069_vm7 }
 0x98d   : > { %v2065_v41 = vsub.f32 1.0, %v2064_v30  ;;  %v2037_v62 = vmul.f32 %v2036_v43, %v2012_v50 }
 0x98f   : > { %v2066_v35 = vmul.f32 %v2945_v8, %v2065_v41  ;;  %v2712_v5 = vclamps-f32 %v2037_v62, 1.0 }
 0x991   : > { %v2067_v45 = vadd.f32 %v2945_v8, %v2066_v35  ;;  %v2160_v59 = vadd.f32 1.0, %v2712_v5 }
 0x993   : > { %v2071_v7 = vsel %vm2070_vm3, %v2945_v8, %v2067_v45  ;;  %v2164_v29 = vmul.f32 %v2160_v59, %v1992_v0 }
 0x994   : > { %v2076_v1 = vsel %vm2073_vm8, %v2075_v55, %v2071_v7 }
 0x995   : > { %v2077_v61 = vmul.f32 %v2076_v1, %v2052_v42 }
 0x997   : > { %v2713_v32 = vclamps-f32 %v2077_v61, 1.0 }
 0x999   : > { %v2161_v24 = vadd.f32 1.0, %v2713_v32 }
 0x99b   : > { %v2165_v40 = vmul.f32 %v2161_v24, %v1993_v46 }
 0x99d   : > { %v2168_v17 = vpack.c.bf16 %v2165_v40, %v2164_v29 }
 0x99f   : > { %2732 = vmatmul.msk.bf16.vlgmr.msrb.gmra.mxu2 %vm571_vm4, %v2168_v17 }
 0x9da   : > { %v1987_v60 = vpop.f32.mrf.mxu1 }
 0x9db   : > { %v4021_v6 = vadd.f32 %v1987_v60, %v3997_v16 }
 0x9dd   : > { %v4024_v49 = vmul.f32 0.70710677, %v4021_v6 }
 0x9df   : > { %v2080_v36 = vmul.f32 %v4024_v49, %v4024_v49 }
 0x9e1   : > { %v2081_v57 = vmin.f32 %v2080_v36, 16.0 }
 0x9e2   : > { %v1989_v21 = vpop.f32.mrf.mxu1 }
 0x9e3   : > { %v2082_v53 = vmul.f32 2.1237322e-06, %v2081_v57  ;;  %v2093_v44 = vmul.f32 3.8918573e-05, %v2081_v57  ;;  %v4029_v63 = vadd.f32 %v1989_v21, %v3997_v16 }
 0x9e5   : > { %v2083_v25 = vadd.f32 0.00028619796, %v2082_v53  ;;  %v2094_v58 = vadd.f32 0.001143296, %v2093_v44  ;;  %v4032_v19 = vmul.f32 0.70710677, %v4029_v63 }
 0x9e7   : > { %v2095_v23 = vmul.f32 %v2094_v58, %v2081_v57  ;;  %v2120_v2 = vmul.f32 %v4032_v19, %v4032_v19  ;;  %v2084_v37 = vmul.f32 %v2083_v25, %v2081_v57 }
 0x9e9   : > { %v2096_v10 = vadd.f32 0.014752088, %v2095_v23  ;;  %v2121_v52 = vmin.f32 %v2120_v2, 16.0  ;;  %v2085_v39 = vadd.f32 0.0036580483, %v2084_v37 }
 0x9eb   : > { %v2097_v27 = vmul.f32 %v2096_v10, %v2081_v57  ;;  %v2122_v18 = vmul.f32 2.1237322e-06, %v2121_v52  ;;  %v2133_v15 = vmul.f32 3.8918573e-05, %v2121_v52  ;;  %v2086_v14 = vmul.f32 %v2085_v39, %v2081_v57 }
 0x9ed   : > { %v2098_v3 = vadd.f32 0.112945676, %v2097_v27  ;;  %v2123_v4 = vadd.f32 0.00028619796, %v2122_v18  ;;  %v2134_v16 = vadd.f32 0.001143296, %v2133_v15 }
 0x9ee   : > { %v2087_v12 = vadd.f32 0.05243302, %v2086_v14  ;;  %v2178_v14 = vld [vmem:[#allocation7 + $0x5] ss:$0 sm:$0xff] }
 0x9ef   : > { %v2099_v48 = vmul.f32 %v2098_v3, %v2081_v57  ;;  %v2124_v22 = vmul.f32 %v2123_v4, %v2121_v52  ;;  %v2135_v38 = vmul.f32 %v2134_v16, %v2121_v52  ;;  %v1994_v3 = vmul.f32 0.5, %v4021_v6 }
 0x9f0   : > { %v2088_v41 = vmul.f32 %v2087_v12, %v2081_v57  ;;  %v1995_v4 = vmul.f32 0.5, %v4029_v63 }
 0x9f1   : > { %v2100_v26 = vadd.f32 0.4994258, %v2099_v48  ;;  %v2125_v33 = vadd.f32 0.0036580483, %v2124_v22  ;;  %v2136_v54 = vadd.f32 0.014752088, %v2135_v38 }
 0x9f2   : > { %v2089_v13 = vadd.f32 0.18741608, %v2088_v41 }
 0x9f3   : > { %v2101_v8 = vmul.f32 %v2100_v26, %v2081_v57  ;;  %v2137_v47 = vmul.f32 %v2136_v54, %v2121_v52  ;;  %v2126_v30 = vmul.f32 %v2125_v33, %v2121_v52 }
 0x9f4   : > { %v2090_v7 = vmul.f32 %v2089_v13, %v2081_v57 }
 0x9f5   : > { %v2102_v34 = vadd.f32 1.0, %v2101_v8  ;;  %v2138_v43 = vadd.f32 0.112945676, %v2137_v47  ;;  %v2127_v56 = vadd.f32 0.05243302, %v2126_v30 }
 0x9f6   : > { %v2091_v46 = vadd.f32 1.1283791, %v2090_v7 }
 0x9f7   : > { %2946 = vrcp.f32 %v2102_v34  ;;  %v2139_v50 = vmul.f32 %v2138_v43, %v2121_v52  ;;  %v2128_v55 = vmul.f32 %v2127_v56, %v2121_v52  ;;  %v2114_v61 = vand.u32 2147483648, %v2102_v34 }
 0x9f8   : > { %v2112_v32 = vand.u32 2147483647, %v2102_v34  ;;  %vm2108_vm10 = vweird.f32 %v2102_v34  ;;  %v2092_v21 = vmul.f32 %v2091_v46, %v4024_v49 }
 0x9f9   : > { %v2140_v51 = vadd.f32 0.4994258, %v2139_v50  ;;  %v2129_v59 = vadd.f32 0.18741608, %v2128_v55  ;;  %v2115_v40 = vor.u32 1.1754944e-38, %v2114_v61 }
 0x9fa   : > { %vm2113_vm12 = vcmp.eq.f32.partialorder %v2112_v32, 8.507059e+37 }
 0x9fb   : > { %v2141_v62 = vmul.f32 %v2140_v51, %v2121_v52  ;;  %v2130_v17 = vmul.f32 %v2129_v59, %v2121_v52 }
 0x9fd   : > { %v2947_v35 = vpop.eup %2946  ;;  %v2142_v5 = vadd.f32 1.0, %v2141_v62  ;;  %v2131_v57 = vadd.f32 1.1283791, %v2130_v17 }
 0x9fe   : > { %v2104_v45 = vmul.f32 %v2947_v35, %v2102_v34  ;;  %vm2109_vm9 = vweird.f32 %v2947_v35 }
 0x9ff   : > { %2948 = vrcp.f32 %v2142_v5  ;;  %vm2110_vm11 = vmor %vm2108_vm10, %vm2109_vm9  ;;  %v2154_v44 = vand.u32 2147483648, %v2142_v5  ;;  %v2152_v23 = vand.u32 2147483647, %v2142_v5  ;;  %vm2148_vm13 = vweird.f32 %v2142_v5 }
 0xa00   : > { %v2105_v42 = vsub.f32 1.0, %v2104_v45  ;;  %v2132_v27 = vmul.f32 %v2131_v57, %v4032_v19 }
 0xa01   : > { %v2155_v37 = vor.u32 1.1754944e-38, %v2154_v44  ;;  %vm2153_vm0 = vcmp.eq.f32.partialorder %v2152_v23, 8.507059e+37 }
 0xa02   : > { %v2106_v1 = vmul.f32 %v2947_v35, %v2105_v42 }
 0xa04   : > { %v2107_v0 = vadd.f32 %v2947_v35, %v2106_v1 }
 0xa05   : > { %v2949_v24 = vpop.eup %2948 }
 0xa06   : > { %v2111_v29 = vsel %vm2110_vm11, %v2947_v35, %v2107_v0  ;;  %v2144_v60 = vmul.f32 %v2949_v24, %v2142_v5  ;;  %vm2149_vm14 = vweird.f32 %v2949_v24 }
 0xa07   : > { %v2116_v36 = vsel %vm2113_vm12, %v2115_v40, %v2111_v29  ;;  %vm2150_vm15 = vmor %vm2148_vm13, %vm2149_vm14 }
 0xa08   : > { %v2145_v53 = vsub.f32 1.0, %v2144_v60  ;;  %v2117_v25 = vmul.f32 %v2116_v36, %v2092_v21 }
 0xa0a   : > { %v2146_v58 = vmul.f32 %v2949_v24, %v2145_v53  ;;  %v2714_v10 = vclamps-f32 %v2117_v25, 1.0 }
 0xa0c   : > { %v2147_v2 = vadd.f32 %v2949_v24, %v2146_v58  ;;  %v2162_v39 = vadd.f32 1.0, %v2714_v10 }
 0xa0e   : > { %v2151_v52 = vsel %vm2150_vm15, %v2949_v24, %v2147_v2  ;;  %v2166_v48 = vmul.f32 %v2162_v39, %v1994_v3 }
 0xa0f   : > { %v2156_v18 = vsel %vm2153_vm0, %v2155_v37, %v2151_v52  ;;  %v4067_v52 = vld [vmem:[#allocation7 + $0x6] ss:$0 sm:$0xff] }
 0xa10   : > { %v2157_v15 = vmul.f32 %v2156_v18, %v2132_v27 }
 0xa12   : > { %v2715_v49 = vclamps-f32 %v2157_v15, 1.0 }
 0xa14   : > { %v2163_v16 = vadd.f32 1.0, %v2715_v49  ;;  %v2233_v49 = vld [vmem:[#allocation7 + $0x7] ss:$0 sm:$0xff] }
 0xa16   : > { %v2167_v22 = vmul.f32 %v2163_v16, %v1995_v4 }
 0xa18   : > { %v2169_v38 = vpack.c.bf16 %v2167_v22, %v2166_v48 }
 0xa1a   : > { %2733 = vmatmul.msk.bf16.gmra.mxu2 %vm571_vm4, %v2169_v38 }
 0xa22   : > { %v2218_v26 = vpop.f32.mrf.mxu2 }
 0xa23   : > { %v2219_v33 = vadd.f32 %v2218_v26, %v2178_v14 }
 0xa25   : > { %v2228_v19 = vadd.f32 %v2219_v33, %v3979_v9 }
 0xa27   : > { %v2234_v54 = vsel %vm571_vm4, %v2228_v19, 0.0 }
 0xa28   : > { %2235 = vadd.xlane.f32.xlu1 %v2234_v54 }
 0xa2a   : > { %v2220_v8 = vpop.f32.mrf.mxu2 }
 0xa2b   : > { %v2221_v47 = vadd.f32 %v2220_v8, %v2178_v14 }
 0xa2d   : > { %v2229_v6 = vadd.f32 %v2221_v47, %v3981_v20 }
 0xa2f   : > { %v2237_v63 = vsel %vm571_vm4, %v2229_v6, 0.0 }
 0xa30   : > { %2238 = vadd.xlane.f32.xlu2 %v2237_v63 }
 0xa9b   : > { %v2236_v12 = vpop.xlane.xlu1 %2235 }
 0xa9c   : > { %v2246_v34 = vmul.f32 %v2236_v12, %v3950_v11 }
 0xa9d   : > { %v2223_v30 = vpop.f32.mrf.mxu2 }
 0xa9e   : > { %v2250_v43 = vsub.f32 %v2228_v19, %v2246_v34  ;;  %v2224_v50 = vadd.f32 %v2223_v30, %v2178_v14 }
 0xaa0   : > { %v2230_v41 = vadd.f32 %v2224_v50, %v3990_v28  ;;  %v2254_v56 = vmul.f32 %v2250_v43, %v2250_v43 }
 0xaa2   : > { %v2240_v9 = vsel %vm571_vm4, %v2230_v41, 0.0  ;;  %v2258_v51 = vsel %vm571_vm4, %v2254_v56, 0.0 }
 0xaa3   : > { %2241 = vadd.xlane.f32.xlu0 %v2240_v9  ;;  %v2239_v62 = vpop.xlane.xlu2 %2238  ;;  %2259 = vadd.xlane.f32.xlu2 %v2258_v51 }
 0xaa4   : > { %v2247_v20 = vmul.f32 %v2239_v62, %v3950_v11 }
 0xaa5   : > { %v2225_v35 = vpop.f32.mrf.mxu2 }
 0xaa6   : > { %v2251_v13 = vsub.f32 %v2229_v6, %v2247_v20  ;;  %v2226_v45 = vadd.f32 %v2225_v35, %v2178_v14 }
 0xaa8   : > { %v2255_v55 = vmul.f32 %v2251_v13, %v2251_v13  ;;  %v2231_v5 = vadd.f32 %v2226_v45, %v3992_v31 }
 0xaaa   : > { %v2261_v42 = vsel %vm571_vm4, %v2255_v55, 0.0  ;;  %v2243_v28 = vsel %vm571_vm4, %v2231_v5, 0.0 }
 0xaab   : > { %2262 = vadd.xlane.f32.xlu0 %v2261_v42  ;;  %2244 = vadd.xlane.f32.xlu1 %v2243_v28 }
 0xb16   : > { %v2242_v7 = vpop.xlane.xlu0 %2241  ;;  %v2260_v1 = vpop.xlane.xlu2 %2259 }
 0xb17   : > { %v2248_v61 = vmul.f32 %v2242_v7, %v3950_v11  ;;  %v2270_v59 = vmul.f32 %v2260_v1, %v3950_v11 }
 0xb19   : > { %v4055_v32 = vsub.f32 %v2230_v41, %v2248_v61  ;;  %v2274_v0 = vadd.f32 1e-05, %v2270_v59 }
 0xb1b   : > { %2950 = vrsqrt.f32 %v2274_v0  ;;  %v2256_v46 = vmul.f32 %v4055_v32, %v4055_v32  ;;  %vm2284_vm1 = vweird.f32 %v2274_v0 }
 0xb1d   : > { %v2264_v31 = vsel %vm571_vm4, %v2256_v46, 0.0 }
 0xb1e   : > { %v2263_v24 = vpop.xlane.xlu0 %2262  ;;  %2265 = vadd.xlane.f32.xlu1 %v2264_v31  ;;  %v2245_v29 = vpop.xlane.xlu1 %2244 }
 0xb1f   : > { %v2271_v40 = vmul.f32 %v2263_v24, %v3950_v11  ;;  %v2249_v17 = vmul.f32 %v2245_v29, %v3950_v11 }
 0xb21   : > { %v2951_v60 = vpop.eup %2950  ;;  %v2275_v36 = vadd.f32 1e-05, %v2271_v40  ;;  %v4062_v21 = vsub.f32 %v2231_v5, %v2249_v17 }
 0xb22   : > { %v2279_v53 = vmul.f32 %v2951_v60, %v2274_v0  ;;  %vm2285_vm5 = vweird.f32 %v2951_v60 }
 0xb23   : > { %2952 = vrsqrt.f32 %v2275_v36  ;;  %v2257_v57 = vmul.f32 %v4062_v21, %v4062_v21  ;;  %vm2286_vm6 = vmor %vm2284_vm1, %vm2285_vm5  ;;  %vm2294_vm2 = vweird.f32 %v2275_v36 }
 0xb24   : > { %v2280_v44 = vmul.f32 %v2951_v60, %v2279_v53 }
 0xb25   : > { %v2267_v25 = vsel %vm571_vm4, %v2257_v57, 0.0  ;;  %v2777_v57 = vld [vmem:[%s4141_s7 + $0x18] sm:$0xff] }
 0xb26   : > { %v2281_v58 = vmul.f32 0.5, %v2280_v44  ;;  %2268 = vadd.xlane.f32.xlu2 %v2267_v25  ;;  %2473 = vmatpush.bf16.msrb.mxu3 %v2777_v57 }
 0xb28   : > { %v2282_v23 = vsub.f32 1.5, %v2281_v58 }
 0xb29   : > { %v2953_v2 = vpop.eup %2952 }
 0xb2a   : > { %v2283_v37 = vmul.f32 %v2951_v60, %v2282_v23  ;;  %v2289_v10 = vmul.f32 %v2953_v2, %v2275_v36  ;;  %vm2295_vm7 = vweird.f32 %v2953_v2 }
 0xb2b   : > { %vm2296_vm3 = vmor %vm2294_vm2, %vm2295_vm7 }
 0xb2c   : > { %v2290_v27 = vmul.f32 %v2953_v2, %v2289_v10  ;;  %v2287_v18 = vsel %vm2286_vm6, %v2951_v60, %v2283_v37 }
 0xb2d   : > { %v2318_v15 = vmul.f32 %v2287_v18, %v2250_v43 }
 0xb2e   : > { %v2291_v39 = vmul.f32 0.5, %v2290_v27  ;;  %v2774_v27 = vld [vmem:[%s4141_s7] sm:$0xff] }
 0xb2f   : > { %v2322_v3 = vmul.f32 %v2318_v15, %v4067_v52 }
 0xb30   : > { %v2292_v4 = vsub.f32 1.5, %v2291_v39 }
 0xb31   : > { %v2326_v16 = vadd.f32 %v2322_v3, %v2233_v49 }
 0xb32   : > { %v2293_v48 = vmul.f32 %v2953_v2, %v2292_v4 }
 0xb33   : > { %v2332_v22 = vsel %vm571_vm4, %v2326_v16, 0.0 }
 0xb34   : > { %2333 = vadd.xlane.f32.xlu0 %v2332_v22  ;;  %v2297_v38 = vsel %vm2296_vm3, %v2953_v2, %v2293_v48  ;;  %v2775_v2 = vld [vmem:[%s4141_s7 + $0x8] sm:$0xff] }
 0xb35   : > { %v2319_v14 = vmul.f32 %v2297_v38, %v2251_v13 }
 0xb37   : > { %v2323_v26 = vmul.f32 %v2319_v14, %v4067_v52 }
 0xb39   : > { %v2327_v33 = vadd.f32 %v2323_v26, %v2233_v49 }
 0xb3b   : > { %v2335_v19 = vsel %vm571_vm4, %v2327_v33, 0.0 }
 0xb3c   : > { %2336 = vadd.xlane.f32.xlu1 %v2335_v19 }
 0xb91   : > { %v2266_v54 = vpop.xlane.xlu1 %2265 }
 0xb92   : > { %v2272_v8 = vmul.f32 %v2266_v54, %v3950_v11 }
 0xb94   : > { %v2276_v47 = vadd.f32 1e-05, %v2272_v8 }
 0xb96   : > { %2954 = vrsqrt.f32 %v2276_v47  ;;  %vm2304_vm9 = vweird.f32 %v2276_v47 }
 0xb99   : > { %v2269_v6 = vpop.xlane.xlu2 %2268 }
 0xb9a   : > { %v2273_v63 = vmul.f32 %v2269_v6, %v3950_v11 }
 0xb9c   : > { %v2955_v12 = vpop.eup %2954  ;;  %v2277_v34 = vadd.f32 1e-05, %v2273_v63 }
 0xb9d   : > { %v2299_v30 = vmul.f32 %v2955_v12, %v2276_v47  ;;  %vm2305_vm8 = vweird.f32 %v2955_v12 }
 0xb9e   : > { %2956 = vrsqrt.f32 %v2277_v34  ;;  %vm2306_vm10 = vmor %vm2304_vm9, %vm2305_vm8  ;;  %vm2314_vm12 = vweird.f32 %v2277_v34 }
 0xb9f   : > { %v2300_v43 = vmul.f32 %v2955_v12, %v2299_v30 }
 0xba1   : > { %v2301_v50 = vmul.f32 0.5, %v2300_v43  ;;  %v2330_v43 = vld [vmem:[#allocation7 + $0x10] ss:$0 sm:$0xff] }
 0xba3   : > { %v2302_v41 = vsub.f32 1.5, %v2301_v50 }
 0xba4   : > { %v2957_v56 = vpop.eup %2956 }
 0xba5   : > { %v2303_v9 = vmul.f32 %v2955_v12, %v2302_v41  ;;  %v2309_v51 = vmul.f32 %v2957_v56, %v2277_v34  ;;  %vm2315_vm11 = vweird.f32 %v2957_v56 }
 0xba6   : > { %vm2316_vm14 = vmor %vm2314_vm12, %vm2315_vm11  ;;  %vm4170_vm11 = vcmask 31744  }
 0xba7   : > { %v2310_v62 = vmul.f32 %v2957_v56, %v2309_v51  ;;  %v2334_v20 = vpop.xlane.xlu0 %2333  ;;  %v2307_v35 = vsel %vm2306_vm10, %v2955_v12, %v2303_v9  ;;  %v2331_v51 = vld [vmem:[#allocation7 + $0x11] ss:$0 sm:$0xff]  ;;  %vm4171_vm12 = vmmov %vm4170_vm11 }
 0xba8   : > { %v2344_v13 = vmul.f32 %v2334_v20, %v3950_v11  ;;  %v2320_v45 = vmul.f32 %v2307_v35, %v4055_v32 }
 0xba9   : > { %v2311_v55 = vmul.f32 0.5, %v2310_v62 }
 0xbaa   : > { %v4077_v5 = vsub.f32 %v2326_v16, %v2344_v13  ;;  %v2324_v42 = vmul.f32 %v2320_v45, %v4067_v52 }
 0xbab   : > { %v2312_v28 = vsub.f32 1.5, %v2311_v55 }
 0xbac   : > { %v2352_v7 = vmul.f32 %v4077_v5, %v4077_v5  ;;  %v2328_v1 = vadd.f32 %v2324_v42, %v2233_v49 }
 0xbad   : > { %v2313_v61 = vmul.f32 %v2957_v56, %v2312_v28 }
 0xbae   : > { %v2356_v59 = vsel %vm571_vm4, %v2352_v7, 0.0  ;;  %v2338_v0 = vsel %vm571_vm4, %v2328_v1, 0.0 }
 0xbaf   : > { %2357 = vadd.xlane.f32.xlu1 %v2356_v59  ;;  %2339 = vadd.xlane.f32.xlu2 %v2338_v0  ;;  %v2337_v32 = vpop.xlane.xlu1 %2336  ;;  %v2317_v46 = vsel %vm2316_vm14, %v2957_v56, %v2313_v61  ;;  %vm4172_vm14 = vmmov %vm4170_vm11 }
 0xbb0   : > { %v2345_v31 = vmul.f32 %v2337_v32, %v3950_v11  ;;  %v2321_v24 = vmul.f32 %v2317_v46, %v4062_v21  ;;  %v2776_v21 = vld [vmem:[%s4141_s7 + $0x10] sm:$0xff] }
 0xbb1   : > { %2474 = vmatpush.bf16.msrb.mxu3 %v2776_v21 }
 0xbb2   : > { %v2349_v29 = vsub.f32 %v2327_v33, %v2345_v31  ;;  %v2325_v40 = vmul.f32 %v2321_v24, %v4067_v52 }
 0xbb4   : > { %v2329_v17 = vadd.f32 %v2325_v40, %v2233_v49  ;;  %v2353_v60 = vmul.f32 %v2349_v29, %v2349_v29 }
 0xbb5   : > { %2475 = vmatpush.bf16.msrb.mxu3 %v2775_v2  ;;  %v2438_v2 = vld [vmem:[#allocation7 + $0x12] ss:$0 sm:$0xff] }
 0xbb6   : > { %v2341_v36 = vsel %vm571_vm4, %v2329_v17, 0.0  ;;  %v2359_v53 = vsel %vm571_vm4, %v2353_v60, 0.0 }
 0xbb7   : > { %2342 = vadd.xlane.f32.xlu0 %v2341_v36  ;;  %2360 = vadd.xlane.f32.xlu2 %v2359_v53 }
 0xbb9   : > { %2476 = vmatpush.bf16.msrb.mxu3 %v2774_v27 }
 0xc22   : > { %v2340_v44 = vpop.xlane.xlu2 %2339  ;;  %v2358_v25 = vpop.xlane.xlu1 %2357 }
 0xc23   : > { %v2346_v58 = vmul.f32 %v2340_v44, %v3950_v11  ;;  %v2368_v23 = vmul.f32 %v2358_v25, %v3950_v11 }
 0xc25   : > { %v4100_v37 = vsub.f32 %v2328_v1, %v2346_v58  ;;  %v2372_v10 = vadd.f32 1e-05, %v2368_v23 }
 0xc27   : > { %2958 = vrsqrt.f32 %v2372_v10  ;;  %v2354_v52 = vmul.f32 %v4100_v37, %v4100_v37  ;;  %vm2382_vm15 = vweird.f32 %v2372_v10 }
 0xc29   : > { %v2362_v18 = vsel %vm571_vm4, %v2354_v52, 0.0 }
 0xc2a   : > { %v2343_v15 = vpop.xlane.xlu0 %2342  ;;  %2363 = vadd.xlane.f32.xlu0 %v2362_v18  ;;  %v2361_v39 = vpop.xlane.xlu2 %2360 }
 0xc2b   : > { %v2347_v49 = vmul.f32 %v2343_v15, %v3950_v11  ;;  %v2369_v3 = vmul.f32 %v2361_v39, %v3950_v11 }
 0xc2d   : > { %v2959_v4 = vpop.eup %2958  ;;  %v4110_v16 = vsub.f32 %v2329_v17, %v2347_v49  ;;  %v2373_v48 = vadd.f32 1e-05, %v2369_v3 }
 0xc2e   : > { %v2377_v22 = vmul.f32 %v2959_v4, %v2372_v10  ;;  %vm2383_vm13 = vweird.f32 %v2959_v4 }
 0xc2f   : > { %2960 = vrsqrt.f32 %v2373_v48  ;;  %v2355_v38 = vmul.f32 %v4110_v16, %v4110_v16  ;;  %vm2384_vm0 = vmor %vm2382_vm15, %vm2383_vm13  ;;  %vm2392_vm1 = vweird.f32 %v2373_v48 }
 0xc30   : > { %v2378_v14 = vmul.f32 %v2959_v4, %v2377_v22 }
 0xc31   : > { %v2365_v26 = vsel %vm571_vm4, %v2355_v38, 0.0 }
 0xc32   : > { %v2379_v33 = vmul.f32 0.5, %v2378_v14  ;;  %2366 = vadd.xlane.f32.xlu1 %v2365_v26 }
 0xc34   : > { %v2380_v19 = vsub.f32 1.5, %v2379_v33 }
 0xc35   : > { %v2961_v54 = vpop.eup %2960 }
 0xc36   : > { %v2381_v8 = vmul.f32 %v2959_v4, %v2380_v19  ;;  %v2387_v47 = vmul.f32 %v2961_v54, %v2373_v48  ;;  %vm2393_vm5 = vweird.f32 %v2961_v54 }
 0xc37   : > { %vm2394_vm6 = vmor %vm2392_vm1, %vm2393_vm5 }
 0xc38   : > { %v2388_v6 = vmul.f32 %v2961_v54, %v2387_v47  ;;  %v2385_v63 = vsel %vm2384_vm0, %v2959_v4, %v2381_v8 }
 0xc39   : > { %v2416_v30 = vmul.f32 %v2385_v63, %v4077_v5 }
 0xc3a   : > { %v2389_v12 = vmul.f32 0.5, %v2388_v6 }
 0xc3b   : > { %v2420_v56 = vmul.f32 %v2416_v30, %v2330_v43 }
 0xc3c   : > { %v2390_v34 = vsub.f32 1.5, %v2389_v12 }
 0xc3d   : > { %v2424_v20 = vadd.f32 %v2420_v56, %v2331_v51 }
 0xc3e   : > { %v2391_v50 = vmul.f32 %v2961_v54, %v2390_v34 }
 0xc40   : > { %v2395_v41 = vsel %vm2394_vm6, %v2961_v54, %v2391_v50 }
 0xc41   : > { %v2417_v9 = vmul.f32 %v2395_v41, %v2349_v29 }
 0xc43   : > { %v2421_v62 = vmul.f32 %v2417_v9, %v2330_v43 }
 0xc45   : > { %v2425_v35 = vadd.f32 %v2421_v62, %v2331_v51 }
 0xc47   : > { %v2428_v13 = vpack.c.bf16 %v2425_v35, %v2424_v20 }
 0xc49   : > { %2750 = vmatmul.msk.bf16.vlgmr.msrb.gmra.mxu3 %vm571_vm4, %v2428_v13 }
 0xc9d   : > { %v2364_v45 = vpop.xlane.xlu0 %2363 }
 0xc9e   : > { %v2370_v55 = vmul.f32 %v2364_v45, %v3950_v11 }
 0xca0   : > { %v2374_v42 = vadd.f32 1e-05, %v2370_v55 }
 0xca2   : > { %2962 = vrsqrt.f32 %v2374_v42  ;;  %vm2402_vm2 = vweird.f32 %v2374_v42 }
 0xca5   : > { %v2367_v5 = vpop.xlane.xlu1 %2366 }
 0xca6   : > { %v2371_v28 = vmul.f32 %v2367_v5, %v3950_v11 }
 0xca8   : > { %v2963_v7 = vpop.eup %2962  ;;  %v2375_v1 = vadd.f32 1e-05, %v2371_v28 }
 0xca9   : > { %v2397_v61 = vmul.f32 %v2963_v7, %v2374_v42  ;;  %vm2403_vm7 = vweird.f32 %v2963_v7 }
 0xcaa   : > { %2964 = vrsqrt.f32 %v2375_v1  ;;  %vm2404_vm3 = vmor %vm2402_vm2, %vm2403_vm7  ;;  %vm2412_vm9 = vweird.f32 %v2375_v1 }
 0xcab   : > { %v2398_v59 = vmul.f32 %v2963_v7, %v2397_v61 }
 0xcad   : > { %v2399_v0 = vmul.f32 0.5, %v2398_v59 }
 0xcaf   : > { %v2400_v32 = vsub.f32 1.5, %v2399_v0 }
 0xcb0   : > { %v2965_v46 = vpop.eup %2964 }
 0xcb1   : > { %v2401_v31 = vmul.f32 %v2963_v7, %v2400_v32  ;;  %v2407_v24 = vmul.f32 %v2965_v46, %v2375_v1  ;;  %vm2413_vm8 = vweird.f32 %v2965_v46 }
 0xcb2   : > { %vm2414_vm10 = vmor %vm2412_vm9, %vm2413_vm8 }
 0xcb3   : > { %v2408_v29 = vmul.f32 %v2965_v46, %v2407_v24  ;;  %v2405_v40 = vsel %vm2404_vm3, %v2963_v7, %v2401_v31 }
 0xcb4   : > { %v2418_v11 = vmul.f32 %v2405_v40, %v4100_v37 }
 0xcb5   : > { %v2409_v17 = vmul.f32 0.5, %v2408_v29 }
 0xcb6   : > { %v2422_v21 = vmul.f32 %v2418_v11, %v2330_v43 }
 0xcb7   : > { %v2410_v60 = vsub.f32 1.5, %v2409_v17 }
 0xcb8   : > { %v2426_v25 = vadd.f32 %v2422_v21, %v2331_v51 }
 0xcb9   : > { %v2411_v36 = vmul.f32 %v2965_v46, %v2410_v60 }
 0xcbb   : > { %v2415_v53 = vsel %vm2414_vm10, %v2965_v46, %v2411_v36 }
 0xcbc   : > { %v2419_v57 = vmul.f32 %v2415_v53, %v4110_v16 }
 0xcbe   : > { %v2423_v44 = vmul.f32 %v2419_v57, %v2330_v43 }
 0xcc0   : > { %v2427_v58 = vadd.f32 %v2423_v44, %v2331_v51 }
 0xcc2   : > { %v2429_v23 = vpack.c.bf16 %v2427_v58, %v2426_v25 }
 0xcc4   : > { %2751 = vmatmul.msk.bf16.gmra.mxu3 %vm571_vm4, %v2429_v23  ;;  %vm4173_vm4 = vmmov %vm4170_vm11 }
 0xccc   : > { %v2478_v37 = vpop.f32.mrf.mxu3 }
 0xccd   : > { %v2479_v10 = vadd.f32 %v2478_v37, %v2438_v2 }
 0xccf   : > { %2488 = vst.msk [vmem:[%s401_s14] sm:$0xff] %vm4170_vm11, %v2479_v10 }
 0xcd4   : > { %v2480_v27 = vpop.f32.mrf.mxu3 }
 0xcd5   : > { %v2481_v52 = vadd.f32 %v2480_v27, %v2438_v2 }
 0xcd7   : > { %2489 = vst.msk [vmem:[%s401_s14 + $0x8] sm:$0xff] %vm4171_vm12, %v2481_v52 }
 0xd47   : > { %v2483_v18 = vpop.f32.mrf.mxu3 }
 0xd48   : > { %v2484_v15 = vadd.f32 %v2483_v18, %v2438_v2 }
 0xd4a   : > { %2490 = vst.msk [vmem:[%s401_s14 + $0x10] sm:$0xff] %vm4172_vm14, %v2484_v15 }
 0xd4f   : > { %v2485_v39 = vpop.f32.mrf.mxu3 }
 0xd50   : > { %v2486_v49 = vadd.f32 %v2485_v39, %v2438_v2 }
 0xd52   : > { %2491 = vst.msk [vmem:[%s401_s14 + $0x18] sm:$0xff] %vm4173_vm4, %v2486_v49 }
 0xd53 PF: > { %s22_s30 = sadd.s32 1, %s3104_s30  }
 0xd54   : > { %p19_p7 = scmp.ge.s32.totalorder %s22_s30, 4  }
 0xd56   :  { %21 = sbr.rel (!%p19_p7) target bundleno = 3 (0x3), region = 103 }
 0xd5b   :  { %2514 = vsyncpa [#allocation3], 1 }
 0xd5c   :  { %2516 = vsyncpa [#allocation3 + $0x1], 1 }
 0xd5d   :  { %2517 = vsyncpa [#allocation5], 1 }
 0xd5e   :  { %2518 = vsyncpa [#allocation8], 1 }

</bundles_post_ra>
